<compile_context>
chip_gen: v6e
topology: v6e:2x2x1
jax: 0.10.0
libtpu: 0.0.40
codegen_flags: <defaults>
</compile_context>

<pallas_src>
import math

import jax
import jax.numpy as jnp
import numpy as np
from jax import lax
from jax.experimental import pallas as pl
from jax.experimental.pallas import tpu as pltpu

_NTAPS = 9 + 25 + 49   # 3x3 + 5x5(dil2) + 7x7 tap masks


def _erf(v):
    # Abramowitz & Stegun 7.1.26 polynomial (max abs err ~1.5e-7); matches
    # nn.GELU(approximate='none') far below the test tolerance.
    av = jnp.abs(v)
    t = pl.reciprocal(1.0 + 0.3275911 * av, approx=True)
    poly = ((((1.061405429 * t - 1.453152027) * t + 1.421413741) * t
             - 0.284496736) * t + 0.254829592) * t
    y = 1.0 - poly * jnp.exp(-av * av)
    return jnp.where(v >= 0, y, -y)


def _gelu_exact(v):
    # nn.GELU() default: 0.5 * x * (1 + erf(x / sqrt(2)))
    return 0.5 * v * (1.0 + _erf(v * 0.7071067811865476))


def _sigmoid(v):
    # Numerically stable sigmoid on the EUP (tanh) slot.
    return 0.5 * (jnp.tanh(0.5 * v) + 1.0)


# ------------------------------ Fused kernel ------------------------------
def _make_ir_kernel(H, W, C, pack, out_m):
    N = H * W
    C2 = C // 2
    G = pack * C                      # rows per grid step (packed batch x channels)

    # Static row offsets inside the parameter slab.
    R_W1 = G
    R_W2 = R_W1 + C2
    R_WC = R_W2 + C2
    R_BSQ = R_WC + C
    R_WQ = R_BSQ + 2

    # Mask-slab row bases per convolution.
    MB3, MB5, MB7 = 0, 9, 34

    def kernel(x_ref, mask_ref, par_ref, fw1_ref, fw2_ref, fb_ref, out_ref):
        f32 = jnp.float32
        x = x_ref[...].astype(f32)                    # (G, N) lane-dense

        def mask_row(base, k):
            return mask_ref[base + k:base + k + 1, :]   # (1, N) precomputed 0/1

        def dwconv(v, w, side, dil, mbase):
            """Depthwise conv via lane rolls + precomputed boundary masks.
            out[r, i*W+j] = sum_{a,b} w[r, a*side+b] * v[r, (i+di)*W+(j+dj)],
            di = (a - side//2)*dil, dj = (b - side//2)*dil; zero outside image."""
            c0 = side // 2
            acc = None
            for a in range(side):
                for b in range(side):
                    k = a * side + b
                    s = (a - c0) * dil * W + (b - c0) * dil
                    r = v if s == 0 else pltpu.roll(v, (-s) % N, 1)
                    if s != 0:
                        r = r * mask_row(mbase, k)
                    term = w[:, k:k + 1] * r
                    acc = term if acc is None else acc + term
            return acc

        # ---- static slices from the single parameter slab ----
        w0 = par_ref[0:G, 0:9]                 # depthwise 3x3 taps (tiled over pack)
        ws = par_ref[0:G, 9:34]                # depthwise 5x5 taps
        b0 = par_ref[0:G, 34:35]
        bs = par_ref[0:G, 35:36]
        bc = par_ref[0:G, 36:37]
        w1 = par_ref[R_W1:R_W1 + C2, 0:C]
        b1 = par_ref[R_W1:R_W1 + C2, C:C + 1]
        w2 = par_ref[R_W2:R_W2 + C2, 0:C]
        b2 = par_ref[R_W2:R_W2 + C2, C:C + 1]
        wc = par_ref[R_WC:R_WC + C, 0:C2]
        bsq = par_ref[R_BSQ:R_BSQ + 2, 0:1]
        wq = par_ref[R_WQ:R_WQ + 4 * pack, 0:49]

        # ---- conv0: depthwise 3x3, pad 1 ----
        attn1 = dwconv(x, w0, 3, 1, MB3) + b0
        # ---- conv_spatial: depthwise 5x5, dilation 2, pad 4 ----
        attn2 = dwconv(attn1, ws, 5, 2, MB5) + bs

        # ---- conv1 / conv2: 1x1 channel mixes (C -> C//2) per packed element
        # (contraction dim C=4 is below MXU granularity -> broadcast FMAs) ----
        a1s, a2s, aggs = [], [], []
        for pI in range(pack):
            t1 = attn1[pI * C:(pI + 1) * C]
            t2 = attn2[pI * C:(pI + 1) * C]
            a1 = w1[:, 0:1] * t1[0:1]
            a2 = w2[:, 0:1] * t2[0:1]
            for c in range(1, C):
                a1 = a1 + w1[:, c:c + 1] * t1[c:c + 1]
                a2 = a2 + w2[:, c:c + 1] * t2[c:c + 1]
            a1 = a1 + b1
            a2 = a2 + b2
            a1s.append(a1)
            a2s.append(a2)
            # channel mean / max over cat([a1, a2], channel)
            avg = (jnp.sum(a1, axis=0, keepdims=True)
                   + jnp.sum(a2, axis=0, keepdims=True)) * (1.0 / (2 * C2))
            mx = jnp.maximum(jnp.max(a1, axis=0, keepdims=True),
                             jnp.max(a2, axis=0, keepdims=True))
            # rows ordered like the (o, ic) weight rows: (0,0)(0,1)(1,0)(1,1)
            aggs += [avg, mx, avg, mx]
        agg = jnp.concatenate(aggs, axis=0) if len(aggs) > 1 else aggs[0]

        # ---- conv_squeeze: 2->2 channels, 7x7, pad 3, sigmoid ----
        sq = dwconv(agg, wq, 7, 1, MB7)                # (4*pack, N)

        gated = []
        for pI in range(pack):
            r0 = 4 * pI
            sig0 = _sigmoid(sq[r0 + 0:r0 + 1] + sq[r0 + 1:r0 + 2] + bsq[0:1])
            sig1 = _sigmoid(sq[r0 + 2:r0 + 3] + sq[r0 + 3:r0 + 4] + bsq[1:2])
            mix = a1s[pI] * sig0 + a2s[pI] * sig1      # (C2, N)
            # final 1x1 conv (C//2 -> C)
            accf = wc[:, 0:1] * mix[0:1]
            for c in range(1, C2):
                accf = accf + wc[:, c:c + 1] * mix[c:c + 1]
            accf = accf + bc[pI * C:(pI + 1) * C]
            gated.append(x[pI * C:(pI + 1) * C] * accf)
        sat = jnp.concatenate(gated, axis=0) if len(gated) > 1 else gated[0]

        # ---- UP layer: fc1 -> GELU -> fc2 on the MXU (bf16 in, f32 accum) ----
        fb1 = fb_ref[0:1, 0:2 * N]
        fb2 = fb_ref[1:2, 0:out_m]
        h = jnp.dot(sat.astype(jnp.bfloat16), fw1_ref[...],
                    preferred_element_type=f32) + fb1
        h = _gelu_exact(h)
        o = jnp.dot(h.astype(jnp.bfloat16), fw2_ref[...],
                    preferred_element_type=f32) + fb2
        out_ref[...] = o.astype(out_ref.dtype)

    return kernel


# ------------------------------ Wrapper ------------------------------
def _make_masks(H, W):
    """One f32 {0,1} row per conv tap: 1 where the tap's source pixel is inside
    the image (zero-padding semantics). Lane-dense layout (taps, H*W)."""
    N = H * W
    idx = np.arange(N)
    row, col = idx // W, idx % W
    rows = []

    def add(offsets):
        for di, dj in offsets:
            ok = ((row + di >= 0) & (row + di < H)
                  & (col + dj >= 0) & (col + dj < W))
            rows.append(ok.astype(np.float32))

    add([(a - 1, b - 1) for a in range(3) for b in range(3)])           # 3x3 pad 1
    add([(2 * a - 4, 2 * b - 4) for a in range(5) for b in range(5)])   # 5x5 dil 2 pad 4
    add([(a - 3, b - 3) for a in range(7) for b in range(7)])           # 7x7 pad 3
    return jnp.asarray(np.stack(rows))                                  # (83, N)


def information_reconstruction_forward(x, p, out_s):
    B, C, H, W = x.shape
    C2 = C // 2
    N = H * W
    M = out_s * out_s

    # Sublane batch packing: 2 elements per grid step fill all 8 sublanes of the
    # f32 vregs; keep >= 2 parallel grid steps so a 2-TensorCore chip (v7x) still
    # shards the batch across both cores.
    pack = 2 if (B % 2 == 0 and B >= 4) else 1
    G = pack * C

    xf = x.reshape(B // pack, G, N).astype(jnp.float32)    # lane-dense input
    masks = _make_masks(H, W)

    def tile_rows(a):
        return jnp.tile(a.astype(jnp.float32), (pack, 1))

    def pad128(a):
        a = a.astype(jnp.float32)
        return jnp.pad(a, ((0, 0), (0, 128 - a.shape[1])))

    # One parameter slab: per-channel depthwise params (tiled over the batch pack),
    # then the small 1x1-mix / squeeze weights. One DMA instead of ~16.
    chan = jnp.concatenate([
        tile_rows(p['w0'].reshape(C, 9)),
        tile_rows(p['ws'].reshape(C, 25)),
        tile_rows(p['b0'].reshape(C, 1)),
        tile_rows(p['bs'].reshape(C, 1)),
        tile_rows(p['bc'].reshape(C, 1)),
    ], axis=1)                                             # (G, 37)
    par = jnp.concatenate([
        pad128(chan),
        pad128(jnp.concatenate([p['w1'], p['b1'].reshape(C2, 1)], axis=1)),
        pad128(jnp.concatenate([p['w2'], p['b2'].reshape(C2, 1)], axis=1)),
        pad128(p['wc']),
        pad128(p['bsq'].reshape(2, 1)),
        pad128(tile_rows(p['wsq'].reshape(4, 49))),        # rows = (o,ic) pairs
    ], axis=0)                                             # (G+2*C2+C+2+4*pack, 128)
    P_ROWS = par.shape[0]

    fw1t = p['fw1'].T.astype(jnp.bfloat16)                 # (N, 2N) bf16 for the MXU
    fw2t = p['fw2'].T.astype(jnp.bfloat16)                 # (2N, M) bf16
    fbw = max(2 * N, M)
    fb = jnp.zeros((2, fbw), jnp.float32)
    fb = fb.at[0, :2 * N].set(p['fb1'].astype(jnp.float32))
    fb = fb.at[1, :M].set(p['fb2'].astype(jnp.float32))

    # TODO(synk): grid-invariant inputs (weights) could be single-buffered via
    # pipeline_mode=pl.Buffered(1); left at the default since VMEM use is ~1 MB.
    out = pl.pallas_call(
        _make_ir_kernel(H, W, C, pack, M),
        out_shape=jax.ShapeDtypeStruct((B // pack, G, M), jnp.float32),
        grid=(B // pack,),
        in_specs=[
            pl.BlockSpec((None, G, N), lambda b: (b, 0, 0)),     # x (lane-dense)
            pl.BlockSpec((_NTAPS, N), lambda b: (0, 0)),         # tap boundary masks
            pl.BlockSpec((P_ROWS, 128), lambda b: (0, 0)),       # weight slab
            pl.BlockSpec((N, 2 * N), lambda b: (0, 0)),          # fc1 weight (bf16)
            pl.BlockSpec((2 * N, M), lambda b: (0, 0)),          # fc2 weight (bf16)
            pl.BlockSpec((2, fbw), lambda b: (0, 0)),            # fc biases
        ],
        out_specs=pl.BlockSpec((None, G, M), lambda b: (b, 0, 0)),
        compiler_params=pltpu.CompilerParams(
            dimension_semantics=("parallel",)),
    )(xf, masks, par, fw1t, fw2t, fb)

    return out.reshape(B, C, out_s, out_s)


# ------------------------------ Deterministic parameter init ------------------------------
def init_params(key, dim, in_s, out_s):
    C, C2 = dim, dim // 2
    N, M = in_s * in_s, out_s * out_s
    ks = jax.random.split(key, 16)

    def nrm(k, shape, s):
        return (s * jax.random.normal(k, shape)).astype(jnp.float32)

    return dict(
        w0=nrm(ks[0], (C, 3, 3), 0.25), b0=nrm(ks[1], (C,), 0.1),
        ws=nrm(ks[2], (C, 5, 5), 0.15), bs=nrm(ks[3], (C,), 0.1),
        w1=nrm(ks[4], (C2, C), 0.4), b1=nrm(ks[5], (C2,), 0.1),
        w2=nrm(ks[6], (C2, C), 0.4), b2=nrm(ks[7], (C2,), 0.1),
        wsq=nrm(ks[8], (2, 2, 7, 7), 0.15), bsq=nrm(ks[9], (2,), 0.1),
        wc=nrm(ks[10], (C, C2), 0.4), bc=nrm(ks[11], (C,), 0.1),
        fw1=nrm(ks[12], (2 * N, N), 1.0 / math.sqrt(N)),
        fb1=nrm(ks[13], (2 * N,), 0.05),
        fw2=nrm(ks[14], (M, 2 * N), 1.0 / math.sqrt(2 * N)),
        fb2=nrm(ks[15], (M,), 0.05),
    )


# ------------------------------ Pure-JAX reference (PyTorch semantics) ------------------------------
def reference_forward(x, p, out_s):
    B, C, H, W = x.shape
    dn = ('NCHW', 'OIHW', 'NCHW')

    def conv(inp, w, b, pad, dil=1, groups=1):
        out = lax.conv_general_dilated(
            inp, w, window_strides=(1, 1),
            padding=((pad, pad), (pad, pad)),
            rhs_dilation=(dil, dil),
            dimension_numbers=dn,
            feature_group_count=groups,
            precision=lax.Precision.HIGHEST)
        return out + b[None, :, None, None]

    attn1 = conv(x, p['w0'].reshape(C, 1, 3, 3), p['b0'], 1, 1, C)
    attn2 = conv(attn1, p['ws'].reshape(C, 1, 5, 5), p['bs'], 4, 2, C)
    a1 = conv(attn1, p['w1'][:, :, None, None], p['b1'], 0)
    a2 = conv(attn2, p['w2'][:, :, None, None], p['b2'], 0)
    attn = jnp.concatenate([a1, a2], axis=1)
    avg = jnp.mean(attn, axis=1, keepdims=True)
    mx = jnp.max(attn, axis=1, keepdims=True)
    agg = jnp.concatenate([avg, mx], axis=1)
    sig = jax.nn.sigmoid(conv(agg, p['wsq'], p['bsq'], 3))
    attn_m = a1 * sig[:, 0:1] + a2 * sig[:, 1:2]
    attn_f = conv(attn_m, p['wc'][:, :, None, None], p['bc'], 0)
    sat = x * attn_f

    xf = sat.reshape(B, C, H * W)
    h = jnp.dot(xf, p['fw1'].T, precision=lax.Precision.HIGHEST) + p['fb1']
    h = jax.nn.gelu(h, approximate=False)
    o = jnp.dot(h, p['fw2'].T, precision=lax.Precision.HIGHEST) + p['fb2']
    return o.reshape(B, C, out_s, out_s)


if __name__ == "__main__":
    dim, in_s, out_s = 4, 16, 16
    key = jax.random.PRNGKey(0)
    # B=2 exercises the unpacked (2 parallel grid steps) path; B=4 exercises the
    # sublane-packed path (2 batch elements per grid step, 2 parallel steps).
    for B in (2, 4):
        kb = jax.random.fold_in(key, B)
        kx, kp = jax.random.split(kb)
        x = jax.random.normal(kx, (B, dim, in_s, in_s), dtype=jnp.float32)
        params = init_params(kp, dim, in_s, out_s)

        out = jax.block_until_ready(
            information_reconstruction_forward(x, params, out_s))
        assert out.shape == (B, dim, out_s, out_s)

        ref = reference_forward(x, params, out_s)
        np.testing.assert_allclose(np.asarray(out), np.asarray(ref),
                                   rtol=2e-2, atol=2e-2)
    print("KERNEL_OK")
</pallas_src>

<mosaic_0001>
module attributes {stable_mosaic.version = 11 : i64} {
  func.func @kernel(%arg0: i32, %arg1: memref<1x4x256xf32, #tpu.memory_space<vmem>>, %arg2: memref<83x256xf32, #tpu.memory_space<vmem>>, %arg3: memref<18x128xf32, #tpu.memory_space<vmem>>, %arg4: memref<256x512xbf16, #tpu.memory_space<vmem>>, %arg5: memref<512x256xbf16, #tpu.memory_space<vmem>>, %arg6: memref<2x512xf32, #tpu.memory_space<vmem>>, %arg7: memref<1x4x256xf32, #tpu.memory_space<vmem>>) attributes {dimension_semantics = [#tpu.dimension_semantics<parallel>], iteration_bounds = array<i64: 2>, scalar_prefetch = 0 : i64, scratch_operands = 0 : i64, tpu.core_type = #tpu.core_type<tc>, window_params = [{transform_indices = @transform_0, window_bounds = array<i64: 1, 4, 256>}, {pipeline_mode = #tpu.pipeline_mode<synchronous>, transform_indices = @transform_1, window_bounds = array<i64: 83, 256>}, {pipeline_mode = #tpu.pipeline_mode<synchronous>, transform_indices = @transform_2, window_bounds = array<i64: 18, 128>}, {pipeline_mode = #tpu.pipeline_mode<synchronous>, transform_indices = @transform_3, window_bounds = array<i64: 256, 512>}, {pipeline_mode = #tpu.pipeline_mode<synchronous>, transform_indices = @transform_4, window_bounds = array<i64: 512, 256>}, {pipeline_mode = #tpu.pipeline_mode<synchronous>, transform_indices = @transform_5, window_bounds = array<i64: 2, 512>}, {transform_indices = @transform_6, window_bounds = array<i64: 1, 4, 256>}]} {
    %c0 = arith.constant 0 : index
    %c0_0 = arith.constant 0 : index
    %c0_1 = arith.constant 0 : index
    %0 = vector.load %arg1[%c0, %c0_0, %c0_1] : memref<1x4x256xf32, #tpu.memory_space<vmem>>, vector<1x4x256xf32>
    %1 = vector.shape_cast %0 : vector<1x4x256xf32> to vector<4x256xf32>
    %c0_2 = arith.constant 0 : index
    %c0_3 = arith.constant 0 : index
    %2 = vector.load %arg3[%c0_2, %c0_3] : memref<18x128xf32, #tpu.memory_space<vmem>>, vector<4x9xf32>
    %c0_4 = arith.constant 0 : index
    %c9 = arith.constant 9 : index
    %3 = vector.load %arg3[%c0_4, %c9] : memref<18x128xf32, #tpu.memory_space<vmem>>, vector<4x25xf32>
    %c0_5 = arith.constant 0 : index
    %c34 = arith.constant 34 : index
    %4 = vector.load %arg3[%c0_5, %c34] : memref<18x128xf32, #tpu.memory_space<vmem>>, vector<4x1xf32>
    %c0_6 = arith.constant 0 : index
    %c35 = arith.constant 35 : index
    %5 = vector.load %arg3[%c0_6, %c35] : memref<18x128xf32, #tpu.memory_space<vmem>>, vector<4x1xf32>
    %c0_7 = arith.constant 0 : index
    %c36 = arith.constant 36 : index
    %6 = vector.load %arg3[%c0_7, %c36] : memref<18x128xf32, #tpu.memory_space<vmem>>, vector<4x1xf32>
    %c4 = arith.constant 4 : index
    %c0_8 = arith.constant 0 : index
    %7 = vector.load %arg3[%c4, %c0_8] : memref<18x128xf32, #tpu.memory_space<vmem>>, vector<2x4xf32>
    %c4_9 = arith.constant 4 : index
    %c4_10 = arith.constant 4 : index
    %8 = vector.load %arg3[%c4_9, %c4_10] : memref<18x128xf32, #tpu.memory_space<vmem>>, vector<2x1xf32>
    %c6 = arith.constant 6 : index
    %c0_11 = arith.constant 0 : index
    %9 = vector.load %arg3[%c6, %c0_11] : memref<18x128xf32, #tpu.memory_space<vmem>>, vector<2x4xf32>
    %c6_12 = arith.constant 6 : index
    %c4_13 = arith.constant 4 : index
    %10 = vector.load %arg3[%c6_12, %c4_13] : memref<18x128xf32, #tpu.memory_space<vmem>>, vector<2x1xf32>
    %c8 = arith.constant 8 : index
    %c0_14 = arith.constant 0 : index
    %11 = vector.load %arg3[%c8, %c0_14] : memref<18x128xf32, #tpu.memory_space<vmem>>, vector<4x2xf32>
    %c12 = arith.constant 12 : index
    %c0_15 = arith.constant 0 : index
    %12 = vector.load %arg3[%c12, %c0_15] : memref<18x128xf32, #tpu.memory_space<vmem>>, vector<2x1xf32>
    %c14 = arith.constant 14 : index
    %c0_16 = arith.constant 0 : index
    %13 = vector.load %arg3[%c14, %c0_16] : memref<18x128xf32, #tpu.memory_space<vmem>>, vector<4x49xf32>
    %c17_i32 = arith.constant 17 : i32
    %14 = tpu.dynamic_rotate %1 by %c17_i32 dim 1 : vector<4x256xf32>, i32 -> vector<4x256xf32>
    %c0_17 = arith.constant 0 : index
    %c0_18 = arith.constant 0 : index
    %15 = vector.load %arg2[%c0_17, %c0_18] : memref<83x256xf32, #tpu.memory_space<vmem>>, vector<1x256xf32>
    %16 = vector.broadcast %15 : vector<1x256xf32> to vector<4x256xf32>
    %17 = arith.mulf %14, %16 : vector<4x256xf32>
    %18 = vector.extract_strided_slice %2 {offsets = [0, 0], sizes = [4, 1], strides = [1, 1]} : vector<4x9xf32> to vector<4x1xf32>
    %19 = vector.broadcast %18 : vector<4x1xf32> to vector<4x256xf32>
    %20 = arith.mulf %19, %17 : vector<4x256xf32>
    %c16_i32 = arith.constant 16 : i32
    %21 = tpu.dynamic_rotate %1 by %c16_i32 dim 1 : vector<4x256xf32>, i32 -> vector<4x256xf32>
    %c1 = arith.constant 1 : index
    %c0_19 = arith.constant 0 : index
    %22 = vector.load %arg2[%c1, %c0_19] : memref<83x256xf32, #tpu.memory_space<vmem>>, vector<1x256xf32>
    %23 = vector.broadcast %22 : vector<1x256xf32> to vector<4x256xf32>
    %24 = arith.mulf %21, %23 : vector<4x256xf32>
    %25 = vector.extract_strided_slice %2 {offsets = [0, 1], sizes = [4, 1], strides = [1, 1]} : vector<4x9xf32> to vector<4x1xf32>
    %26 = vector.broadcast %25 : vector<4x1xf32> to vector<4x256xf32>
    %27 = arith.mulf %26, %24 : vector<4x256xf32>
    %28 = arith.addf %20, %27 : vector<4x256xf32>
    %c15_i32 = arith.constant 15 : i32
    %29 = tpu.dynamic_rotate %1 by %c15_i32 dim 1 : vector<4x256xf32>, i32 -> vector<4x256xf32>
    %c2 = arith.constant 2 : index
    %c0_20 = arith.constant 0 : index
    %30 = vector.load %arg2[%c2, %c0_20] : memref<83x256xf32, #tpu.memory_space<vmem>>, vector<1x256xf32>
    %31 = vector.broadcast %30 : vector<1x256xf32> to vector<4x256xf32>
    %32 = arith.mulf %29, %31 : vector<4x256xf32>
    %33 = vector.extract_strided_slice %2 {offsets = [0, 2], sizes = [4, 1], strides = [1, 1]} : vector<4x9xf32> to vector<4x1xf32>
    %34 = vector.broadcast %33 : vector<4x1xf32> to vector<4x256xf32>
    %35 = arith.mulf %34, %32 : vector<4x256xf32>
    %36 = arith.addf %28, %35 : vector<4x256xf32>
    %c1_i32 = arith.constant 1 : i32
    %37 = tpu.dynamic_rotate %1 by %c1_i32 dim 1 : vector<4x256xf32>, i32 -> vector<4x256xf32>
    %c3 = arith.constant 3 : index
    %c0_21 = arith.constant 0 : index
    %38 = vector.load %arg2[%c3, %c0_21] : memref<83x256xf32, #tpu.memory_space<vmem>>, vector<1x256xf32>
    %39 = vector.broadcast %38 : vector<1x256xf32> to vector<4x256xf32>
    %40 = arith.mulf %37, %39 : vector<4x256xf32>
    %41 = vector.extract_strided_slice %2 {offsets = [0, 3], sizes = [4, 1], strides = [1, 1]} : vector<4x9xf32> to vector<4x1xf32>
    %42 = vector.broadcast %41 : vector<4x1xf32> to vector<4x256xf32>
    %43 = arith.mulf %42, %40 : vector<4x256xf32>
    %44 = arith.addf %36, %43 : vector<4x256xf32>
    %45 = vector.extract_strided_slice %2 {offsets = [0, 4], sizes = [4, 1], strides = [1, 1]} : vector<4x9xf32> to vector<4x1xf32>
    %46 = vector.broadcast %45 : vector<4x1xf32> to vector<4x256xf32>
    %47 = arith.mulf %46, %1 : vector<4x256xf32>
    %48 = arith.addf %44, %47 : vector<4x256xf32>
    %c255_i32 = arith.constant 255 : i32
    %49 = tpu.dynamic_rotate %1 by %c255_i32 dim 1 : vector<4x256xf32>, i32 -> vector<4x256xf32>
    %c5 = arith.constant 5 : index
    %c0_22 = arith.constant 0 : index
    %50 = vector.load %arg2[%c5, %c0_22] : memref<83x256xf32, #tpu.memory_space<vmem>>, vector<1x256xf32>
    %51 = vector.broadcast %50 : vector<1x256xf32> to vector<4x256xf32>
    %52 = arith.mulf %49, %51 : vector<4x256xf32>
    %53 = vector.extract_strided_slice %2 {offsets = [0, 5], sizes = [4, 1], strides = [1, 1]} : vector<4x9xf32> to vector<4x1xf32>
    %54 = vector.broadcast %53 : vector<4x1xf32> to vector<4x256xf32>
    %55 = arith.mulf %54, %52 : vector<4x256xf32>
    %56 = arith.addf %48, %55 : vector<4x256xf32>
    %c241_i32 = arith.constant 241 : i32
    %57 = tpu.dynamic_rotate %1 by %c241_i32 dim 1 : vector<4x256xf32>, i32 -> vector<4x256xf32>
    %c6_23 = arith.constant 6 : index
    %c0_24 = arith.constant 0 : index
    %58 = vector.load %arg2[%c6_23, %c0_24] : memref<83x256xf32, #tpu.memory_space<vmem>>, vector<1x256xf32>
    %59 = vector.broadcast %58 : vector<1x256xf32> to vector<4x256xf32>
    %60 = arith.mulf %57, %59 : vector<4x256xf32>
    %61 = vector.extract_strided_slice %2 {offsets = [0, 6], sizes = [4, 1], strides = [1, 1]} : vector<4x9xf32> to vector<4x1xf32>
    %62 = vector.broadcast %61 : vector<4x1xf32> to vector<4x256xf32>
    %63 = arith.mulf %62, %60 : vector<4x256xf32>
    %64 = arith.addf %56, %63 : vector<4x256xf32>
    %c240_i32 = arith.constant 240 : i32
    %65 = tpu.dynamic_rotate %1 by %c240_i32 dim 1 : vector<4x256xf32>, i32 -> vector<4x256xf32>
    %c7 = arith.constant 7 : index
    %c0_25 = arith.constant 0 : index
    %66 = vector.load %arg2[%c7, %c0_25] : memref<83x256xf32, #tpu.memory_space<vmem>>, vector<1x256xf32>
    %67 = vector.broadcast %66 : vector<1x256xf32> to vector<4x256xf32>
    %68 = arith.mulf %65, %67 : vector<4x256xf32>
    %69 = vector.extract_strided_slice %2 {offsets = [0, 7], sizes = [4, 1], strides = [1, 1]} : vector<4x9xf32> to vector<4x1xf32>
    %70 = vector.broadcast %69 : vector<4x1xf32> to vector<4x256xf32>
    %71 = arith.mulf %70, %68 : vector<4x256xf32>
    %72 = arith.addf %64, %71 : vector<4x256xf32>
    %c239_i32 = arith.constant 239 : i32
    %73 = tpu.dynamic_rotate %1 by %c239_i32 dim 1 : vector<4x256xf32>, i32 -> vector<4x256xf32>
    %c8_26 = arith.constant 8 : index
    %c0_27 = arith.constant 0 : index
    %74 = vector.load %arg2[%c8_26, %c0_27] : memref<83x256xf32, #tpu.memory_space<vmem>>, vector<1x256xf32>
    %75 = vector.broadcast %74 : vector<1x256xf32> to vector<4x256xf32>
    %76 = arith.mulf %73, %75 : vector<4x256xf32>
    %77 = vector.extract_strided_slice %2 {offsets = [0, 8], sizes = [4, 1], strides = [1, 1]} : vector<4x9xf32> to vector<4x1xf32>
    %78 = vector.broadcast %77 : vector<4x1xf32> to vector<4x256xf32>
    %79 = arith.mulf %78, %76 : vector<4x256xf32>
    %80 = arith.addf %72, %79 : vector<4x256xf32>
    %81 = vector.broadcast %4 : vector<4x1xf32> to vector<4x256xf32>
    %82 = arith.addf %80, %81 : vector<4x256xf32>
    %c68_i32 = arith.constant 68 : i32
    %83 = tpu.dynamic_rotate %82 by %c68_i32 dim 1 : vector<4x256xf32>, i32 -> vector<4x256xf32>
    %c9_28 = arith.constant 9 : index
    %c0_29 = arith.constant 0 : index
    %84 = vector.load %arg2[%c9_28, %c0_29] : memref<83x256xf32, #tpu.memory_space<vmem>>, vector<1x256xf32>
    %85 = vector.broadcast %84 : vector<1x256xf32> to vector<4x256xf32>
    %86 = arith.mulf %83, %85 : vector<4x256xf32>
    %87 = vector.extract_strided_slice %3 {offsets = [0, 0], sizes = [4, 1], strides = [1, 1]} : vector<4x25xf32> to vector<4x1xf32>
    %88 = vector.broadcast %87 : vector<4x1xf32> to vector<4x256xf32>
    %89 = arith.mulf %88, %86 : vector<4x256xf32>
    %c66_i32 = arith.constant 66 : i32
    %90 = tpu.dynamic_rotate %82 by %c66_i32 dim 1 : vector<4x256xf32>, i32 -> vector<4x256xf32>
    %c10 = arith.constant 10 : index
    %c0_30 = arith.constant 0 : index
    %91 = vector.load %arg2[%c10, %c0_30] : memref<83x256xf32, #tpu.memory_space<vmem>>, vector<1x256xf32>
    %92 = vector.broadcast %91 : vector<1x256xf32> to vector<4x256xf32>
    %93 = arith.mulf %90, %92 : vector<4x256xf32>
    %94 = vector.extract_strided_slice %3 {offsets = [0, 1], sizes = [4, 1], strides = [1, 1]} : vector<4x25xf32> to vector<4x1xf32>
    %95 = vector.broadcast %94 : vector<4x1xf32> to vector<4x256xf32>
    %96 = arith.mulf %95, %93 : vector<4x256xf32>
    %97 = arith.addf %89, %96 : vector<4x256xf32>
    %c64_i32 = arith.constant 64 : i32
    %98 = tpu.dynamic_rotate %82 by %c64_i32 dim 1 : vector<4x256xf32>, i32 -> vector<4x256xf32>
    %c11 = arith.constant 11 : index
    %c0_31 = arith.constant 0 : index
    %99 = vector.load %arg2[%c11, %c0_31] : memref<83x256xf32, #tpu.memory_space<vmem>>, vector<1x256xf32>
    %100 = vector.broadcast %99 : vector<1x256xf32> to vector<4x256xf32>
    %101 = arith.mulf %98, %100 : vector<4x256xf32>
    %102 = vector.extract_strided_slice %3 {offsets = [0, 2], sizes = [4, 1], strides = [1, 1]} : vector<4x25xf32> to vector<4x1xf32>
    %103 = vector.broadcast %102 : vector<4x1xf32> to vector<4x256xf32>
    %104 = arith.mulf %103, %101 : vector<4x256xf32>
    %105 = arith.addf %97, %104 : vector<4x256xf32>
    %c62_i32 = arith.constant 62 : i32
    %106 = tpu.dynamic_rotate %82 by %c62_i32 dim 1 : vector<4x256xf32>, i32 -> vector<4x256xf32>
    %c12_32 = arith.constant 12 : index
    %c0_33 = arith.constant 0 : index
    %107 = vector.load %arg2[%c12_32, %c0_33] : memref<83x256xf32, #tpu.memory_space<vmem>>, vector<1x256xf32>
    %108 = vector.broadcast %107 : vector<1x256xf32> to vector<4x256xf32>
    %109 = arith.mulf %106, %108 : vector<4x256xf32>
    %110 = vector.extract_strided_slice %3 {offsets = [0, 3], sizes = [4, 1], strides = [1, 1]} : vector<4x25xf32> to vector<4x1xf32>
    %111 = vector.broadcast %110 : vector<4x1xf32> to vector<4x256xf32>
    %112 = arith.mulf %111, %109 : vector<4x256xf32>
    %113 = arith.addf %105, %112 : vector<4x256xf32>
    %c60_i32 = arith.constant 60 : i32
    %114 = tpu.dynamic_rotate %82 by %c60_i32 dim 1 : vector<4x256xf32>, i32 -> vector<4x256xf32>
    %c13 = arith.constant 13 : index
    %c0_34 = arith.constant 0 : index
    %115 = vector.load %arg2[%c13, %c0_34] : memref<83x256xf32, #tpu.memory_space<vmem>>, vector<1x256xf32>
    %116 = vector.broadcast %115 : vector<1x256xf32> to vector<4x256xf32>
    %117 = arith.mulf %114, %116 : vector<4x256xf32>
    %118 = vector.extract_strided_slice %3 {offsets = [0, 4], sizes = [4, 1], strides = [1, 1]} : vector<4x25xf32> to vector<4x1xf32>
    %119 = vector.broadcast %118 : vector<4x1xf32> to vector<4x256xf32>
    %120 = arith.mulf %119, %117 : vector<4x256xf32>
    %121 = arith.addf %113, %120 : vector<4x256xf32>
    %c36_i32 = arith.constant 36 : i32
    %122 = tpu.dynamic_rotate %82 by %c36_i32 dim 1 : vector<4x256xf32>, i32 -> vector<4x256xf32>
    %c14_35 = arith.constant 14 : index
    %c0_36 = arith.constant 0 : index
    %123 = vector.load %arg2[%c14_35, %c0_36] : memref<83x256xf32, #tpu.memory_space<vmem>>, vector<1x256xf32>
    %124 = vector.broadcast %123 : vector<1x256xf32> to vector<4x256xf32>
    %125 = arith.mulf %122, %124 : vector<4x256xf32>
    %126 = vector.extract_strided_slice %3 {offsets = [0, 5], sizes = [4, 1], strides = [1, 1]} : vector<4x25xf32> to vector<4x1xf32>
    %127 = vector.broadcast %126 : vector<4x1xf32> to vector<4x256xf32>
    %128 = arith.mulf %127, %125 : vector<4x256xf32>
    %129 = arith.addf %121, %128 : vector<4x256xf32>
    %c34_i32 = arith.constant 34 : i32
    %130 = tpu.dynamic_rotate %82 by %c34_i32 dim 1 : vector<4x256xf32>, i32 -> vector<4x256xf32>
    %c15 = arith.constant 15 : index
    %c0_37 = arith.constant 0 : index
    %131 = vector.load %arg2[%c15, %c0_37] : memref<83x256xf32, #tpu.memory_space<vmem>>, vector<1x256xf32>
    %132 = vector.broadcast %131 : vector<1x256xf32> to vector<4x256xf32>
    %133 = arith.mulf %130, %132 : vector<4x256xf32>
    %134 = vector.extract_strided_slice %3 {offsets = [0, 6], sizes = [4, 1], strides = [1, 1]} : vector<4x25xf32> to vector<4x1xf32>
    %135 = vector.broadcast %134 : vector<4x1xf32> to vector<4x256xf32>
    %136 = arith.mulf %135, %133 : vector<4x256xf32>
    %137 = arith.addf %129, %136 : vector<4x256xf32>
    %c32_i32 = arith.constant 32 : i32
    %138 = tpu.dynamic_rotate %82 by %c32_i32 dim 1 : vector<4x256xf32>, i32 -> vector<4x256xf32>
    %c16 = arith.constant 16 : index
    %c0_38 = arith.constant 0 : index
    %139 = vector.load %arg2[%c16, %c0_38] : memref<83x256xf32, #tpu.memory_space<vmem>>, vector<1x256xf32>
    %140 = vector.broadcast %139 : vector<1x256xf32> to vector<4x256xf32>
    %141 = arith.mulf %138, %140 : vector<4x256xf32>
    %142 = vector.extract_strided_slice %3 {offsets = [0, 7], sizes = [4, 1], strides = [1, 1]} : vector<4x25xf32> to vector<4x1xf32>
    %143 = vector.broadcast %142 : vector<4x1xf32> to vector<4x256xf32>
    %144 = arith.mulf %143, %141 : vector<4x256xf32>
    %145 = arith.addf %137, %144 : vector<4x256xf32>
    %c30_i32 = arith.constant 30 : i32
    %146 = tpu.dynamic_rotate %82 by %c30_i32 dim 1 : vector<4x256xf32>, i32 -> vector<4x256xf32>
    %c17 = arith.constant 17 : index
    %c0_39 = arith.constant 0 : index
    %147 = vector.load %arg2[%c17, %c0_39] : memref<83x256xf32, #tpu.memory_space<vmem>>, vector<1x256xf32>
    %148 = vector.broadcast %147 : vector<1x256xf32> to vector<4x256xf32>
    %149 = arith.mulf %146, %148 : vector<4x256xf32>
    %150 = vector.extract_strided_slice %3 {offsets = [0, 8], sizes = [4, 1], strides = [1, 1]} : vector<4x25xf32> to vector<4x1xf32>
    %151 = vector.broadcast %150 : vector<4x1xf32> to vector<4x256xf32>
    %152 = arith.mulf %151, %149 : vector<4x256xf32>
    %153 = arith.addf %145, %152 : vector<4x256xf32>
    %c28_i32 = arith.constant 28 : i32
    %154 = tpu.dynamic_rotate %82 by %c28_i32 dim 1 : vector<4x256xf32>, i32 -> vector<4x256xf32>
    %c18 = arith.constant 18 : index
    %c0_40 = arith.constant 0 : index
    %155 = vector.load %arg2[%c18, %c0_40] : memref<83x256xf32, #tpu.memory_space<vmem>>, vector<1x256xf32>
    %156 = vector.broadcast %155 : vector<1x256xf32> to vector<4x256xf32>
    %157 = arith.mulf %154, %156 : vector<4x256xf32>
    %158 = vector.extract_strided_slice %3 {offsets = [0, 9], sizes = [4, 1], strides = [1, 1]} : vector<4x25xf32> to vector<4x1xf32>
    %159 = vector.broadcast %158 : vector<4x1xf32> to vector<4x256xf32>
    %160 = arith.mulf %159, %157 : vector<4x256xf32>
    %161 = arith.addf %153, %160 : vector<4x256xf32>
    %c4_i32 = arith.constant 4 : i32
    %162 = tpu.dynamic_rotate %82 by %c4_i32 dim 1 : vector<4x256xf32>, i32 -> vector<4x256xf32>
    %c19 = arith.constant 19 : index
    %c0_41 = arith.constant 0 : index
    %163 = vector.load %arg2[%c19, %c0_41] : memref<83x256xf32, #tpu.memory_space<vmem>>, vector<1x256xf32>
    %164 = vector.broadcast %163 : vector<1x256xf32> to vector<4x256xf32>
    %165 = arith.mulf %162, %164 : vector<4x256xf32>
    %166 = vector.extract_strided_slice %3 {offsets = [0, 10], sizes = [4, 1], strides = [1, 1]} : vector<4x25xf32> to vector<4x1xf32>
    %167 = vector.broadcast %166 : vector<4x1xf32> to vector<4x256xf32>
    %168 = arith.mulf %167, %165 : vector<4x256xf32>
    %169 = arith.addf %161, %168 : vector<4x256xf32>
    %c2_i32 = arith.constant 2 : i32
    %170 = tpu.dynamic_rotate %82 by %c2_i32 dim 1 : vector<4x256xf32>, i32 -> vector<4x256xf32>
    %c20 = arith.constant 20 : index
    %c0_42 = arith.constant 0 : index
    %171 = vector.load %arg2[%c20, %c0_42] : memref<83x256xf32, #tpu.memory_space<vmem>>, vector<1x256xf32>
    %172 = vector.broadcast %171 : vector<1x256xf32> to vector<4x256xf32>
    %173 = arith.mulf %170, %172 : vector<4x256xf32>
    %174 = vector.extract_strided_slice %3 {offsets = [0, 11], sizes = [4, 1], strides = [1, 1]} : vector<4x25xf32> to vector<4x1xf32>
    %175 = vector.broadcast %174 : vector<4x1xf32> to vector<4x256xf32>
    %176 = arith.mulf %175, %173 : vector<4x256xf32>
    %177 = arith.addf %169, %176 : vector<4x256xf32>
    %178 = vector.extract_strided_slice %3 {offsets = [0, 12], sizes = [4, 1], strides = [1, 1]} : vector<4x25xf32> to vector<4x1xf32>
    %179 = vector.broadcast %178 : vector<4x1xf32> to vector<4x256xf32>
    %180 = arith.mulf %179, %82 : vector<4x256xf32>
    %181 = arith.addf %177, %180 : vector<4x256xf32>
    %c254_i32 = arith.constant 254 : i32
    %182 = tpu.dynamic_rotate %82 by %c254_i32 dim 1 : vector<4x256xf32>, i32 -> vector<4x256xf32>
    %c22 = arith.constant 22 : index
    %c0_43 = arith.constant 0 : index
    %183 = vector.load %arg2[%c22, %c0_43] : memref<83x256xf32, #tpu.memory_space<vmem>>, vector<1x256xf32>
    %184 = vector.broadcast %183 : vector<1x256xf32> to vector<4x256xf32>
    %185 = arith.mulf %182, %184 : vector<4x256xf32>
    %186 = vector.extract_strided_slice %3 {offsets = [0, 13], sizes = [4, 1], strides = [1, 1]} : vector<4x25xf32> to vector<4x1xf32>
    %187 = vector.broadcast %186 : vector<4x1xf32> to vector<4x256xf32>
    %188 = arith.mulf %187, %185 : vector<4x256xf32>
    %189 = arith.addf %181, %188 : vector<4x256xf32>
    %c252_i32 = arith.constant 252 : i32
    %190 = tpu.dynamic_rotate %82 by %c252_i32 dim 1 : vector<4x256xf32>, i32 -> vector<4x256xf32>
    %c23 = arith.constant 23 : index
    %c0_44 = arith.constant 0 : index
    %191 = vector.load %arg2[%c23, %c0_44] : memref<83x256xf32, #tpu.memory_space<vmem>>, vector<1x256xf32>
    %192 = vector.broadcast %191 : vector<1x256xf32> to vector<4x256xf32>
    %193 = arith.mulf %190, %192 : vector<4x256xf32>
    %194 = vector.extract_strided_slice %3 {offsets = [0, 14], sizes = [4, 1], strides = [1, 1]} : vector<4x25xf32> to vector<4x1xf32>
    %195 = vector.broadcast %194 : vector<4x1xf32> to vector<4x256xf32>
    %196 = arith.mulf %195, %193 : vector<4x256xf32>
    %197 = arith.addf %189, %196 : vector<4x256xf32>
    %c228_i32 = arith.constant 228 : i32
    %198 = tpu.dynamic_rotate %82 by %c228_i32 dim 1 : vector<4x256xf32>, i32 -> vector<4x256xf32>
    %c24 = arith.constant 24 : index
    %c0_45 = arith.constant 0 : index
    %199 = vector.load %arg2[%c24, %c0_45] : memref<83x256xf32, #tpu.memory_space<vmem>>, vector<1x256xf32>
    %200 = vector.broadcast %199 : vector<1x256xf32> to vector<4x256xf32>
    %201 = arith.mulf %198, %200 : vector<4x256xf32>
    %202 = vector.extract_strided_slice %3 {offsets = [0, 15], sizes = [4, 1], strides = [1, 1]} : vector<4x25xf32> to vector<4x1xf32>
    %203 = vector.broadcast %202 : vector<4x1xf32> to vector<4x256xf32>
    %204 = arith.mulf %203, %201 : vector<4x256xf32>
    %205 = arith.addf %197, %204 : vector<4x256xf32>
    %c226_i32 = arith.constant 226 : i32
    %206 = tpu.dynamic_rotate %82 by %c226_i32 dim 1 : vector<4x256xf32>, i32 -> vector<4x256xf32>
    %c25 = arith.constant 25 : index
    %c0_46 = arith.constant 0 : index
    %207 = vector.load %arg2[%c25, %c0_46] : memref<83x256xf32, #tpu.memory_space<vmem>>, vector<1x256xf32>
    %208 = vector.broadcast %207 : vector<1x256xf32> to vector<4x256xf32>
    %209 = arith.mulf %206, %208 : vector<4x256xf32>
    %210 = vector.extract_strided_slice %3 {offsets = [0, 16], sizes = [4, 1], strides = [1, 1]} : vector<4x25xf32> to vector<4x1xf32>
    %211 = vector.broadcast %210 : vector<4x1xf32> to vector<4x256xf32>
    %212 = arith.mulf %211, %209 : vector<4x256xf32>
    %213 = arith.addf %205, %212 : vector<4x256xf32>
    %c224_i32 = arith.constant 224 : i32
    %214 = tpu.dynamic_rotate %82 by %c224_i32 dim 1 : vector<4x256xf32>, i32 -> vector<4x256xf32>
    %c26 = arith.constant 26 : index
    %c0_47 = arith.constant 0 : index
    %215 = vector.load %arg2[%c26, %c0_47] : memref<83x256xf32, #tpu.memory_space<vmem>>, vector<1x256xf32>
    %216 = vector.broadcast %215 : vector<1x256xf32> to vector<4x256xf32>
    %217 = arith.mulf %214, %216 : vector<4x256xf32>
    %218 = vector.extract_strided_slice %3 {offsets = [0, 17], sizes = [4, 1], strides = [1, 1]} : vector<4x25xf32> to vector<4x1xf32>
    %219 = vector.broadcast %218 : vector<4x1xf32> to vector<4x256xf32>
    %220 = arith.mulf %219, %217 : vector<4x256xf32>
    %221 = arith.addf %213, %220 : vector<4x256xf32>
    %c222_i32 = arith.constant 222 : i32
    %222 = tpu.dynamic_rotate %82 by %c222_i32 dim 1 : vector<4x256xf32>, i32 -> vector<4x256xf32>
    %c27 = arith.constant 27 : index
    %c0_48 = arith.constant 0 : index
    %223 = vector.load %arg2[%c27, %c0_48] : memref<83x256xf32, #tpu.memory_space<vmem>>, vector<1x256xf32>
    %224 = vector.broadcast %223 : vector<1x256xf32> to vector<4x256xf32>
    %225 = arith.mulf %222, %224 : vector<4x256xf32>
    %226 = vector.extract_strided_slice %3 {offsets = [0, 18], sizes = [4, 1], strides = [1, 1]} : vector<4x25xf32> to vector<4x1xf32>
    %227 = vector.broadcast %226 : vector<4x1xf32> to vector<4x256xf32>
    %228 = arith.mulf %227, %225 : vector<4x256xf32>
    %229 = arith.addf %221, %228 : vector<4x256xf32>
    %c220_i32 = arith.constant 220 : i32
    %230 = tpu.dynamic_rotate %82 by %c220_i32 dim 1 : vector<4x256xf32>, i32 -> vector<4x256xf32>
    %c28 = arith.constant 28 : index
    %c0_49 = arith.constant 0 : index
    %231 = vector.load %arg2[%c28, %c0_49] : memref<83x256xf32, #tpu.memory_space<vmem>>, vector<1x256xf32>
    %232 = vector.broadcast %231 : vector<1x256xf32> to vector<4x256xf32>
    %233 = arith.mulf %230, %232 : vector<4x256xf32>
    %234 = vector.extract_strided_slice %3 {offsets = [0, 19], sizes = [4, 1], strides = [1, 1]} : vector<4x25xf32> to vector<4x1xf32>
    %235 = vector.broadcast %234 : vector<4x1xf32> to vector<4x256xf32>
    %236 = arith.mulf %235, %233 : vector<4x256xf32>
    %237 = arith.addf %229, %236 : vector<4x256xf32>
    %c196_i32 = arith.constant 196 : i32
    %238 = tpu.dynamic_rotate %82 by %c196_i32 dim 1 : vector<4x256xf32>, i32 -> vector<4x256xf32>
    %c29 = arith.constant 29 : index
    %c0_50 = arith.constant 0 : index
    %239 = vector.load %arg2[%c29, %c0_50] : memref<83x256xf32, #tpu.memory_space<vmem>>, vector<1x256xf32>
    %240 = vector.broadcast %239 : vector<1x256xf32> to vector<4x256xf32>
    %241 = arith.mulf %238, %240 : vector<4x256xf32>
    %242 = vector.extract_strided_slice %3 {offsets = [0, 20], sizes = [4, 1], strides = [1, 1]} : vector<4x25xf32> to vector<4x1xf32>
    %243 = vector.broadcast %242 : vector<4x1xf32> to vector<4x256xf32>
    %244 = arith.mulf %243, %241 : vector<4x256xf32>
    %245 = arith.addf %237, %244 : vector<4x256xf32>
    %c194_i32 = arith.constant 194 : i32
    %246 = tpu.dynamic_rotate %82 by %c194_i32 dim 1 : vector<4x256xf32>, i32 -> vector<4x256xf32>
    %c30 = arith.constant 30 : index
    %c0_51 = arith.constant 0 : index
    %247 = vector.load %arg2[%c30, %c0_51] : memref<83x256xf32, #tpu.memory_space<vmem>>, vector<1x256xf32>
    %248 = vector.broadcast %247 : vector<1x256xf32> to vector<4x256xf32>
    %249 = arith.mulf %246, %248 : vector<4x256xf32>
    %250 = vector.extract_strided_slice %3 {offsets = [0, 21], sizes = [4, 1], strides = [1, 1]} : vector<4x25xf32> to vector<4x1xf32>
    %251 = vector.broadcast %250 : vector<4x1xf32> to vector<4x256xf32>
    %252 = arith.mulf %251, %249 : vector<4x256xf32>
    %253 = arith.addf %245, %252 : vector<4x256xf32>
    %c192_i32 = arith.constant 192 : i32
    %254 = tpu.dynamic_rotate %82 by %c192_i32 dim 1 : vector<4x256xf32>, i32 -> vector<4x256xf32>
    %c31 = arith.constant 31 : index
    %c0_52 = arith.constant 0 : index
    %255 = vector.load %arg2[%c31, %c0_52] : memref<83x256xf32, #tpu.memory_space<vmem>>, vector<1x256xf32>
    %256 = vector.broadcast %255 : vector<1x256xf32> to vector<4x256xf32>
    %257 = arith.mulf %254, %256 : vector<4x256xf32>
    %258 = vector.extract_strided_slice %3 {offsets = [0, 22], sizes = [4, 1], strides = [1, 1]} : vector<4x25xf32> to vector<4x1xf32>
    %259 = vector.broadcast %258 : vector<4x1xf32> to vector<4x256xf32>
    %260 = arith.mulf %259, %257 : vector<4x256xf32>
    %261 = arith.addf %253, %260 : vector<4x256xf32>
    %c190_i32 = arith.constant 190 : i32
    %262 = tpu.dynamic_rotate %82 by %c190_i32 dim 1 : vector<4x256xf32>, i32 -> vector<4x256xf32>
    %c32 = arith.constant 32 : index
    %c0_53 = arith.constant 0 : index
    %263 = vector.load %arg2[%c32, %c0_53] : memref<83x256xf32, #tpu.memory_space<vmem>>, vector<1x256xf32>
    %264 = vector.broadcast %263 : vector<1x256xf32> to vector<4x256xf32>
    %265 = arith.mulf %262, %264 : vector<4x256xf32>
    %266 = vector.extract_strided_slice %3 {offsets = [0, 23], sizes = [4, 1], strides = [1, 1]} : vector<4x25xf32> to vector<4x1xf32>
    %267 = vector.broadcast %266 : vector<4x1xf32> to vector<4x256xf32>
    %268 = arith.mulf %267, %265 : vector<4x256xf32>
    %269 = arith.addf %261, %268 : vector<4x256xf32>
    %c188_i32 = arith.constant 188 : i32
    %270 = tpu.dynamic_rotate %82 by %c188_i32 dim 1 : vector<4x256xf32>, i32 -> vector<4x256xf32>
    %c33 = arith.constant 33 : index
    %c0_54 = arith.constant 0 : index
    %271 = vector.load %arg2[%c33, %c0_54] : memref<83x256xf32, #tpu.memory_space<vmem>>, vector<1x256xf32>
    %272 = vector.broadcast %271 : vector<1x256xf32> to vector<4x256xf32>
    %273 = arith.mulf %270, %272 : vector<4x256xf32>
    %274 = vector.extract_strided_slice %3 {offsets = [0, 24], sizes = [4, 1], strides = [1, 1]} : vector<4x25xf32> to vector<4x1xf32>
    %275 = vector.broadcast %274 : vector<4x1xf32> to vector<4x256xf32>
    %276 = arith.mulf %275, %273 : vector<4x256xf32>
    %277 = arith.addf %269, %276 : vector<4x256xf32>
    %278 = vector.broadcast %5 : vector<4x1xf32> to vector<4x256xf32>
    %279 = arith.addf %277, %278 : vector<4x256xf32>
    %280 = vector.extract_strided_slice %7 {offsets = [0, 0], sizes = [2, 1], strides = [1, 1]} : vector<2x4xf32> to vector<2x1xf32>
    %281 = vector.extract_strided_slice %82 {offsets = [0, 0], sizes = [1, 256], strides = [1, 1]} : vector<4x256xf32> to vector<1x256xf32>
    %282 = vector.broadcast %280 : vector<2x1xf32> to vector<2x256xf32>
    %283 = vector.broadcast %281 : vector<1x256xf32> to vector<2x256xf32>
    %284 = arith.mulf %282, %283 : vector<2x256xf32>
    %285 = vector.extract_strided_slice %9 {offsets = [0, 0], sizes = [2, 1], strides = [1, 1]} : vector<2x4xf32> to vector<2x1xf32>
    %286 = vector.extract_strided_slice %279 {offsets = [0, 0], sizes = [1, 256], strides = [1, 1]} : vector<4x256xf32> to vector<1x256xf32>
    %287 = vector.broadcast %285 : vector<2x1xf32> to vector<2x256xf32>
    %288 = vector.broadcast %286 : vector<1x256xf32> to vector<2x256xf32>
    %289 = arith.mulf %287, %288 : vector<2x256xf32>
    %290 = vector.extract_strided_slice %7 {offsets = [0, 1], sizes = [2, 1], strides = [1, 1]} : vector<2x4xf32> to vector<2x1xf32>
    %291 = vector.extract_strided_slice %82 {offsets = [1, 0], sizes = [1, 256], strides = [1, 1]} : vector<4x256xf32> to vector<1x256xf32>
    %292 = vector.broadcast %290 : vector<2x1xf32> to vector<2x256xf32>
    %293 = vector.broadcast %291 : vector<1x256xf32> to vector<2x256xf32>
    %294 = arith.mulf %292, %293 : vector<2x256xf32>
    %295 = arith.addf %284, %294 : vector<2x256xf32>
    %296 = vector.extract_strided_slice %9 {offsets = [0, 1], sizes = [2, 1], strides = [1, 1]} : vector<2x4xf32> to vector<2x1xf32>
    %297 = vector.extract_strided_slice %279 {offsets = [1, 0], sizes = [1, 256], strides = [1, 1]} : vector<4x256xf32> to vector<1x256xf32>
    %298 = vector.broadcast %296 : vector<2x1xf32> to vector<2x256xf32>
    %299 = vector.broadcast %297 : vector<1x256xf32> to vector<2x256xf32>
    %300 = arith.mulf %298, %299 : vector<2x256xf32>
    %301 = arith.addf %289, %300 : vector<2x256xf32>
    %302 = vector.extract_strided_slice %7 {offsets = [0, 2], sizes = [2, 1], strides = [1, 1]} : vector<2x4xf32> to vector<2x1xf32>
    %303 = vector.extract_strided_slice %82 {offsets = [2, 0], sizes = [1, 256], strides = [1, 1]} : vector<4x256xf32> to vector<1x256xf32>
    %304 = vector.broadcast %302 : vector<2x1xf32> to vector<2x256xf32>
    %305 = vector.broadcast %303 : vector<1x256xf32> to vector<2x256xf32>
    %306 = arith.mulf %304, %305 : vector<2x256xf32>
    %307 = arith.addf %295, %306 : vector<2x256xf32>
    %308 = vector.extract_strided_slice %9 {offsets = [0, 2], sizes = [2, 1], strides = [1, 1]} : vector<2x4xf32> to vector<2x1xf32>
    %309 = vector.extract_strided_slice %279 {offsets = [2, 0], sizes = [1, 256], strides = [1, 1]} : vector<4x256xf32> to vector<1x256xf32>
    %310 = vector.broadcast %308 : vector<2x1xf32> to vector<2x256xf32>
    %311 = vector.broadcast %309 : vector<1x256xf32> to vector<2x256xf32>
    %312 = arith.mulf %310, %311 : vector<2x256xf32>
    %313 = arith.addf %301, %312 : vector<2x256xf32>
    %314 = vector.extract_strided_slice %7 {offsets = [0, 3], sizes = [2, 1], strides = [1, 1]} : vector<2x4xf32> to vector<2x1xf32>
    %315 = vector.extract_strided_slice %82 {offsets = [3, 0], sizes = [1, 256], strides = [1, 1]} : vector<4x256xf32> to vector<1x256xf32>
    %316 = vector.broadcast %314 : vector<2x1xf32> to vector<2x256xf32>
    %317 = vector.broadcast %315 : vector<1x256xf32> to vector<2x256xf32>
    %318 = arith.mulf %316, %317 : vector<2x256xf32>
    %319 = arith.addf %307, %318 : vector<2x256xf32>
    %320 = vector.extract_strided_slice %9 {offsets = [0, 3], sizes = [2, 1], strides = [1, 1]} : vector<2x4xf32> to vector<2x1xf32>
    %321 = vector.extract_strided_slice %279 {offsets = [3, 0], sizes = [1, 256], strides = [1, 1]} : vector<4x256xf32> to vector<1x256xf32>
    %322 = vector.broadcast %320 : vector<2x1xf32> to vector<2x256xf32>
    %323 = vector.broadcast %321 : vector<1x256xf32> to vector<2x256xf32>
    %324 = arith.mulf %322, %323 : vector<2x256xf32>
    %325 = arith.addf %313, %324 : vector<2x256xf32>
    %326 = vector.broadcast %8 : vector<2x1xf32> to vector<2x256xf32>
    %327 = arith.addf %319, %326 : vector<2x256xf32>
    %328 = vector.broadcast %10 : vector<2x1xf32> to vector<2x256xf32>
    %329 = arith.addf %325, %328 : vector<2x256xf32>
    %cst = arith.constant dense<0.000000e+00> : vector<256xf32>
    %330 = vector.multi_reduction <add>, %327, %cst [0] : vector<2x256xf32> to vector<256xf32>
    %331 = vector.shape_cast %330 : vector<256xf32> to vector<1x256xf32>
    %cst_55 = arith.constant dense<0.000000e+00> : vector<256xf32>
    %332 = vector.multi_reduction <add>, %329, %cst_55 [0] : vector<2x256xf32> to vector<256xf32>
    %333 = vector.shape_cast %332 : vector<256xf32> to vector<1x256xf32>
    %334 = arith.addf %331, %333 : vector<1x256xf32>
    %cst_56 = arith.constant 2.500000e-01 : f32
    %335 = vector.broadcast %cst_56 : f32 to vector<1x256xf32>
    %336 = arith.mulf %334, %335 : vector<1x256xf32>
    %cst_57 = arith.constant dense<0xFF800000> : vector<256xf32>
    %337 = vector.multi_reduction <maximumf>, %327, %cst_57 [0] : vector<2x256xf32> to vector<256xf32>
    %338 = vector.shape_cast %337 : vector<256xf32> to vector<1x256xf32>
    %cst_58 = arith.constant dense<0xFF800000> : vector<256xf32>
    %339 = vector.multi_reduction <maximumf>, %329, %cst_58 [0] : vector<2x256xf32> to vector<256xf32>
    %340 = vector.shape_cast %339 : vector<256xf32> to vector<1x256xf32>
    %341 = arith.maximumf %338, %340 : vector<1x256xf32>
    %342 = tpu.concatenate %336, %341, %336, %341 in 0 : vector<1x256xf32>, vector<1x256xf32>, vector<1x256xf32>, vector<1x256xf32> -> vector<4x256xf32>
    %c51_i32 = arith.constant 51 : i32
    %343 = tpu.dynamic_rotate %342 by %c51_i32 dim 1 : vector<4x256xf32>, i32 -> vector<4x256xf32>
    %c34_59 = arith.constant 34 : index
    %c0_60 = arith.constant 0 : index
    %344 = vector.load %arg2[%c34_59, %c0_60] : memref<83x256xf32, #tpu.memory_space<vmem>>, vector<1x256xf32>
    %345 = vector.broadcast %344 : vector<1x256xf32> to vector<4x256xf32>
    %346 = arith.mulf %343, %345 : vector<4x256xf32>
    %347 = vector.extract_strided_slice %13 {offsets = [0, 0], sizes = [4, 1], strides = [1, 1]} : vector<4x49xf32> to vector<4x1xf32>
    %348 = vector.broadcast %347 : vector<4x1xf32> to vector<4x256xf32>
    %349 = arith.mulf %348, %346 : vector<4x256xf32>
    %c50_i32 = arith.constant 50 : i32
    %350 = tpu.dynamic_rotate %342 by %c50_i32 dim 1 : vector<4x256xf32>, i32 -> vector<4x256xf32>
    %c35_61 = arith.constant 35 : index
    %c0_62 = arith.constant 0 : index
    %351 = vector.load %arg2[%c35_61, %c0_62] : memref<83x256xf32, #tpu.memory_space<vmem>>, vector<1x256xf32>
    %352 = vector.broadcast %351 : vector<1x256xf32> to vector<4x256xf32>
    %353 = arith.mulf %350, %352 : vector<4x256xf32>
    %354 = vector.extract_strided_slice %13 {offsets = [0, 1], sizes = [4, 1], strides = [1, 1]} : vector<4x49xf32> to vector<4x1xf32>
    %355 = vector.broadcast %354 : vector<4x1xf32> to vector<4x256xf32>
    %356 = arith.mulf %355, %353 : vector<4x256xf32>
    %357 = arith.addf %349, %356 : vector<4x256xf32>
    %c49_i32 = arith.constant 49 : i32
    %358 = tpu.dynamic_rotate %342 by %c49_i32 dim 1 : vector<4x256xf32>, i32 -> vector<4x256xf32>
    %c36_63 = arith.constant 36 : index
    %c0_64 = arith.constant 0 : index
    %359 = vector.load %arg2[%c36_63, %c0_64] : memref<83x256xf32, #tpu.memory_space<vmem>>, vector<1x256xf32>
    %360 = vector.broadcast %359 : vector<1x256xf32> to vector<4x256xf32>
    %361 = arith.mulf %358, %360 : vector<4x256xf32>
    %362 = vector.extract_strided_slice %13 {offsets = [0, 2], sizes = [4, 1], strides = [1, 1]} : vector<4x49xf32> to vector<4x1xf32>
    %363 = vector.broadcast %362 : vector<4x1xf32> to vector<4x256xf32>
    %364 = arith.mulf %363, %361 : vector<4x256xf32>
    %365 = arith.addf %357, %364 : vector<4x256xf32>
    %c48_i32 = arith.constant 48 : i32
    %366 = tpu.dynamic_rotate %342 by %c48_i32 dim 1 : vector<4x256xf32>, i32 -> vector<4x256xf32>
    %c37 = arith.constant 37 : index
    %c0_65 = arith.constant 0 : index
    %367 = vector.load %arg2[%c37, %c0_65] : memref<83x256xf32, #tpu.memory_space<vmem>>, vector<1x256xf32>
    %368 = vector.broadcast %367 : vector<1x256xf32> to vector<4x256xf32>
    %369 = arith.mulf %366, %368 : vector<4x256xf32>
    %370 = vector.extract_strided_slice %13 {offsets = [0, 3], sizes = [4, 1], strides = [1, 1]} : vector<4x49xf32> to vector<4x1xf32>
    %371 = vector.broadcast %370 : vector<4x1xf32> to vector<4x256xf32>
    %372 = arith.mulf %371, %369 : vector<4x256xf32>
    %373 = arith.addf %365, %372 : vector<4x256xf32>
    %c47_i32 = arith.constant 47 : i32
    %374 = tpu.dynamic_rotate %342 by %c47_i32 dim 1 : vector<4x256xf32>, i32 -> vector<4x256xf32>
    %c38 = arith.constant 38 : index
    %c0_66 = arith.constant 0 : index
    %375 = vector.load %arg2[%c38, %c0_66] : memref<83x256xf32, #tpu.memory_space<vmem>>, vector<1x256xf32>
    %376 = vector.broadcast %375 : vector<1x256xf32> to vector<4x256xf32>
    %377 = arith.mulf %374, %376 : vector<4x256xf32>
    %378 = vector.extract_strided_slice %13 {offsets = [0, 4], sizes = [4, 1], strides = [1, 1]} : vector<4x49xf32> to vector<4x1xf32>
    %379 = vector.broadcast %378 : vector<4x1xf32> to vector<4x256xf32>
    %380 = arith.mulf %379, %377 : vector<4x256xf32>
    %381 = arith.addf %373, %380 : vector<4x256xf32>
    %c46_i32 = arith.constant 46 : i32
    %382 = tpu.dynamic_rotate %342 by %c46_i32 dim 1 : vector<4x256xf32>, i32 -> vector<4x256xf32>
    %c39 = arith.constant 39 : index
    %c0_67 = arith.constant 0 : index
    %383 = vector.load %arg2[%c39, %c0_67] : memref<83x256xf32, #tpu.memory_space<vmem>>, vector<1x256xf32>
    %384 = vector.broadcast %383 : vector<1x256xf32> to vector<4x256xf32>
    %385 = arith.mulf %382, %384 : vector<4x256xf32>
    %386 = vector.extract_strided_slice %13 {offsets = [0, 5], sizes = [4, 1], strides = [1, 1]} : vector<4x49xf32> to vector<4x1xf32>
    %387 = vector.broadcast %386 : vector<4x1xf32> to vector<4x256xf32>
    %388 = arith.mulf %387, %385 : vector<4x256xf32>
    %389 = arith.addf %381, %388 : vector<4x256xf32>
    %c45_i32 = arith.constant 45 : i32
    %390 = tpu.dynamic_rotate %342 by %c45_i32 dim 1 : vector<4x256xf32>, i32 -> vector<4x256xf32>
    %c40 = arith.constant 40 : index
    %c0_68 = arith.constant 0 : index
    %391 = vector.load %arg2[%c40, %c0_68] : memref<83x256xf32, #tpu.memory_space<vmem>>, vector<1x256xf32>
    %392 = vector.broadcast %391 : vector<1x256xf32> to vector<4x256xf32>
    %393 = arith.mulf %390, %392 : vector<4x256xf32>
    %394 = vector.extract_strided_slice %13 {offsets = [0, 6], sizes = [4, 1], strides = [1, 1]} : vector<4x49xf32> to vector<4x1xf32>
    %395 = vector.broadcast %394 : vector<4x1xf32> to vector<4x256xf32>
    %396 = arith.mulf %395, %393 : vector<4x256xf32>
    %397 = arith.addf %389, %396 : vector<4x256xf32>
    %c35_i32 = arith.constant 35 : i32
    %398 = tpu.dynamic_rotate %342 by %c35_i32 dim 1 : vector<4x256xf32>, i32 -> vector<4x256xf32>
    %c41 = arith.constant 41 : index
    %c0_69 = arith.constant 0 : index
    %399 = vector.load %arg2[%c41, %c0_69] : memref<83x256xf32, #tpu.memory_space<vmem>>, vector<1x256xf32>
    %400 = vector.broadcast %399 : vector<1x256xf32> to vector<4x256xf32>
    %401 = arith.mulf %398, %400 : vector<4x256xf32>
    %402 = vector.extract_strided_slice %13 {offsets = [0, 7], sizes = [4, 1], strides = [1, 1]} : vector<4x49xf32> to vector<4x1xf32>
    %403 = vector.broadcast %402 : vector<4x1xf32> to vector<4x256xf32>
    %404 = arith.mulf %403, %401 : vector<4x256xf32>
    %405 = arith.addf %397, %404 : vector<4x256xf32>
    %c34_i32_70 = arith.constant 34 : i32
    %406 = tpu.dynamic_rotate %342 by %c34_i32_70 dim 1 : vector<4x256xf32>, i32 -> vector<4x256xf32>
    %c42 = arith.constant 42 : index
    %c0_71 = arith.constant 0 : index
    %407 = vector.load %arg2[%c42, %c0_71] : memref<83x256xf32, #tpu.memory_space<vmem>>, vector<1x256xf32>
    %408 = vector.broadcast %407 : vector<1x256xf32> to vector<4x256xf32>
    %409 = arith.mulf %406, %408 : vector<4x256xf32>
    %410 = vector.extract_strided_slice %13 {offsets = [0, 8], sizes = [4, 1], strides = [1, 1]} : vector<4x49xf32> to vector<4x1xf32>
    %411 = vector.broadcast %410 : vector<4x1xf32> to vector<4x256xf32>
    %412 = arith.mulf %411, %409 : vector<4x256xf32>
    %413 = arith.addf %405, %412 : vector<4x256xf32>
    %c33_i32 = arith.constant 33 : i32
    %414 = tpu.dynamic_rotate %342 by %c33_i32 dim 1 : vector<4x256xf32>, i32 -> vector<4x256xf32>
    %c43 = arith.constant 43 : index
    %c0_72 = arith.constant 0 : index
    %415 = vector.load %arg2[%c43, %c0_72] : memref<83x256xf32, #tpu.memory_space<vmem>>, vector<1x256xf32>
    %416 = vector.broadcast %415 : vector<1x256xf32> to vector<4x256xf32>
    %417 = arith.mulf %414, %416 : vector<4x256xf32>
    %418 = vector.extract_strided_slice %13 {offsets = [0, 9], sizes = [4, 1], strides = [1, 1]} : vector<4x49xf32> to vector<4x1xf32>
    %419 = vector.broadcast %418 : vector<4x1xf32> to vector<4x256xf32>
    %420 = arith.mulf %419, %417 : vector<4x256xf32>
    %421 = arith.addf %413, %420 : vector<4x256xf32>
    %c32_i32_73 = arith.constant 32 : i32
    %422 = tpu.dynamic_rotate %342 by %c32_i32_73 dim 1 : vector<4x256xf32>, i32 -> vector<4x256xf32>
    %c44 = arith.constant 44 : index
    %c0_74 = arith.constant 0 : index
    %423 = vector.load %arg2[%c44, %c0_74] : memref<83x256xf32, #tpu.memory_space<vmem>>, vector<1x256xf32>
    %424 = vector.broadcast %423 : vector<1x256xf32> to vector<4x256xf32>
    %425 = arith.mulf %422, %424 : vector<4x256xf32>
    %426 = vector.extract_strided_slice %13 {offsets = [0, 10], sizes = [4, 1], strides = [1, 1]} : vector<4x49xf32> to vector<4x1xf32>
    %427 = vector.broadcast %426 : vector<4x1xf32> to vector<4x256xf32>
    %428 = arith.mulf %427, %425 : vector<4x256xf32>
    %429 = arith.addf %421, %428 : vector<4x256xf32>
    %c31_i32 = arith.constant 31 : i32
    %430 = tpu.dynamic_rotate %342 by %c31_i32 dim 1 : vector<4x256xf32>, i32 -> vector<4x256xf32>
    %c45 = arith.constant 45 : index
    %c0_75 = arith.constant 0 : index
    %431 = vector.load %arg2[%c45, %c0_75] : memref<83x256xf32, #tpu.memory_space<vmem>>, vector<1x256xf32>
    %432 = vector.broadcast %431 : vector<1x256xf32> to vector<4x256xf32>
    %433 = arith.mulf %430, %432 : vector<4x256xf32>
    %434 = vector.extract_strided_slice %13 {offsets = [0, 11], sizes = [4, 1], strides = [1, 1]} : vector<4x49xf32> to vector<4x1xf32>
    %435 = vector.broadcast %434 : vector<4x1xf32> to vector<4x256xf32>
    %436 = arith.mulf %435, %433 : vector<4x256xf32>
    %437 = arith.addf %429, %436 : vector<4x256xf32>
    %c30_i32_76 = arith.constant 30 : i32
    %438 = tpu.dynamic_rotate %342 by %c30_i32_76 dim 1 : vector<4x256xf32>, i32 -> vector<4x256xf32>
    %c46 = arith.constant 46 : index
    %c0_77 = arith.constant 0 : index
    %439 = vector.load %arg2[%c46, %c0_77] : memref<83x256xf32, #tpu.memory_space<vmem>>, vector<1x256xf32>
    %440 = vector.broadcast %439 : vector<1x256xf32> to vector<4x256xf32>
    %441 = arith.mulf %438, %440 : vector<4x256xf32>
    %442 = vector.extract_strided_slice %13 {offsets = [0, 12], sizes = [4, 1], strides = [1, 1]} : vector<4x49xf32> to vector<4x1xf32>
    %443 = vector.broadcast %442 : vector<4x1xf32> to vector<4x256xf32>
    %444 = arith.mulf %443, %441 : vector<4x256xf32>
    %445 = arith.addf %437, %444 : vector<4x256xf32>
    %c29_i32 = arith.constant 29 : i32
    %446 = tpu.dynamic_rotate %342 by %c29_i32 dim 1 : vector<4x256xf32>, i32 -> vector<4x256xf32>
    %c47 = arith.constant 47 : index
    %c0_78 = arith.constant 0 : index
    %447 = vector.load %arg2[%c47, %c0_78] : memref<83x256xf32, #tpu.memory_space<vmem>>, vector<1x256xf32>
    %448 = vector.broadcast %447 : vector<1x256xf32> to vector<4x256xf32>
    %449 = arith.mulf %446, %448 : vector<4x256xf32>
    %450 = vector.extract_strided_slice %13 {offsets = [0, 13], sizes = [4, 1], strides = [1, 1]} : vector<4x49xf32> to vector<4x1xf32>
    %451 = vector.broadcast %450 : vector<4x1xf32> to vector<4x256xf32>
    %452 = arith.mulf %451, %449 : vector<4x256xf32>
    %453 = arith.addf %445, %452 : vector<4x256xf32>
    %c19_i32 = arith.constant 19 : i32
    %454 = tpu.dynamic_rotate %342 by %c19_i32 dim 1 : vector<4x256xf32>, i32 -> vector<4x256xf32>
    %c48 = arith.constant 48 : index
    %c0_79 = arith.constant 0 : index
    %455 = vector.load %arg2[%c48, %c0_79] : memref<83x256xf32, #tpu.memory_space<vmem>>, vector<1x256xf32>
    %456 = vector.broadcast %455 : vector<1x256xf32> to vector<4x256xf32>
    %457 = arith.mulf %454, %456 : vector<4x256xf32>
    %458 = vector.extract_strided_slice %13 {offsets = [0, 14], sizes = [4, 1], strides = [1, 1]} : vector<4x49xf32> to vector<4x1xf32>
    %459 = vector.broadcast %458 : vector<4x1xf32> to vector<4x256xf32>
    %460 = arith.mulf %459, %457 : vector<4x256xf32>
    %461 = arith.addf %453, %460 : vector<4x256xf32>
    %c18_i32 = arith.constant 18 : i32
    %462 = tpu.dynamic_rotate %342 by %c18_i32 dim 1 : vector<4x256xf32>, i32 -> vector<4x256xf32>
    %c49 = arith.constant 49 : index
    %c0_80 = arith.constant 0 : index
    %463 = vector.load %arg2[%c49, %c0_80] : memref<83x256xf32, #tpu.memory_space<vmem>>, vector<1x256xf32>
    %464 = vector.broadcast %463 : vector<1x256xf32> to vector<4x256xf32>
    %465 = arith.mulf %462, %464 : vector<4x256xf32>
    %466 = vector.extract_strided_slice %13 {offsets = [0, 15], sizes = [4, 1], strides = [1, 1]} : vector<4x49xf32> to vector<4x1xf32>
    %467 = vector.broadcast %466 : vector<4x1xf32> to vector<4x256xf32>
    %468 = arith.mulf %467, %465 : vector<4x256xf32>
    %469 = arith.addf %461, %468 : vector<4x256xf32>
    %c17_i32_81 = arith.constant 17 : i32
    %470 = tpu.dynamic_rotate %342 by %c17_i32_81 dim 1 : vector<4x256xf32>, i32 -> vector<4x256xf32>
    %c50 = arith.constant 50 : index
    %c0_82 = arith.constant 0 : index
    %471 = vector.load %arg2[%c50, %c0_82] : memref<83x256xf32, #tpu.memory_space<vmem>>, vector<1x256xf32>
    %472 = vector.broadcast %471 : vector<1x256xf32> to vector<4x256xf32>
    %473 = arith.mulf %470, %472 : vector<4x256xf32>
    %474 = vector.extract_strided_slice %13 {offsets = [0, 16], sizes = [4, 1], strides = [1, 1]} : vector<4x49xf32> to vector<4x1xf32>
    %475 = vector.broadcast %474 : vector<4x1xf32> to vector<4x256xf32>
    %476 = arith.mulf %475, %473 : vector<4x256xf32>
    %477 = arith.addf %469, %476 : vector<4x256xf32>
    %c16_i32_83 = arith.constant 16 : i32
    %478 = tpu.dynamic_rotate %342 by %c16_i32_83 dim 1 : vector<4x256xf32>, i32 -> vector<4x256xf32>
    %c51 = arith.constant 51 : index
    %c0_84 = arith.constant 0 : index
    %479 = vector.load %arg2[%c51, %c0_84] : memref<83x256xf32, #tpu.memory_space<vmem>>, vector<1x256xf32>
    %480 = vector.broadcast %479 : vector<1x256xf32> to vector<4x256xf32>
    %481 = arith.mulf %478, %480 : vector<4x256xf32>
    %482 = vector.extract_strided_slice %13 {offsets = [0, 17], sizes = [4, 1], strides = [1, 1]} : vector<4x49xf32> to vector<4x1xf32>
    %483 = vector.broadcast %482 : vector<4x1xf32> to vector<4x256xf32>
    %484 = arith.mulf %483, %481 : vector<4x256xf32>
    %485 = arith.addf %477, %484 : vector<4x256xf32>
    %c15_i32_85 = arith.constant 15 : i32
    %486 = tpu.dynamic_rotate %342 by %c15_i32_85 dim 1 : vector<4x256xf32>, i32 -> vector<4x256xf32>
    %c52 = arith.constant 52 : index
    %c0_86 = arith.constant 0 : index
    %487 = vector.load %arg2[%c52, %c0_86] : memref<83x256xf32, #tpu.memory_space<vmem>>, vector<1x256xf32>
    %488 = vector.broadcast %487 : vector<1x256xf32> to vector<4x256xf32>
    %489 = arith.mulf %486, %488 : vector<4x256xf32>
    %490 = vector.extract_strided_slice %13 {offsets = [0, 18], sizes = [4, 1], strides = [1, 1]} : vector<4x49xf32> to vector<4x1xf32>
    %491 = vector.broadcast %490 : vector<4x1xf32> to vector<4x256xf32>
    %492 = arith.mulf %491, %489 : vector<4x256xf32>
    %493 = arith.addf %485, %492 : vector<4x256xf32>
    %c14_i32 = arith.constant 14 : i32
    %494 = tpu.dynamic_rotate %342 by %c14_i32 dim 1 : vector<4x256xf32>, i32 -> vector<4x256xf32>
    %c53 = arith.constant 53 : index
    %c0_87 = arith.constant 0 : index
    %495 = vector.load %arg2[%c53, %c0_87] : memref<83x256xf32, #tpu.memory_space<vmem>>, vector<1x256xf32>
    %496 = vector.broadcast %495 : vector<1x256xf32> to vector<4x256xf32>
    %497 = arith.mulf %494, %496 : vector<4x256xf32>
    %498 = vector.extract_strided_slice %13 {offsets = [0, 19], sizes = [4, 1], strides = [1, 1]} : vector<4x49xf32> to vector<4x1xf32>
    %499 = vector.broadcast %498 : vector<4x1xf32> to vector<4x256xf32>
    %500 = arith.mulf %499, %497 : vector<4x256xf32>
    %501 = arith.addf %493, %500 : vector<4x256xf32>
    %c13_i32 = arith.constant 13 : i32
    %502 = tpu.dynamic_rotate %342 by %c13_i32 dim 1 : vector<4x256xf32>, i32 -> vector<4x256xf32>
    %c54 = arith.constant 54 : index
    %c0_88 = arith.constant 0 : index
    %503 = vector.load %arg2[%c54, %c0_88] : memref<83x256xf32, #tpu.memory_space<vmem>>, vector<1x256xf32>
    %504 = vector.broadcast %503 : vector<1x256xf32> to vector<4x256xf32>
    %505 = arith.mulf %502, %504 : vector<4x256xf32>
    %506 = vector.extract_strided_slice %13 {offsets = [0, 20], sizes = [4, 1], strides = [1, 1]} : vector<4x49xf32> to vector<4x1xf32>
    %507 = vector.broadcast %506 : vector<4x1xf32> to vector<4x256xf32>
    %508 = arith.mulf %507, %505 : vector<4x256xf32>
    %509 = arith.addf %501, %508 : vector<4x256xf32>
    %c3_i32 = arith.constant 3 : i32
    %510 = tpu.dynamic_rotate %342 by %c3_i32 dim 1 : vector<4x256xf32>, i32 -> vector<4x256xf32>
    %c55 = arith.constant 55 : index
    %c0_89 = arith.constant 0 : index
    %511 = vector.load %arg2[%c55, %c0_89] : memref<83x256xf32, #tpu.memory_space<vmem>>, vector<1x256xf32>
    %512 = vector.broadcast %511 : vector<1x256xf32> to vector<4x256xf32>
    %513 = arith.mulf %510, %512 : vector<4x256xf32>
    %514 = vector.extract_strided_slice %13 {offsets = [0, 21], sizes = [4, 1], strides = [1, 1]} : vector<4x49xf32> to vector<4x1xf32>
    %515 = vector.broadcast %514 : vector<4x1xf32> to vector<4x256xf32>
    %516 = arith.mulf %515, %513 : vector<4x256xf32>
    %517 = arith.addf %509, %516 : vector<4x256xf32>
    %c2_i32_90 = arith.constant 2 : i32
    %518 = tpu.dynamic_rotate %342 by %c2_i32_90 dim 1 : vector<4x256xf32>, i32 -> vector<4x256xf32>
    %c56 = arith.constant 56 : index
    %c0_91 = arith.constant 0 : index
    %519 = vector.load %arg2[%c56, %c0_91] : memref<83x256xf32, #tpu.memory_space<vmem>>, vector<1x256xf32>
    %520 = vector.broadcast %519 : vector<1x256xf32> to vector<4x256xf32>
    %521 = arith.mulf %518, %520 : vector<4x256xf32>
    %522 = vector.extract_strided_slice %13 {offsets = [0, 22], sizes = [4, 1], strides = [1, 1]} : vector<4x49xf32> to vector<4x1xf32>
    %523 = vector.broadcast %522 : vector<4x1xf32> to vector<4x256xf32>
    %524 = arith.mulf %523, %521 : vector<4x256xf32>
    %525 = arith.addf %517, %524 : vector<4x256xf32>
    %c1_i32_92 = arith.constant 1 : i32
    %526 = tpu.dynamic_rotate %342 by %c1_i32_92 dim 1 : vector<4x256xf32>, i32 -> vector<4x256xf32>
    %c57 = arith.constant 57 : index
    %c0_93 = arith.constant 0 : index
    %527 = vector.load %arg2[%c57, %c0_93] : memref<83x256xf32, #tpu.memory_space<vmem>>, vector<1x256xf32>
    %528 = vector.broadcast %527 : vector<1x256xf32> to vector<4x256xf32>
    %529 = arith.mulf %526, %528 : vector<4x256xf32>
    %530 = vector.extract_strided_slice %13 {offsets = [0, 23], sizes = [4, 1], strides = [1, 1]} : vector<4x49xf32> to vector<4x1xf32>
    %531 = vector.broadcast %530 : vector<4x1xf32> to vector<4x256xf32>
    %532 = arith.mulf %531, %529 : vector<4x256xf32>
    %533 = arith.addf %525, %532 : vector<4x256xf32>
    %534 = vector.extract_strided_slice %13 {offsets = [0, 24], sizes = [4, 1], strides = [1, 1]} : vector<4x49xf32> to vector<4x1xf32>
    %535 = vector.broadcast %534 : vector<4x1xf32> to vector<4x256xf32>
    %536 = arith.mulf %535, %342 : vector<4x256xf32>
    %537 = arith.addf %533, %536 : vector<4x256xf32>
    %c255_i32_94 = arith.constant 255 : i32
    %538 = tpu.dynamic_rotate %342 by %c255_i32_94 dim 1 : vector<4x256xf32>, i32 -> vector<4x256xf32>
    %c59 = arith.constant 59 : index
    %c0_95 = arith.constant 0 : index
    %539 = vector.load %arg2[%c59, %c0_95] : memref<83x256xf32, #tpu.memory_space<vmem>>, vector<1x256xf32>
    %540 = vector.broadcast %539 : vector<1x256xf32> to vector<4x256xf32>
    %541 = arith.mulf %538, %540 : vector<4x256xf32>
    %542 = vector.extract_strided_slice %13 {offsets = [0, 25], sizes = [4, 1], strides = [1, 1]} : vector<4x49xf32> to vector<4x1xf32>
    %543 = vector.broadcast %542 : vector<4x1xf32> to vector<4x256xf32>
    %544 = arith.mulf %543, %541 : vector<4x256xf32>
    %545 = arith.addf %537, %544 : vector<4x256xf32>
    %c254_i32_96 = arith.constant 254 : i32
    %546 = tpu.dynamic_rotate %342 by %c254_i32_96 dim 1 : vector<4x256xf32>, i32 -> vector<4x256xf32>
    %c60 = arith.constant 60 : index
    %c0_97 = arith.constant 0 : index
    %547 = vector.load %arg2[%c60, %c0_97] : memref<83x256xf32, #tpu.memory_space<vmem>>, vector<1x256xf32>
    %548 = vector.broadcast %547 : vector<1x256xf32> to vector<4x256xf32>
    %549 = arith.mulf %546, %548 : vector<4x256xf32>
    %550 = vector.extract_strided_slice %13 {offsets = [0, 26], sizes = [4, 1], strides = [1, 1]} : vector<4x49xf32> to vector<4x1xf32>
    %551 = vector.broadcast %550 : vector<4x1xf32> to vector<4x256xf32>
    %552 = arith.mulf %551, %549 : vector<4x256xf32>
    %553 = arith.addf %545, %552 : vector<4x256xf32>
    %c253_i32 = arith.constant 253 : i32
    %554 = tpu.dynamic_rotate %342 by %c253_i32 dim 1 : vector<4x256xf32>, i32 -> vector<4x256xf32>
    %c61 = arith.constant 61 : index
    %c0_98 = arith.constant 0 : index
    %555 = vector.load %arg2[%c61, %c0_98] : memref<83x256xf32, #tpu.memory_space<vmem>>, vector<1x256xf32>
    %556 = vector.broadcast %555 : vector<1x256xf32> to vector<4x256xf32>
    %557 = arith.mulf %554, %556 : vector<4x256xf32>
    %558 = vector.extract_strided_slice %13 {offsets = [0, 27], sizes = [4, 1], strides = [1, 1]} : vector<4x49xf32> to vector<4x1xf32>
    %559 = vector.broadcast %558 : vector<4x1xf32> to vector<4x256xf32>
    %560 = arith.mulf %559, %557 : vector<4x256xf32>
    %561 = arith.addf %553, %560 : vector<4x256xf32>
    %c243_i32 = arith.constant 243 : i32
    %562 = tpu.dynamic_rotate %342 by %c243_i32 dim 1 : vector<4x256xf32>, i32 -> vector<4x256xf32>
    %c62 = arith.constant 62 : index
    %c0_99 = arith.constant 0 : index
    %563 = vector.load %arg2[%c62, %c0_99] : memref<83x256xf32, #tpu.memory_space<vmem>>, vector<1x256xf32>
    %564 = vector.broadcast %563 : vector<1x256xf32> to vector<4x256xf32>
    %565 = arith.mulf %562, %564 : vector<4x256xf32>
    %566 = vector.extract_strided_slice %13 {offsets = [0, 28], sizes = [4, 1], strides = [1, 1]} : vector<4x49xf32> to vector<4x1xf32>
    %567 = vector.broadcast %566 : vector<4x1xf32> to vector<4x256xf32>
    %568 = arith.mulf %567, %565 : vector<4x256xf32>
    %569 = arith.addf %561, %568 : vector<4x256xf32>
    %c242_i32 = arith.constant 242 : i32
    %570 = tpu.dynamic_rotate %342 by %c242_i32 dim 1 : vector<4x256xf32>, i32 -> vector<4x256xf32>
    %c63 = arith.constant 63 : index
    %c0_100 = arith.constant 0 : index
    %571 = vector.load %arg2[%c63, %c0_100] : memref<83x256xf32, #tpu.memory_space<vmem>>, vector<1x256xf32>
    %572 = vector.broadcast %571 : vector<1x256xf32> to vector<4x256xf32>
    %573 = arith.mulf %570, %572 : vector<4x256xf32>
    %574 = vector.extract_strided_slice %13 {offsets = [0, 29], sizes = [4, 1], strides = [1, 1]} : vector<4x49xf32> to vector<4x1xf32>
    %575 = vector.broadcast %574 : vector<4x1xf32> to vector<4x256xf32>
    %576 = arith.mulf %575, %573 : vector<4x256xf32>
    %577 = arith.addf %569, %576 : vector<4x256xf32>
    %c241_i32_101 = arith.constant 241 : i32
    %578 = tpu.dynamic_rotate %342 by %c241_i32_101 dim 1 : vector<4x256xf32>, i32 -> vector<4x256xf32>
    %c64 = arith.constant 64 : index
    %c0_102 = arith.constant 0 : index
    %579 = vector.load %arg2[%c64, %c0_102] : memref<83x256xf32, #tpu.memory_space<vmem>>, vector<1x256xf32>
    %580 = vector.broadcast %579 : vector<1x256xf32> to vector<4x256xf32>
    %581 = arith.mulf %578, %580 : vector<4x256xf32>
    %582 = vector.extract_strided_slice %13 {offsets = [0, 30], sizes = [4, 1], strides = [1, 1]} : vector<4x49xf32> to vector<4x1xf32>
    %583 = vector.broadcast %582 : vector<4x1xf32> to vector<4x256xf32>
    %584 = arith.mulf %583, %581 : vector<4x256xf32>
    %585 = arith.addf %577, %584 : vector<4x256xf32>
    %c240_i32_103 = arith.constant 240 : i32
    %586 = tpu.dynamic_rotate %342 by %c240_i32_103 dim 1 : vector<4x256xf32>, i32 -> vector<4x256xf32>
    %c65 = arith.constant 65 : index
    %c0_104 = arith.constant 0 : index
    %587 = vector.load %arg2[%c65, %c0_104] : memref<83x256xf32, #tpu.memory_space<vmem>>, vector<1x256xf32>
    %588 = vector.broadcast %587 : vector<1x256xf32> to vector<4x256xf32>
    %589 = arith.mulf %586, %588 : vector<4x256xf32>
    %590 = vector.extract_strided_slice %13 {offsets = [0, 31], sizes = [4, 1], strides = [1, 1]} : vector<4x49xf32> to vector<4x1xf32>
    %591 = vector.broadcast %590 : vector<4x1xf32> to vector<4x256xf32>
    %592 = arith.mulf %591, %589 : vector<4x256xf32>
    %593 = arith.addf %585, %592 : vector<4x256xf32>
    %c239_i32_105 = arith.constant 239 : i32
    %594 = tpu.dynamic_rotate %342 by %c239_i32_105 dim 1 : vector<4x256xf32>, i32 -> vector<4x256xf32>
    %c66 = arith.constant 66 : index
    %c0_106 = arith.constant 0 : index
    %595 = vector.load %arg2[%c66, %c0_106] : memref<83x256xf32, #tpu.memory_space<vmem>>, vector<1x256xf32>
    %596 = vector.broadcast %595 : vector<1x256xf32> to vector<4x256xf32>
    %597 = arith.mulf %594, %596 : vector<4x256xf32>
    %598 = vector.extract_strided_slice %13 {offsets = [0, 32], sizes = [4, 1], strides = [1, 1]} : vector<4x49xf32> to vector<4x1xf32>
    %599 = vector.broadcast %598 : vector<4x1xf32> to vector<4x256xf32>
    %600 = arith.mulf %599, %597 : vector<4x256xf32>
    %601 = arith.addf %593, %600 : vector<4x256xf32>
    %c238_i32 = arith.constant 238 : i32
    %602 = tpu.dynamic_rotate %342 by %c238_i32 dim 1 : vector<4x256xf32>, i32 -> vector<4x256xf32>
    %c67 = arith.constant 67 : index
    %c0_107 = arith.constant 0 : index
    %603 = vector.load %arg2[%c67, %c0_107] : memref<83x256xf32, #tpu.memory_space<vmem>>, vector<1x256xf32>
    %604 = vector.broadcast %603 : vector<1x256xf32> to vector<4x256xf32>
    %605 = arith.mulf %602, %604 : vector<4x256xf32>
    %606 = vector.extract_strided_slice %13 {offsets = [0, 33], sizes = [4, 1], strides = [1, 1]} : vector<4x49xf32> to vector<4x1xf32>
    %607 = vector.broadcast %606 : vector<4x1xf32> to vector<4x256xf32>
    %608 = arith.mulf %607, %605 : vector<4x256xf32>
    %609 = arith.addf %601, %608 : vector<4x256xf32>
    %c237_i32 = arith.constant 237 : i32
    %610 = tpu.dynamic_rotate %342 by %c237_i32 dim 1 : vector<4x256xf32>, i32 -> vector<4x256xf32>
    %c68 = arith.constant 68 : index
    %c0_108 = arith.constant 0 : index
    %611 = vector.load %arg2[%c68, %c0_108] : memref<83x256xf32, #tpu.memory_space<vmem>>, vector<1x256xf32>
    %612 = vector.broadcast %611 : vector<1x256xf32> to vector<4x256xf32>
    %613 = arith.mulf %610, %612 : vector<4x256xf32>
    %614 = vector.extract_strided_slice %13 {offsets = [0, 34], sizes = [4, 1], strides = [1, 1]} : vector<4x49xf32> to vector<4x1xf32>
    %615 = vector.broadcast %614 : vector<4x1xf32> to vector<4x256xf32>
    %616 = arith.mulf %615, %613 : vector<4x256xf32>
    %617 = arith.addf %609, %616 : vector<4x256xf32>
    %c227_i32 = arith.constant 227 : i32
    %618 = tpu.dynamic_rotate %342 by %c227_i32 dim 1 : vector<4x256xf32>, i32 -> vector<4x256xf32>
    %c69 = arith.constant 69 : index
    %c0_109 = arith.constant 0 : index
    %619 = vector.load %arg2[%c69, %c0_109] : memref<83x256xf32, #tpu.memory_space<vmem>>, vector<1x256xf32>
    %620 = vector.broadcast %619 : vector<1x256xf32> to vector<4x256xf32>
    %621 = arith.mulf %618, %620 : vector<4x256xf32>
    %622 = vector.extract_strided_slice %13 {offsets = [0, 35], sizes = [4, 1], strides = [1, 1]} : vector<4x49xf32> to vector<4x1xf32>
    %623 = vector.broadcast %622 : vector<4x1xf32> to vector<4x256xf32>
    %624 = arith.mulf %623, %621 : vector<4x256xf32>
    %625 = arith.addf %617, %624 : vector<4x256xf32>
    %c226_i32_110 = arith.constant 226 : i32
    %626 = tpu.dynamic_rotate %342 by %c226_i32_110 dim 1 : vector<4x256xf32>, i32 -> vector<4x256xf32>
    %c70 = arith.constant 70 : index
    %c0_111 = arith.constant 0 : index
    %627 = vector.load %arg2[%c70, %c0_111] : memref<83x256xf32, #tpu.memory_space<vmem>>, vector<1x256xf32>
    %628 = vector.broadcast %627 : vector<1x256xf32> to vector<4x256xf32>
    %629 = arith.mulf %626, %628 : vector<4x256xf32>
    %630 = vector.extract_strided_slice %13 {offsets = [0, 36], sizes = [4, 1], strides = [1, 1]} : vector<4x49xf32> to vector<4x1xf32>
    %631 = vector.broadcast %630 : vector<4x1xf32> to vector<4x256xf32>
    %632 = arith.mulf %631, %629 : vector<4x256xf32>
    %633 = arith.addf %625, %632 : vector<4x256xf32>
    %c225_i32 = arith.constant 225 : i32
    %634 = tpu.dynamic_rotate %342 by %c225_i32 dim 1 : vector<4x256xf32>, i32 -> vector<4x256xf32>
    %c71 = arith.constant 71 : index
    %c0_112 = arith.constant 0 : index
    %635 = vector.load %arg2[%c71, %c0_112] : memref<83x256xf32, #tpu.memory_space<vmem>>, vector<1x256xf32>
    %636 = vector.broadcast %635 : vector<1x256xf32> to vector<4x256xf32>
    %637 = arith.mulf %634, %636 : vector<4x256xf32>
    %638 = vector.extract_strided_slice %13 {offsets = [0, 37], sizes = [4, 1], strides = [1, 1]} : vector<4x49xf32> to vector<4x1xf32>
    %639 = vector.broadcast %638 : vector<4x1xf32> to vector<4x256xf32>
    %640 = arith.mulf %639, %637 : vector<4x256xf32>
    %641 = arith.addf %633, %640 : vector<4x256xf32>
    %c224_i32_113 = arith.constant 224 : i32
    %642 = tpu.dynamic_rotate %342 by %c224_i32_113 dim 1 : vector<4x256xf32>, i32 -> vector<4x256xf32>
    %c72 = arith.constant 72 : index
    %c0_114 = arith.constant 0 : index
    %643 = vector.load %arg2[%c72, %c0_114] : memref<83x256xf32, #tpu.memory_space<vmem>>, vector<1x256xf32>
    %644 = vector.broadcast %643 : vector<1x256xf32> to vector<4x256xf32>
    %645 = arith.mulf %642, %644 : vector<4x256xf32>
    %646 = vector.extract_strided_slice %13 {offsets = [0, 38], sizes = [4, 1], strides = [1, 1]} : vector<4x49xf32> to vector<4x1xf32>
    %647 = vector.broadcast %646 : vector<4x1xf32> to vector<4x256xf32>
    %648 = arith.mulf %647, %645 : vector<4x256xf32>
    %649 = arith.addf %641, %648 : vector<4x256xf32>
    %c223_i32 = arith.constant 223 : i32
    %650 = tpu.dynamic_rotate %342 by %c223_i32 dim 1 : vector<4x256xf32>, i32 -> vector<4x256xf32>
    %c73 = arith.constant 73 : index
    %c0_115 = arith.constant 0 : index
    %651 = vector.load %arg2[%c73, %c0_115] : memref<83x256xf32, #tpu.memory_space<vmem>>, vector<1x256xf32>
    %652 = vector.broadcast %651 : vector<1x256xf32> to vector<4x256xf32>
    %653 = arith.mulf %650, %652 : vector<4x256xf32>
    %654 = vector.extract_strided_slice %13 {offsets = [0, 39], sizes = [4, 1], strides = [1, 1]} : vector<4x49xf32> to vector<4x1xf32>
    %655 = vector.broadcast %654 : vector<4x1xf32> to vector<4x256xf32>
    %656 = arith.mulf %655, %653 : vector<4x256xf32>
    %657 = arith.addf %649, %656 : vector<4x256xf32>
    %c222_i32_116 = arith.constant 222 : i32
    %658 = tpu.dynamic_rotate %342 by %c222_i32_116 dim 1 : vector<4x256xf32>, i32 -> vector<4x256xf32>
    %c74 = arith.constant 74 : index
    %c0_117 = arith.constant 0 : index
    %659 = vector.load %arg2[%c74, %c0_117] : memref<83x256xf32, #tpu.memory_space<vmem>>, vector<1x256xf32>
    %660 = vector.broadcast %659 : vector<1x256xf32> to vector<4x256xf32>
    %661 = arith.mulf %658, %660 : vector<4x256xf32>
    %662 = vector.extract_strided_slice %13 {offsets = [0, 40], sizes = [4, 1], strides = [1, 1]} : vector<4x49xf32> to vector<4x1xf32>
    %663 = vector.broadcast %662 : vector<4x1xf32> to vector<4x256xf32>
    %664 = arith.mulf %663, %661 : vector<4x256xf32>
    %665 = arith.addf %657, %664 : vector<4x256xf32>
    %c221_i32 = arith.constant 221 : i32
    %666 = tpu.dynamic_rotate %342 by %c221_i32 dim 1 : vector<4x256xf32>, i32 -> vector<4x256xf32>
    %c75 = arith.constant 75 : index
    %c0_118 = arith.constant 0 : index
    %667 = vector.load %arg2[%c75, %c0_118] : memref<83x256xf32, #tpu.memory_space<vmem>>, vector<1x256xf32>
    %668 = vector.broadcast %667 : vector<1x256xf32> to vector<4x256xf32>
    %669 = arith.mulf %666, %668 : vector<4x256xf32>
    %670 = vector.extract_strided_slice %13 {offsets = [0, 41], sizes = [4, 1], strides = [1, 1]} : vector<4x49xf32> to vector<4x1xf32>
    %671 = vector.broadcast %670 : vector<4x1xf32> to vector<4x256xf32>
    %672 = arith.mulf %671, %669 : vector<4x256xf32>
    %673 = arith.addf %665, %672 : vector<4x256xf32>
    %c211_i32 = arith.constant 211 : i32
    %674 = tpu.dynamic_rotate %342 by %c211_i32 dim 1 : vector<4x256xf32>, i32 -> vector<4x256xf32>
    %c76 = arith.constant 76 : index
    %c0_119 = arith.constant 0 : index
    %675 = vector.load %arg2[%c76, %c0_119] : memref<83x256xf32, #tpu.memory_space<vmem>>, vector<1x256xf32>
    %676 = vector.broadcast %675 : vector<1x256xf32> to vector<4x256xf32>
    %677 = arith.mulf %674, %676 : vector<4x256xf32>
    %678 = vector.extract_strided_slice %13 {offsets = [0, 42], sizes = [4, 1], strides = [1, 1]} : vector<4x49xf32> to vector<4x1xf32>
    %679 = vector.broadcast %678 : vector<4x1xf32> to vector<4x256xf32>
    %680 = arith.mulf %679, %677 : vector<4x256xf32>
    %681 = arith.addf %673, %680 : vector<4x256xf32>
    %c210_i32 = arith.constant 210 : i32
    %682 = tpu.dynamic_rotate %342 by %c210_i32 dim 1 : vector<4x256xf32>, i32 -> vector<4x256xf32>
    %c77 = arith.constant 77 : index
    %c0_120 = arith.constant 0 : index
    %683 = vector.load %arg2[%c77, %c0_120] : memref<83x256xf32, #tpu.memory_space<vmem>>, vector<1x256xf32>
    %684 = vector.broadcast %683 : vector<1x256xf32> to vector<4x256xf32>
    %685 = arith.mulf %682, %684 : vector<4x256xf32>
    %686 = vector.extract_strided_slice %13 {offsets = [0, 43], sizes = [4, 1], strides = [1, 1]} : vector<4x49xf32> to vector<4x1xf32>
    %687 = vector.broadcast %686 : vector<4x1xf32> to vector<4x256xf32>
    %688 = arith.mulf %687, %685 : vector<4x256xf32>
    %689 = arith.addf %681, %688 : vector<4x256xf32>
    %c209_i32 = arith.constant 209 : i32
    %690 = tpu.dynamic_rotate %342 by %c209_i32 dim 1 : vector<4x256xf32>, i32 -> vector<4x256xf32>
    %c78 = arith.constant 78 : index
    %c0_121 = arith.constant 0 : index
    %691 = vector.load %arg2[%c78, %c0_121] : memref<83x256xf32, #tpu.memory_space<vmem>>, vector<1x256xf32>
    %692 = vector.broadcast %691 : vector<1x256xf32> to vector<4x256xf32>
    %693 = arith.mulf %690, %692 : vector<4x256xf32>
    %694 = vector.extract_strided_slice %13 {offsets = [0, 44], sizes = [4, 1], strides = [1, 1]} : vector<4x49xf32> to vector<4x1xf32>
    %695 = vector.broadcast %694 : vector<4x1xf32> to vector<4x256xf32>
    %696 = arith.mulf %695, %693 : vector<4x256xf32>
    %697 = arith.addf %689, %696 : vector<4x256xf32>
    %c208_i32 = arith.constant 208 : i32
    %698 = tpu.dynamic_rotate %342 by %c208_i32 dim 1 : vector<4x256xf32>, i32 -> vector<4x256xf32>
    %c79 = arith.constant 79 : index
    %c0_122 = arith.constant 0 : index
    %699 = vector.load %arg2[%c79, %c0_122] : memref<83x256xf32, #tpu.memory_space<vmem>>, vector<1x256xf32>
    %700 = vector.broadcast %699 : vector<1x256xf32> to vector<4x256xf32>
    %701 = arith.mulf %698, %700 : vector<4x256xf32>
    %702 = vector.extract_strided_slice %13 {offsets = [0, 45], sizes = [4, 1], strides = [1, 1]} : vector<4x49xf32> to vector<4x1xf32>
    %703 = vector.broadcast %702 : vector<4x1xf32> to vector<4x256xf32>
    %704 = arith.mulf %703, %701 : vector<4x256xf32>
    %705 = arith.addf %697, %704 : vector<4x256xf32>
    %c207_i32 = arith.constant 207 : i32
    %706 = tpu.dynamic_rotate %342 by %c207_i32 dim 1 : vector<4x256xf32>, i32 -> vector<4x256xf32>
    %c80 = arith.constant 80 : index
    %c0_123 = arith.constant 0 : index
    %707 = vector.load %arg2[%c80, %c0_123] : memref<83x256xf32, #tpu.memory_space<vmem>>, vector<1x256xf32>
    %708 = vector.broadcast %707 : vector<1x256xf32> to vector<4x256xf32>
    %709 = arith.mulf %706, %708 : vector<4x256xf32>
    %710 = vector.extract_strided_slice %13 {offsets = [0, 46], sizes = [4, 1], strides = [1, 1]} : vector<4x49xf32> to vector<4x1xf32>
    %711 = vector.broadcast %710 : vector<4x1xf32> to vector<4x256xf32>
    %712 = arith.mulf %711, %709 : vector<4x256xf32>
    %713 = arith.addf %705, %712 : vector<4x256xf32>
    %c206_i32 = arith.constant 206 : i32
    %714 = tpu.dynamic_rotate %342 by %c206_i32 dim 1 : vector<4x256xf32>, i32 -> vector<4x256xf32>
    %c81 = arith.constant 81 : index
    %c0_124 = arith.constant 0 : index
    %715 = vector.load %arg2[%c81, %c0_124] : memref<83x256xf32, #tpu.memory_space<vmem>>, vector<1x256xf32>
    %716 = vector.broadcast %715 : vector<1x256xf32> to vector<4x256xf32>
    %717 = arith.mulf %714, %716 : vector<4x256xf32>
    %718 = vector.extract_strided_slice %13 {offsets = [0, 47], sizes = [4, 1], strides = [1, 1]} : vector<4x49xf32> to vector<4x1xf32>
    %719 = vector.broadcast %718 : vector<4x1xf32> to vector<4x256xf32>
    %720 = arith.mulf %719, %717 : vector<4x256xf32>
    %721 = arith.addf %713, %720 : vector<4x256xf32>
    %c205_i32 = arith.constant 205 : i32
    %722 = tpu.dynamic_rotate %342 by %c205_i32 dim 1 : vector<4x256xf32>, i32 -> vector<4x256xf32>
    %c82 = arith.constant 82 : index
    %c0_125 = arith.constant 0 : index
    %723 = vector.load %arg2[%c82, %c0_125] : memref<83x256xf32, #tpu.memory_space<vmem>>, vector<1x256xf32>
    %724 = vector.broadcast %723 : vector<1x256xf32> to vector<4x256xf32>
    %725 = arith.mulf %722, %724 : vector<4x256xf32>
    %726 = vector.extract_strided_slice %13 {offsets = [0, 48], sizes = [4, 1], strides = [1, 1]} : vector<4x49xf32> to vector<4x1xf32>
    %727 = vector.broadcast %726 : vector<4x1xf32> to vector<4x256xf32>
    %728 = arith.mulf %727, %725 : vector<4x256xf32>
    %729 = arith.addf %721, %728 : vector<4x256xf32>
    %730 = vector.extract_strided_slice %729 {offsets = [0, 0], sizes = [1, 256], strides = [1, 1]} : vector<4x256xf32> to vector<1x256xf32>
    %731 = vector.extract_strided_slice %729 {offsets = [1, 0], sizes = [1, 256], strides = [1, 1]} : vector<4x256xf32> to vector<1x256xf32>
    %732 = arith.addf %730, %731 : vector<1x256xf32>
    %733 = vector.extract_strided_slice %12 {offsets = [0, 0], sizes = [1, 1], strides = [1, 1]} : vector<2x1xf32> to vector<1x1xf32>
    %734 = vector.broadcast %733 : vector<1x1xf32> to vector<1x256xf32>
    %735 = arith.addf %732, %734 : vector<1x256xf32>
    %cst_126 = arith.constant 5.000000e-01 : f32
    %736 = vector.broadcast %cst_126 : f32 to vector<1x256xf32>
    %737 = arith.mulf %736, %735 : vector<1x256xf32>
    %738 = math.tanh %737 : vector<1x256xf32>
    %cst_127 = arith.constant 1.000000e+00 : f32
    %739 = vector.broadcast %cst_127 : f32 to vector<1x256xf32>
    %740 = arith.addf %738, %739 : vector<1x256xf32>
    %cst_128 = arith.constant 5.000000e-01 : f32
    %741 = vector.broadcast %cst_128 : f32 to vector<1x256xf32>
    %742 = arith.mulf %741, %740 : vector<1x256xf32>
    %743 = vector.extract_strided_slice %729 {offsets = [2, 0], sizes = [1, 256], strides = [1, 1]} : vector<4x256xf32> to vector<1x256xf32>
    %744 = vector.extract_strided_slice %729 {offsets = [3, 0], sizes = [1, 256], strides = [1, 1]} : vector<4x256xf32> to vector<1x256xf32>
    %745 = arith.addf %743, %744 : vector<1x256xf32>
    %746 = vector.extract_strided_slice %12 {offsets = [1, 0], sizes = [1, 1], strides = [1, 1]} : vector<2x1xf32> to vector<1x1xf32>
    %747 = vector.broadcast %746 : vector<1x1xf32> to vector<1x256xf32>
    %748 = arith.addf %745, %747 : vector<1x256xf32>
    %cst_129 = arith.constant 5.000000e-01 : f32
    %749 = vector.broadcast %cst_129 : f32 to vector<1x256xf32>
    %750 = arith.mulf %749, %748 : vector<1x256xf32>
    %751 = math.tanh %750 : vector<1x256xf32>
    %cst_130 = arith.constant 1.000000e+00 : f32
    %752 = vector.broadcast %cst_130 : f32 to vector<1x256xf32>
    %753 = arith.addf %751, %752 : vector<1x256xf32>
    %cst_131 = arith.constant 5.000000e-01 : f32
    %754 = vector.broadcast %cst_131 : f32 to vector<1x256xf32>
    %755 = arith.mulf %754, %753 : vector<1x256xf32>
    %756 = vector.broadcast %742 : vector<1x256xf32> to vector<2x256xf32>
    %757 = arith.mulf %327, %756 : vector<2x256xf32>
    %758 = vector.broadcast %755 : vector<1x256xf32> to vector<2x256xf32>
    %759 = arith.mulf %329, %758 : vector<2x256xf32>
    %760 = arith.addf %757, %759 : vector<2x256xf32>
    %761 = vector.extract_strided_slice %11 {offsets = [0, 0], sizes = [4, 1], strides = [1, 1]} : vector<4x2xf32> to vector<4x1xf32>
    %762 = vector.extract_strided_slice %760 {offsets = [0, 0], sizes = [1, 256], strides = [1, 1]} : vector<2x256xf32> to vector<1x256xf32>
    %763 = vector.broadcast %761 : vector<4x1xf32> to vector<4x256xf32>
    %764 = vector.broadcast %762 : vector<1x256xf32> to vector<4x256xf32>
    %765 = arith.mulf %763, %764 : vector<4x256xf32>
    %766 = vector.extract_strided_slice %11 {offsets = [0, 1], sizes = [4, 1], strides = [1, 1]} : vector<4x2xf32> to vector<4x1xf32>
    %767 = vector.extract_strided_slice %760 {offsets = [1, 0], sizes = [1, 256], strides = [1, 1]} : vector<2x256xf32> to vector<1x256xf32>
    %768 = vector.broadcast %766 : vector<4x1xf32> to vector<4x256xf32>
    %769 = vector.broadcast %767 : vector<1x256xf32> to vector<4x256xf32>
    %770 = arith.mulf %768, %769 : vector<4x256xf32>
    %771 = arith.addf %765, %770 : vector<4x256xf32>
    %772 = vector.broadcast %6 : vector<4x1xf32> to vector<4x256xf32>
    %773 = arith.addf %771, %772 : vector<4x256xf32>
    %774 = arith.mulf %1, %773 : vector<4x256xf32>
    %c0_132 = arith.constant 0 : index
    %c0_133 = arith.constant 0 : index
    %775 = vector.load %arg6[%c0_132, %c0_133] : memref<2x512xf32, #tpu.memory_space<vmem>>, vector<1x512xf32>
    %c1_134 = arith.constant 1 : index
    %c0_135 = arith.constant 0 : index
    %776 = vector.load %arg6[%c1_134, %c0_135] : memref<2x512xf32, #tpu.memory_space<vmem>>, vector<1x256xf32>
    %777 = arith.truncf %774 : vector<4x256xf32> to vector<4x256xbf16>
    %c0_136 = arith.constant 0 : index
    %c0_137 = arith.constant 0 : index
    %778 = vector.load %arg4[%c0_136, %c0_137] : memref<256x512xbf16, #tpu.memory_space<vmem>>, vector<256x512xbf16>
    %cst_138 = arith.constant dense<0.000000e+00> : vector<4x512xf32>
    %779 = tpu.matmul %777, %778, %cst_138 {dimension_numbers = #tpu.dot_dimension_numbers<[1], [0], [0], [1], [0, 0, 1, 1], [], []>} : vector<4x256xbf16>, vector<256x512xbf16>, vector<4x512xf32> -> vector<4x512xf32>
    %780 = vector.broadcast %775 : vector<1x512xf32> to vector<4x512xf32>
    %781 = arith.addf %779, %780 : vector<4x512xf32>
    %cst_139 = arith.constant 5.000000e-01 : f32
    %782 = vector.broadcast %cst_139 : f32 to vector<4x512xf32>
    %783 = arith.mulf %782, %781 : vector<4x512xf32>
    %cst_140 = arith.constant 0.707106769 : f32
    %784 = vector.broadcast %cst_140 : f32 to vector<4x512xf32>
    %785 = arith.mulf %781, %784 : vector<4x512xf32>
    %786 = math.absf %785 : vector<4x512xf32>
    %cst_141 = arith.constant 0.327591091 : f32
    %787 = vector.broadcast %cst_141 : f32 to vector<4x512xf32>
    %788 = arith.mulf %787, %786 : vector<4x512xf32>
    %cst_142 = arith.constant 1.000000e+00 : f32
    %789 = vector.broadcast %cst_142 : f32 to vector<4x512xf32>
    %790 = arith.addf %789, %788 : vector<4x512xf32>
    %791 = tpu.reciprocal %790 {approx = true} : vector<4x512xf32> -> vector<4x512xf32>
    %cst_143 = arith.constant 1.06140542 : f32
    %792 = vector.broadcast %cst_143 : f32 to vector<4x512xf32>
    %793 = arith.mulf %792, %791 : vector<4x512xf32>
    %cst_144 = arith.constant 1.45315206 : f32
    %794 = vector.broadcast %cst_144 : f32 to vector<4x512xf32>
    %795 = arith.subf %793, %794 : vector<4x512xf32>
    %796 = arith.mulf %795, %791 : vector<4x512xf32>
    %cst_145 = arith.constant 1.42141378 : f32
    %797 = vector.broadcast %cst_145 : f32 to vector<4x512xf32>
    %798 = arith.addf %796, %797 : vector<4x512xf32>
    %799 = arith.mulf %798, %791 : vector<4x512xf32>
    %cst_146 = arith.constant 0.284496725 : f32
    %800 = vector.broadcast %cst_146 : f32 to vector<4x512xf32>
    %801 = arith.subf %799, %800 : vector<4x512xf32>
    %802 = arith.mulf %801, %791 : vector<4x512xf32>
    %cst_147 = arith.constant 0.254829586 : f32
    %803 = vector.broadcast %cst_147 : f32 to vector<4x512xf32>
    %804 = arith.addf %802, %803 : vector<4x512xf32>
    %805 = arith.mulf %804, %791 : vector<4x512xf32>
    %cst_148 = arith.constant 0.000000e+00 : f32
    %806 = vector.broadcast %cst_148 : f32 to vector<4x512xf32>
    %807 = arith.subf %806, %786 : vector<4x512xf32>
    %808 = arith.mulf %807, %786 : vector<4x512xf32>
    %809 = math.exp %808 : vector<4x512xf32>
    %810 = arith.mulf %805, %809 : vector<4x512xf32>
    %cst_149 = arith.constant 1.000000e+00 : f32
    %811 = vector.broadcast %cst_149 : f32 to vector<4x512xf32>
    %812 = arith.subf %811, %810 : vector<4x512xf32>
    %cst_150 = arith.constant 0.000000e+00 : f32
    %813 = vector.broadcast %cst_150 : f32 to vector<4x512xf32>
    %814 = arith.cmpf oge, %785, %813 : vector<4x512xf32>
    %cst_151 = arith.constant 0.000000e+00 : f32
    %815 = vector.broadcast %cst_151 : f32 to vector<4x512xf32>
    %816 = arith.subf %815, %812 : vector<4x512xf32>
    %817 = arith.select %814, %812, %816 : vector<4x512xi1>, vector<4x512xf32>
    %cst_152 = arith.constant 1.000000e+00 : f32
    %818 = vector.broadcast %cst_152 : f32 to vector<4x512xf32>
    %819 = arith.addf %818, %817 : vector<4x512xf32>
    %820 = arith.mulf %783, %819 : vector<4x512xf32>
    %821 = arith.truncf %820 : vector<4x512xf32> to vector<4x512xbf16>
    %c0_153 = arith.constant 0 : index
    %c0_154 = arith.constant 0 : index
    %822 = vector.load %arg5[%c0_153, %c0_154] : memref<512x256xbf16, #tpu.memory_space<vmem>>, vector<512x256xbf16>
    %cst_155 = arith.constant dense<0.000000e+00> : vector<4x256xf32>
    %823 = tpu.matmul %821, %822, %cst_155 {dimension_numbers = #tpu.dot_dimension_numbers<[1], [0], [0], [1], [0, 0, 1, 1], [], []>} : vector<4x512xbf16>, vector<512x256xbf16>, vector<4x256xf32> -> vector<4x256xf32>
    %824 = vector.broadcast %776 : vector<1x256xf32> to vector<4x256xf32>
    %825 = arith.addf %823, %824 : vector<4x256xf32>
    %c0_156 = arith.constant 0 : index
    %c0_157 = arith.constant 0 : index
    %c0_158 = arith.constant 0 : index
    %826 = vector.load %arg7[%c0_156, %c0_157, %c0_158] : memref<1x4x256xf32, #tpu.memory_space<vmem>>, vector<1x4x256xf32>
    %827 = vector.shape_cast %826 : vector<1x4x256xf32> to vector<4x256xf32>
    %828 = vector.shape_cast %825 : vector<4x256xf32> to vector<1x4x256xf32>
    tpu.vector_store %arg7[%c0_156, %c0_157, %c0_158], %828 {strides = array<i32>} : memref<1x4x256xf32, #tpu.memory_space<vmem>>, vector<1x4x256xf32>,
    return
  }
  func.func @transform_0(%arg0: i32) -> (i32, i32, i32) {
    %c0_i32 = arith.constant 0 : i32
    %c0_i32_0 = arith.constant 0 : i32
    %c0_i32_1 = arith.constant 0 : i32
    return %arg0, %c0_i32, %c0_i32_0 : i32, i32, i32
  }
  func.func @transform_1(%arg0: i32) -> (i32, i32) {
    %c0_i32 = arith.constant 0 : i32
    %c0_i32_0 = arith.constant 0 : i32
    %c0_i32_1 = arith.constant 0 : i32
    return %c0_i32, %c0_i32_0 : i32, i32
  }
  func.func @transform_2(%arg0: i32) -> (i32, i32) {
    %c0_i32 = arith.constant 0 : i32
    %c0_i32_0 = arith.constant 0 : i32
    %c0_i32_1 = arith.constant 0 : i32
    return %c0_i32, %c0_i32_0 : i32, i32
  }
  func.func @transform_3(%arg0: i32) -> (i32, i32) {
    %c0_i32 = arith.constant 0 : i32
    %c0_i32_0 = arith.constant 0 : i32
    %c0_i32_1 = arith.constant 0 : i32
    return %c0_i32, %c0_i32_0 : i32, i32
  }
  func.func @transform_4(%arg0: i32) -> (i32, i32) {
    %c0_i32 = arith.constant 0 : i32
    %c0_i32_0 = arith.constant 0 : i32
    %c0_i32_1 = arith.constant 0 : i32
    return %c0_i32, %c0_i32_0 : i32, i32
  }
  func.func @transform_5(%arg0: i32) -> (i32, i32) {
    %c0_i32 = arith.constant 0 : i32
    %c0_i32_0 = arith.constant 0 : i32
    %c0_i32_1 = arith.constant 0 : i32
    return %c0_i32, %c0_i32_0 : i32, i32
  }
  func.func @transform_6(%arg0: i32) -> (i32, i32, i32) {
    %c0_i32 = arith.constant 0 : i32
    %c0_i32_0 = arith.constant 0 : i32
    %c0_i32_1 = arith.constant 0 : i32
    return %arg0, %c0_i32, %c0_i32_0 : i32, i32, i32
  }
}

</mosaic_0001>

<bundles_post_ra>
// kernel: tpu_custom_call.1
= control target key start
LH: loop header
LB: loop body
LE: loop exit
PB: predicated region body
PF: predicated region fallthrough
CT: control target
= control target key end

     0   :  { %s7241_s0 = inlined_call_operand.hbm [shape: f32[2,4,256], index: 0, kind: input, shape index: {}]   ;;  %s7242_s1 = inlined_call_operand.hbm [shape: f32[83,256], index: 1, kind: input, shape index: {}]   ;;  %s7243_s2 = inlined_call_operand.hbm [shape: f32[18,128], index: 2, kind: input, shape index: {}]   ;;  %s7244_s3 = inlined_call_operand.hbm [shape: bf16[256,512], index: 3, kind: input, shape index: {}]   ;;  %s7245_s4 = inlined_call_operand.hbm [shape: bf16[512,256], index: 4, kind: input, shape index: {}]   ;;  %s7246_s5 = inlined_call_operand.vmem [shape: f32[2,512], index: 5, kind: input, shape index: {}]   ;;  %s7247_s6 = inlined_call_operand.hbm [shape: f32[2,4,256], index: 6, kind: output, shape index: {}]  }
   0x1   :  { %7338 = sst [smem:[#allocation56_spill]] %s7242_s1 }
   0x2   :  { %11 = vsyncpa [#allocation3], 0 }
   0x3   :  { %13 = vsyncpa [#allocation3 + $0x1], 0 }
   0x4   :  { %14 = vsyncpa [#allocation6], 0 }
   0x5   :  { %15 = vsyncpa [#allocation9], 0 }
   0x6   :  { %16 = vsyncpa [#allocation4], 0 }
   0x7   :  { %18 = vsyncpa [#allocation4 + $0x1], 0  ;;  %s5266_s21 = smov 0   ;;  %s5268_s22 = smov 0  }
   0x8   :  { %s5270_s23 = smov 0   ;;  %s5272_s24 = smov 0  }
   0x9 LB: > { %s5113_s25 = smov [#allocation5]   ;;  %s5287_s27 = sadd.s32 4294967295, %s5111_s24   ;;  %s5111_s24 = sphi %s5272_s24, %s7516_s24   ;;  %s5107_s23 = sphi %s5270_s23, %s7515_s23   ;;  %s5103_s22 = sphi %s5268_s22, %s7514_s22   ;;  %s5099_s21 = sphi %s5266_s21, %s7513_s21  }
   0xa   : > { %s198_s26 = sshll.u32 %s5113_s25, 4  ;;  %p4235_p0 = scmp.ge.s32.totalorder %s5111_s24, 1  ;;  %s199_s26 = int_to_ptr.vmem [resolvable:$true] %s198_s26 }
   0xb   : > { %p7248_p1 = scmp.eq.s32.totalorder %s5287_s27, 0  ;;  %p186_p2 = scmp.lt.s32.totalorder %s5111_s24, 3 }
   0xc   : > { %s5114_s29 = smov [#allocation8]   ;;  %s5115_s8 = smov [#allocation7]  }
   0xd   : > { %p5292_p3 = pnand %p4235_p0, %p186_p2  ;;  %s224_s30 = sshll.u32 %s5114_s29, 4  ;;  %s5305_s30 = int_to_ptr.vmem [resolvable:$true] %s224_s30 }
   0xe   : > { %s211_s9 = sshll.u32 %s5115_s8, 4  ;;  %s4918_s10 = scalar_lea.vmem %s199_s26, 2816  ;;  %s5307_s9 = int_to_ptr.vmem [resolvable:$true] %s211_s9 }
   0xf   : > { %s7339_s28 = scalar_select %p5292_p3, 1, 0 }
  0x10   : > { %p4415_p5 = pneg %p5292_p3  ;;  %p4919_p8 = scmp.ne.s32.totalorder %s199_s26, %s4918_s10 }
  0x11   : > { %p4926_p11 = scmp.lt.s32.totalorder %s199_s26, %s199_s26  ;;  %p4927_p12 = scmp.lt.s32.totalorder %s4918_s10, %s4918_s10 }
  0x12   : > { %p5301_p6 = pnand %p4415_p5, %p7248_p1 }
  0x13   : > { %p4928_p13 = por %p4927_p12, %p4926_p11 }
  0x14   : > { %p4909_p7 = pneg %p5301_p6 }
  0x16   : > { %p4921_p9 = pnand %p4919_p8, %p4909_p7 }
  0x18   : > { %p4922_p10 = pneg %p4921_p9 }
  0x1a   : > { %p4929_p0 = pnand %p4928_p13, %p4922_p10 }
  0x1c   : > { %4932 = shalt.err (!%p4929_p0)
}
  0x1d   : > { %s5116_s11 = smov 256   ;;  %s5117_s12 = smov 16  }
  0x1e   : > { %s7341_s1 = sld [smem:[#allocation56_spill]]  ;;  %s4944_s15 = scalar_lea.vmem %s5305_s30, 8192 }
  0x1f   : > { %p4945_p2 = scmp.ne.s32.totalorder %s5305_s30, %s4944_s15  ;;  %p4952_p9 = scmp.lt.s32.totalorder %s5305_s30, %s5305_s30 }
  0x20   : > { %p4953_p10 = scmp.lt.s32.totalorder %s4944_s15, %s4944_s15 }
  0x21   : > { %p4947_p5 = pnand %p4945_p2, %p4909_p7 }
  0x22   : > { %p4954_p11 = por %p4953_p10, %p4952_p9 }
  0x23   : > { %p4948_p8 = pneg %p4947_p5 }
  0x24   : > { %4418 = dma.hbm_to_vmem [thread:$0]  (!%p5301_p6), %s7341_s1, 2816, %s199_s26, [#allocation6], %s5116_s11, %s5116_s11, %s5117_s12  }
  0x25   : > { %p4955_p12 = pnand %p4954_p11, %p4948_p8 }
  0x27   : > { %4958 = shalt.err (!%p4955_p12)
}
  0x28   : > { %4424 = dma.hbm_to_vmem [thread:$0]  (!%p5301_p6), %s7244_s3, 8192, %s5305_s30, [#allocation9], %s5116_s11, %s5116_s11, %s5117_s12  }
  0x29   : > { %s4970_s18 = scalar_lea.vmem %s5307_s9, 384  ;;  %p4978_p5 = scmp.lt.s32.totalorder %s5307_s9, %s5307_s9 }
  0x2a   : > { %p4971_p13 = scmp.ne.s32.totalorder %s5307_s9, %s4970_s18  ;;  %p4979_p8 = scmp.lt.s32.totalorder %s4970_s18, %s4970_s18 }
  0x2c   : > { %p4973_p0 = pnand %p4971_p13, %p4909_p7  ;;  %p4980_p9 = por %p4979_p8, %p4978_p5 }
  0x2e   : > { %p4974_p2 = pneg %p4973_p0 }
  0x30   : > { %p4981_p10 = pnand %p4980_p9, %p4974_p2 }
  0x32   : > { %4984 = shalt.err (!%p4981_p10)
}
  0x33   : > { %s5118_s19 = smov 128   ;;  %s5119_s20 = smov 8  }
  0x34   : > { %4421 = dma.hbm_to_vmem [thread:$0]  (!%p5301_p6), %s7243_s2, 384, %s5307_s9, [#allocation6], %s5118_s19, %s5118_s19, %s5119_s20  }
  0x35   : > { %s5120_s29 = smov [#allocation10]  }
  0x36   : > { %s237_s30 = sshll.u32 %s5120_s29, 4  ;;  %s238_s30 = int_to_ptr.vmem [resolvable:$true] %s237_s30 }
  0x37   : > { %s4996_s8 = scalar_lea.vmem %s238_s30, 8192  ;;  %p5004_p0 = scmp.lt.s32.totalorder %s238_s30, %s238_s30 }
  0x38   : > { %p4997_p11 = scmp.ne.s32.totalorder %s238_s30, %s4996_s8  ;;  %p5005_p2 = scmp.lt.s32.totalorder %s4996_s8, %s4996_s8 }
  0x3a   : > { %p4999_p12 = pnand %p4997_p11, %p4909_p7  ;;  %p5006_p5 = por %p5005_p2, %p5004_p0 }
  0x3c   : > { %p5000_p13 = pneg %p4999_p12 }
  0x3e   : > { %p5007_p8 = pnand %p5006_p5, %p5000_p13 }
  0x40   : > { %5010 = shalt.err (!%p5007_p8)
}
  0x41   : > { %4427 = dma.hbm_to_vmem [thread:$0]  (!%p5301_p6), %s7245_s4, 8192, %s238_s30, [#allocation9], %s5118_s19, %s5118_s19, %s5119_s20  }
  0x42   : > { %s4234_s9 = sadd.s32 4294967294, %s5111_s24   ;;  %s5355_s7 = sadd.s32 1, %s5111_s24  }
  0x43   : > { %s28_s12 = ssub.s32 %s5111_s24, %s5355_s7  ;;  %s31_s13 = sadd.s32 1, %s5107_s23 }
  0x44   : > { %p29_p7 = scmp.eq.s32.totalorder %s28_s12, 0  ;;  %p38_p9 = scmp.ne.s32.totalorder %s5107_s23, %s5103_s22 }
  0x45   : > { %p39_p10 = scmp.eq.s32.totalorder %s5111_s24, 0  ;;  %p44_p11 = scmp.ne.s32.totalorder %s5103_s22, %s5099_s21 }
  0x46   : > { %s5366_s14 = scalar_select %p29_p7, %s5107_s23, %s31_s13  }
  0x47   : > { %p5368_p12 = por %p39_p10, %p38_p9  ;;  %p5374_p6 = por %p7248_p1, %p44_p11 }
  0x48   : > { %p173_p13 = scmp.eq.s32.totalorder %s5287_s27, 1  ;;  %p179_p0 = scmp.eq.s32.totalorder %s4234_s9, 1 }
  0x49   : > { %s7343_s16 = scalar_select %p5374_p6, 1, 0 }
  0x4a   : > { %p4440_p2 = scmp.lt.s32.totalorder %s5111_s24, 2  ;;  %s254_s17 = sand.u32 1, %s5107_s23  }
  0x4b   : > { %p5381_p5 = por %p173_p13, %p38_p9  ;;  %p5385_p8 = por %p179_p0, %p44_p11 }
  0x4c   : > { %s4241_s20 = sshll.u32 %s254_s17, 3  ;;  %s4393_s25 = sshll.u32 %s5111_s24, 7 }
  0x4d   : > { %s7344_s18 = scalar_select %p5381_p5, 1, 0 }
  0x4e   : > { %s7345_s19 = scalar_select %p5385_p8, 1, 0 }
  0x4f   : > { %s5393_s30 = scalar_lea.hbm %s7241_s0, %s4393_s25  ;;  %s258_s8 = scalar_lea.vmem [#allocation2], %s4241_s20 }
  0x50   : > { %s266_s10 = sshll.u32 %s258_s8, 4  ;;  %p5397_p7 = pnand %p4440_p2, %p5368_p12  ;;  %s267_s10 = int_to_ptr.vmem [resolvable:$true] %s266_s10 }
  0x51   : > { %s255_s9 = scalar_lea.sflag [#allocation3], %s254_s17  ;;  %s5011_s12 = scalar_lea.hbm %s5393_s30, 128 }
  0x52   : > { %p5012_p9 = scmp.ne.s32.totalorder %s5393_s30, %s5011_s12  ;;  %p5013_p10 = pneg %p5397_p7 }
  0x53   : > { %s5016_s26 = scalar_lea.hbm %s7241_s0, 256  ;;  %p5017_p0 = scmp.lt.s32.totalorder %s5393_s30, %s7241_s0 }
  0x54   : > { %p5014_p11 = pnand %p5013_p10, %p5012_p9  ;;  %p5018_p12 = scmp.lt.s32.totalorder %s5016_s26, %s5011_s12 }
  0x56   : > { %p5015_p13 = pneg %p5014_p11  ;;  %p5019_p2 = por %p5018_p12, %p5017_p0 }
  0x58   : > { %p5020_p4 = pnand %p5019_p2, %p5015_p13 }
  0x5a   : > { %5023 = shalt.err (!%p5020_p4)
}
  0x5b   : > { %s5024_s15 = scalar_lea.vmem %s267_s10, 128  ;;  %s5121_s17 = smov [#allocation2]  }
  0x5c   : > { %p5025_p1 = scmp.ne.s32.totalorder %s267_s10, %s5024_s15  ;;  %s5029_s8 = sshll.u32 %s5121_s17, 4  ;;  %s5030_s8 = int_to_ptr.vmem [resolvable:$false] %s5029_s8 }
  0x5d   : > { %s5031_s1 = scalar_lea.vmem %s5030_s8, 256  ;;  %p5032_p9 = scmp.lt.s32.totalorder %s267_s10, %s5030_s8 }
  0x5e   : > { %p5027_p8 = pnand %p5025_p1, %p5013_p10  ;;  %p5033_p11 = scmp.lt.s32.totalorder %s5031_s1, %s5024_s15 }
  0x60   : > { %p5028_p5 = pneg %p5027_p8  ;;  %p5034_p6 = por %p5033_p11, %p5032_p9 }
  0x62   : > { %p5035_p3 = pnand %p5034_p6, %p5028_p5 }
  0x64   : > { %5038 = shalt.err (!%p5035_p3)
}
  0x65   : > { %4431 = dma.hbm_to_vmem [thread:$0]  (!%p5397_p7), %s5393_s30, 128, %s267_s10, %s255_s9  }
  0x66   : > { %p7347_p13 = scmp.ne.s32.totalorder %s7339_s28, 0 }
  0x68   : > { %275 = sbr.rel (%p7347_p13) target bundleno = 1667 (0x683), region = 44 }
  0x6d   : > { %s5418_s12 = sand.u32 1, %s5103_s22   ;;  %p7348_p1 = scmp.ne.s32.totalorder %s7343_s16, 0 }
  0x6e   : > { %s7255_s13 = sshll.u32 %s5418_s12, 3  ;;  %s278_s25 = scalar_lea.sflag [#allocation3], %s5418_s12 }
  0x6f   : > { %s5424_s1 = scalar_lea.vmem [#allocation2], %s7255_s13 }
  0x70   : > { %5082 = dma.done.wait (%p7348_p1), %s278_s25, 128  }
  0x71   : > { %5084 = vsyncadd (%p7348_p1), %s278_s25, 4294967168  ;;  %p7349_p3 = scmp.eq.s32.totalorder %s5287_s27, 0 }
  0x73   : > { %5086 = dma.done.wait (%p7349_p3), [#allocation6], 3200   ;;  %p7350_p4 = pmov %p7349_p3 }
  0x74   : > { %p7351_p6 = pmov %p7349_p3 }
  0x75   : > { %5088 = vsyncadd (%p7350_p4), [#allocation6], 4294964096 }
  0x76   : > { %5090 = dma.done.wait (%p7351_p6), [#allocation9], 16384   ;;  %p7352_p5 = pmov %p7349_p3 }
  0x77   : > { %v7276_v0 = vmov 0   ;;  %v5123_v1 = vmov 2   ;;  %v5440_v2 = vld [vmem:[#allocation7] sm:$0xf]  ;;  %s5124_s28 = smov 17   ;;  %v7281_v4 = vmov 1   ;;  %v340_v33 = vlaneseq }
  0x78   : > { %5092 = vsyncadd (%p7352_p5), [#allocation9], 4294950912  ;;  %4594 = vset.pattern.permute.xlu0 %v7276_v0  ;;  %4596 = vset.pattern.permute.xlu1 %v5123_v1  ;;  %v5443_v3 = vld [vmem:[%s5424_s1] sm:$0xff]  ;;  %s5126_s16 = smov 16   ;;  %v5127_v6 = vmov 3   ;;  %s5128_s30 = smov 15  }
  0x79   : > { %361 = vperm.xlu0 %4594, %v5440_v2   ;;  %336 = vrot.lane.b32.xlu1 %v5443_v3, %s5124_s28  ;;  %v5453_v5 = vcombine.high %v5443_v3, %v5443_v3  ;;  %v5129_v7 = vmov 5   ;;  %s5130_s10 = smov 1   ;;  %v5131_v8 = vmov 4   ;;  %s5132_s11 = smov 127   ;;  %v5133_v9 = vmov 7  }
  0x7a   : > { %s7331_s9 = smov 113   ;;  %v5135_v10 = vmov 6   ;;  %v5136_v11 = vmov 8   ;;  %v5137_v12 = vmov 9   ;;  %v7252_v13 = vmov 34   ;;  %s7258_s26 = smov 112  }
  0x7b   : > { %v7282_v14 = vmov 14   ;;  %s7256_s20 = smov 111   ;;  %v7280_v15 = vmov 15   ;;  %v7279_v16 = vmov 16   ;;  %v7278_v17 = vmov 17   ;;  %s5152_s29 = smov 68  }
  0x7c   : > { %v5145_v18 = vmov 10   ;;  %v7275_v19 = vmov 18   ;;  %v7274_v20 = vmov 19   ;;  %v7273_v21 = vmov 20   ;;  %s5153_s15 = smov 66   ;;  %s5154_s17 = smov 64  }
  0x7d   : > { %4595 = vset.pattern.permute.xlu0 %v7281_v4  ;;  %366 = vrot.lane.b32.xlu1 %v5443_v3, %s5126_s16  ;;  %v7272_v22 = vmov 21   ;;  %v7253_v23 = vmov 24   ;;  %v7254_v34 = vmov 22   ;;  %v5525_v37 = vshrl.u32 %v340_v33, 7  ;;  %s5155_s8 = smov 126   ;;  %s5156_s25 = smov 124  }
  0x7e   : > { %389 = vperm.xlu0 %4595, %v5440_v2   ;;  %v5531_v40 = vand.u32 127, %v340_v33  ;;  %v374_v42 = vld [vmem:[#allocation5 + $0x1] ss:$8 sm:$0x3]  ;;  %s5157_s13 = smov 62   ;;  %p7510_p7 = scmp.ne.s32.totalorder %s7344_s18, 0 }
  0x7f   : > { %7353 = vst [vmem:[#allocation16_spill] sm:$0xff] %v5525_v37  ;;  %v5534_v41 = vsub.s32 0, %v5525_v37  ;;  %v345_v43 = vld [vmem:[#allocation5] ss:$8 sm:$0x3]  ;;  %v5537_v44 = vsub.s32 1, %v5525_v37 }
  0x80   : > { %vm370_vm0 = vcmp.lt.s32.totalorder %v5531_v40, 16  ;;  %v404_v46 = vld [vmem:[#allocation5 + $0x2] ss:$8 sm:$0x3]  ;;  %vm342_vm1 = vcmp.lt.s32.totalorder %v5531_v40, 17  ;;  %vm400_vm2 = vcmp.lt.s32.totalorder %v5531_v40, 15 }
  0x81   : > { %338 = vrot.lane.b32.xlu1 %v5453_v5, %s5124_s28  ;;  %v379_v47 = vrot.slane %v374_v42, %v5534_v41  ;;  %v383_v48 = vrot.slane %v374_v42, %v5537_v44  ;;  %v350_v50 = vrot.slane %v345_v43, %v5534_v41  ;;  %v434_v53 = vld [vmem:[#allocation5 + $0x3] ss:$8 sm:$0x3]  ;;  %v354_v54 = vrot.slane %v345_v43, %v5537_v44 }
  0x82   : > { %368 = vrot.lane.b32.xlu0 %v5453_v5, %s5126_s16  ;;  %v409_v55 = vrot.slane %v404_v46, %v5534_v41  ;;  %v413_v56 = vrot.slane %v404_v46, %v5537_v44  ;;  %vm430_vm3 = vcmp.lt.s32.totalorder %v5531_v40, 1  ;;  %vm468_vm4 = vcmp.lt.s32.totalorder %v5531_v40, 127 }
  0x83   : > { %4597 = vset.pattern.permute.xlu0 %v5127_v6  ;;  %vm7335_vm5 = vcmp.lt.s32.totalorder %v5531_v40, 113  ;;  %vm7325_vm6 = vcmp.lt.s32.totalorder %v5531_v40, 112  ;;  %vm7324_vm7 = vcmp.lt.s32.totalorder %v5531_v40, 111  ;;  %vm594_vm8 = vcmp.lt.s32.totalorder %v5531_v40, 68 }
  0x84   : > { %vm622_vm9 = vcmp.lt.s32.totalorder %v5531_v40, 66  ;;  %vm652_vm10 = vcmp.lt.s32.totalorder %v5531_v40, 64  ;;  %vm682_vm11 = vcmp.lt.s32.totalorder %v5531_v40, 62  ;;  %vm712_vm12 = vcmp.lt.s32.totalorder %v5531_v40, 60 }
  0x85   : > { %419 = vperm.xlu1 %4596, %v5440_v2   ;;  %vm742_vm13 = vcmp.lt.s32.totalorder %v5531_v40, 36  ;;  %vm772_vm14 = vcmp.lt.s32.totalorder %v5531_v40, 34  ;;  %vm802_vm15 = vcmp.lt.s32.totalorder %v5531_v40, 32 }
  0x86   : > { %396 = vrot.lane.b32.xlu0 %v5443_v3, %s5128_s30 }
  0x89   : > { %398 = vrot.lane.b32.xlu1 %v5453_v5, %s5128_s30 }
  0x8a   : > { %449 = vperm.xlu0 %4597, %v5440_v2   ;;  %4599 = vset.pattern.permute.xlu1 %v5129_v7 }
  0x8d   : > { %426 = vrot.lane.b32.xlu1 %v5443_v3, %s5130_s10 }
  0x8e   : > { %4598 = vset.pattern.permute.xlu0 %v5131_v8 }
  0x8f   : > { %457 = vperm.xlu0 %4598, %v5440_v2  }
  0x91   : > { %428 = vrot.lane.b32.xlu1 %v5453_v5, %s5130_s10 }
  0x93   : > { %466 = vrot.lane.b32.xlu0 %v5453_v5, %s5132_s11 }
  0x94   : > { %4601 = vset.pattern.permute.xlu0 %v5133_v9 }
  0x95   : > { %487 = vperm.xlu1 %4599, %v5440_v2  }
  0x97   : > { %494 = vrot.lane.b32.xlu0 %v5443_v3, %s7331_s9 }
  0x99   : > { %464 = vrot.lane.b32.xlu1 %v5443_v3, %s5132_s11 }
  0x9a   : > { %4600 = vset.pattern.permute.xlu1 %v5135_v10 }
  0x9b   : > { %547 = vperm.xlu0 %4601, %v5440_v2  }
  0x9d   : > { %517 = vperm.xlu1 %4600, %v5440_v2  }
  0x9f   : > { %4602 = vset.pattern.permute.xlu0 %v5136_v11 }
  0xa0   : > { %577 = vperm.xlu0 %4602, %v5440_v2  }
  0xa1   : > { %496 = vrot.lane.b32.xlu1 %v5453_v5, %s7331_s9  ;;  %s5188_s9 = smov 48  }
  0xa2   : > { %4604 = vset.pattern.permute.xlu1 %v5137_v12 }
  0xa4   : > { %4603 = vset.pattern.permute.xlu0 %v7252_v13 }
  0xa5   : > { %585 = vperm.xlu0 %4603, %v5440_v2   ;;  %524 = vrot.lane.b32.xlu1 %v5443_v3, %s7258_s26 }
  0xa9   : > { %4606 = vset.pattern.permute.xlu0 %v7282_v14  ;;  %526 = vrot.lane.b32.xlu1 %v5453_v5, %s7258_s26  ;;  %s5171_s26 = smov 2  }
  0xaa   : > { %761 = vperm.xlu0 %4606, %v5440_v2  }
  0xad   : > { %554 = vrot.lane.b32.xlu1 %v5443_v3, %s7256_s20 }
  0xae   : > { %4607 = vset.pattern.permute.xlu0 %v7280_v15 }
  0xaf   : > { %791 = vperm.xlu0 %4607, %v5440_v2  }
  0xb1   : > { %556 = vrot.lane.b32.xlu1 %v5453_v5, %s7256_s20  ;;  %s5170_s20 = smov 4  }
  0xb3   : > { %4608 = vset.pattern.permute.xlu0 %v7279_v16 }
  0xb4   : > { %821 = vperm.xlu0 %4608, %v5440_v2  }
  0xb5   : > { %613 = vperm.xlu1 %4604, %v5440_v2  }
  0xb8   : > { %4609 = vset.pattern.permute.xlu0 %v7278_v17 }
  0xb9   : > { %851 = vperm.xlu0 %4609, %v5440_v2   ;;  %4605 = vset.pattern.permute.xlu1 %v5145_v18 }
  0xba   : > { %641 = vperm.xlu1 %4605, %v5440_v2  }
  0xbd   : > { %4610 = vset.pattern.permute.xlu0 %v7275_v19 }
  0xbe   : > { %881 = vperm.xlu0 %4610, %v5440_v2   ;;  %4614 = vset.pattern.permute.xlu1 %v7254_v34  ;;  %v502_v34 = vld [vmem:[#allocation5 + $0x6] ss:$8 sm:$0x3] }
  0xc2   : > { %4611 = vset.pattern.permute.xlu0 %v7274_v20 }
  0xc3   : > { %911 = vperm.xlu0 %4611, %v5440_v2  }
  0xc7   : > { %4612 = vset.pattern.permute.xlu0 %v7273_v21 }
  0xc8   : > { %941 = vperm.xlu0 %4612, %v5440_v2  }
  0xcc   : > { %4613 = vset.pattern.permute.xlu0 %v7272_v22 }
  0xcd   : > { %949 = vperm.xlu0 %4613, %v5440_v2  }
  0xd1   : > { %4616 = vset.pattern.permute.xlu0 %v7253_v23  ;;  %v472_v23 = vld [vmem:[#allocation5 + $0x5] ss:$8 sm:$0x3] }
  0xeb   : > { %v337_v24 = vpop.permute.xlu1 %336 }
  0xef   : > { %v367_v25 = vpop.permute.xlu1 %366 }
  0xf3   : > { %v339_v26 = vpop.permute.xlu1 %338 }
  0xf4   : > { %v5520_v27 = vpop.permute.xlu0 %361  ;;  %v343_v58 = vsel %vm342_vm1, %v337_v24, %v339_v26  ;;  %v344_v59 = vsel %vm342_vm1, %v339_v26, %v337_v24 }
  0xf5   : > { %v357_v43 = vmul.f32 %v350_v50, %v344_v59  ;;  %v358_v24 = vmul.f32 %v354_v54, %v343_v58  ;;  %v532_v58 = vld [vmem:[#allocation5 + $0x7] ss:$8 sm:$0x3] }
  0xf7   : > { %v365_v50 = vmul.f32 %v5520_v27, %v358_v24 }
  0xf9   : > { %v390_v29 = vpop.permute.xlu0 %389 }
  0xfd   : > { %v369_v31 = vpop.permute.xlu0 %368 }
  0xfe   : > { %v371_v51 = vsel %vm370_vm0, %v367_v25, %v369_v31  ;;  %v372_v52 = vsel %vm370_vm0, %v369_v31, %v367_v25  ;;  %v439_v25 = vrot.slane %v434_v53, %v5534_v41  ;;  %v443_v31 = vrot.slane %v434_v53, %v5537_v44 }
  0xff   : > { %v386_v62 = vmul.f32 %v379_v47, %v372_v52  ;;  %v387_v63 = vmul.f32 %v383_v48, %v371_v51  ;;  %v477_v52 = vrot.slane %v472_v23, %v5534_v41  ;;  %v481_v53 = vrot.slane %v472_v23, %v5537_v44 }
 0x100   : > { %v5522_v28 = vpop.permute.xlu1 %419 }
 0x101   : > { %v397_v35 = vpop.permute.xlu0 %396  ;;  %v393_v47 = vmul.f32 %v390_v29, %v387_v63 }
 0x104   : > { %v399_v30 = vpop.permute.xlu1 %398 }
 0x105   : > { %v5527_v38 = vpop.permute.xlu0 %449  ;;  %v401_v60 = vsel %vm400_vm2, %v397_v35, %v399_v30  ;;  %v402_v61 = vsel %vm400_vm2, %v399_v30, %v397_v35  ;;  %v392_v35 = vmul.f32 %v390_v29, %v386_v62  ;;  %v395_v62 = vadd.f32 %v393_v47, %v365_v50 }
 0x106   : > { %v416_v26 = vmul.f32 %v409_v55, %v402_v61  ;;  %v417_v46 = vmul.f32 %v413_v56, %v401_v60  ;;  %v511_v60 = vrot.slane %v502_v34, %v5537_v44 }
 0x108   : > { %v427_v32 = vpop.permute.xlu1 %426  ;;  %v422_v54 = vmul.f32 %v5522_v28, %v416_v26  ;;  %v423_v55 = vmul.f32 %v5522_v28, %v417_v46 }
 0x10a   : > { %v458_v49 = vpop.permute.xlu0 %457 }
 0x10b   : > { %v460_v24 = vmul.f32 %v458_v49, %v5443_v3  ;;  %v461_v26 = vmul.f32 %v458_v49, %v5453_v5 }
 0x10c   : > { %v429_v36 = vpop.permute.xlu1 %428 }
 0x10d   : > { %v431_v33 = vsel %vm430_vm3, %v427_v32, %v429_v36  ;;  %v432_v42 = vsel %vm430_vm3, %v429_v36, %v427_v32  ;;  %v507_v32 = vrot.slane %v502_v34, %v5534_v41  ;;  %v364_v36 = vmul.f32 %v5520_v27, %v357_v43 }
 0x10e   : > { %v467_v13 = vpop.permute.xlu0 %466  ;;  %v446_v48 = vmul.f32 %v439_v25, %v432_v42  ;;  %v447_v51 = vmul.f32 %v443_v31, %v431_v33  ;;  %v537_v31 = vrot.slane %v532_v58, %v5534_v41  ;;  %v425_v34 = vadd.f32 %v423_v55, %v395_v62 }
 0x10f   : > { %v394_v61 = vadd.f32 %v392_v35, %v364_v36 }
 0x110   : > { %v5529_v39 = vpop.permute.xlu1 %487  ;;  %v452_v27 = vmul.f32 %v5527_v38, %v446_v48  ;;  %v453_v63 = vmul.f32 %v5527_v38, %v447_v51  ;;  %v562_v51 = vld [vmem:[#allocation5 + $0x10] ss:$8 sm:$0x3] }
 0x111   : > { %v567_v5 = vrot.slane %v562_v51, %v5534_v41  ;;  %v571_v49 = vrot.slane %v562_v51, %v5537_v44  ;;  %v5648_v51 = vld [vmem:[#allocation7 + $0x4] sm:$0x3] }
 0x112   : > { %v495_v56 = vpop.permute.xlu0 %494  ;;  %v455_v35 = vadd.f32 %v453_v63, %v425_v34 }
 0x114   : > { %v465_v45 = vpop.permute.xlu1 %464 }
 0x115   : > { %v469_v59 = vsel %vm468_vm4, %v465_v45, %v467_v13  ;;  %v470_v23 = vsel %vm468_vm4, %v467_v13, %v465_v45  ;;  %v541_v13 = vrot.slane %v532_v58, %v5537_v44  ;;  %v424_v45 = vadd.f32 %v422_v54, %v394_v61 }
 0x116   : > { %v484_v33 = vmul.f32 %v477_v52, %v469_v59  ;;  %v485_v42 = vmul.f32 %v481_v53, %v470_v23  ;;  %v548_v36 = vpop.permute.xlu0 %547 }
 0x118   : > { %v5553_v57 = vpop.permute.xlu1 %517  ;;  %v490_v52 = vmul.f32 %v5529_v39, %v484_v33  ;;  %v491_v53 = vmul.f32 %v5529_v39, %v485_v42 }
 0x11b   : > { %v578_v61 = vpop.permute.xlu0 %577 }
 0x11c   : > { %v497_v30 = vpop.permute.xlu1 %496 }
 0x11d   : > { %v499_v28 = vsel %vm7335_vm5, %v495_v56, %v497_v30  ;;  %v500_v25 = vsel %vm7335_vm5, %v497_v30, %v495_v56  ;;  %v454_v30 = vadd.f32 %v452_v27, %v424_v45  ;;  %v463_v56 = vadd.f32 %v461_v26, %v455_v35 }
 0x11e   : > { %v514_v47 = vmul.f32 %v507_v32, %v499_v28  ;;  %v515_v48 = vmul.f32 %v511_v60, %v500_v25  ;;  %v7269_v35 = vmov 28   ;;  %vm1649_vm5 = vcmp.lt.s32.totalorder %v5531_v40, 46 }
 0x11f   : > { %v462_v55 = vadd.f32 %v460_v24, %v454_v30  ;;  %v493_v59 = vadd.f32 %v491_v53, %v463_v56  ;;  %v7270_v30 = vmov 27   ;;  %v5176_v56 = vmov 11  }
 0x120   : > { %v525_v29 = vpop.permute.xlu1 %524  ;;  %v520_v32 = vmul.f32 %v5553_v57, %v514_v47  ;;  %v7268_v47 = vmov 29  }
 0x121   : > { %v492_v58 = vadd.f32 %v490_v52, %v462_v55  ;;  %v5660_v52 = vld [vmem:[#allocation7 + $0xe] sm:$0xf] }
 0x123   : > { %v522_v63 = vadd.f32 %v520_v32, %v492_v58  ;;  %v5178_v58 = vmov 12  }
 0x124   : > { %v527_v43 = vpop.permute.xlu1 %526 }
 0x125   : > { %v529_v38 = vsel %vm7325_vm6, %v525_v29, %v527_v43  ;;  %v530_v46 = vsel %vm7325_vm6, %v527_v43, %v525_v29  ;;  %v521_v29 = vmul.f32 %v5553_v57, %v515_v48  ;;  %v586_v43 = vpop.permute.xlu0 %585  ;;  %v7263_v48 = vmov 32  }
 0x126   : > { %v544_v50 = vmul.f32 %v537_v31, %v529_v38  ;;  %v545_v3 = vmul.f32 %v541_v13, %v530_v46  ;;  %v5158_v38 = vmov 25   ;;  %v7262_v46 = vmov 26  }
 0x127   : > { %v523_v28 = vadd.f32 %v521_v29, %v493_v59  ;;  %vm7326_vm6 = vcmp.lt.s32.totalorder %v5531_v40, 94 }
 0x128   : > { %v555_v54 = vpop.permute.xlu1 %554  ;;  %v550_v23 = vmul.f32 %v548_v36, %v544_v50  ;;  %v551_v60 = vmul.f32 %v548_v36, %v545_v3  ;;  %v5654_v36 = vld [vmem:[#allocation7 + $0x6] sm:$0x3] }
 0x129   : > { %v5671_v53 = vpop.permute.xlu0 %761 }
 0x12a   : > { %v552_v13 = vadd.f32 %v550_v23, %v522_v63  ;;  %v553_v45 = vadd.f32 %v551_v60, %v523_v28 }
 0x12c   : > { %v557_v39 = vpop.permute.xlu1 %556 }
 0x12d   : > { %v559_v62 = vsel %vm7324_vm7, %v555_v54, %v557_v39  ;;  %v560_v27 = vsel %vm7324_vm7, %v557_v39, %v555_v54  ;;  %v5677_v50 = vpop.permute.xlu0 %791  ;;  %vm1020_vm7 = vcmp.lt.s32.totalorder %v5531_v40, 100 }
 0x12e   : > { %v574_v25 = vmul.f32 %v567_v5, %v559_v62  ;;  %v575_v31 = vmul.f32 %v571_v49, %v560_v27  ;;  %v7271_v5 = vmov 23   ;;  %v7267_v49 = vmov 30  }
 0x12f   : > { %v5180_v62 = vmov 13  }
 0x130   : > { %v580_v34 = vmul.f32 %v578_v61, %v574_v25  ;;  %v581_v57 = vmul.f32 %v578_v61, %v575_v31 }
 0x131   : > { %v5682_v3 = vpop.permute.xlu0 %821 }
 0x132   : > { %v582_v33 = vadd.f32 %v580_v34, %v552_v13  ;;  %v583_v42 = vadd.f32 %v581_v57, %v553_v45  ;;  %v7265_v34 = vmov 31  }
 0x134   : > { %v5609_v24 = vadd.f32 %v586_v43, %v582_v33  ;;  %v5611_v26 = vadd.f32 %v586_v43, %v583_v42  ;;  %v7264_v42 = vmov 33  }
 0x135   : > { %v5690_v54 = vpop.permute.xlu0 %851 }
 0x136   : > { %7354 = vst [vmem:[#allocation17_spill] sm:$0xff] %v5609_v24  ;;  %7355 = vst [vmem:[#allocation18_spill] sm:$0xff] %v5611_v26  ;;  %592 = vrot.lane.b32.xlu1 %v5611_v26, %s5152_s29  ;;  %590 = vrot.lane.b32.xlu0 %v5609_v24, %s5152_s29  ;;  %s5159_s29 = smov 60  }
 0x13a   : > { %620 = vrot.lane.b32.xlu1 %v5611_v26, %s5153_s15  ;;  %618 = vrot.lane.b32.xlu0 %v5609_v24, %s5153_s15  ;;  %s5164_s15 = smov 34  }
 0x13e   : > { %648 = vrot.lane.b32.xlu1 %v5609_v24, %s5154_s17  ;;  %958 = vrot.lane.b32.xlu0 %v5611_v26, %s5155_s8 }
 0x142   : > { %650 = vrot.lane.b32.xlu1 %v5611_v26, %s5154_s17  ;;  %986 = vrot.lane.b32.xlu0 %v5609_v24, %s5156_s25  ;;  %s5167_s17 = smov 32  }
 0x146   : > { %678 = vrot.lane.b32.xlu1 %v5609_v24, %s5157_s13  ;;  %1039 = vperm.xlu0 %4616, %v5440_v2  }
 0x14a   : > { %680 = vrot.lane.b32.xlu1 %v5611_v26, %s5157_s13  ;;  %4617 = vset.pattern.permute.xlu0 %v5158_v38  ;;  %s5162_s13 = smov 36  }
 0x14b   : > { %1069 = vperm.xlu0 %4617, %v5440_v2  }
 0x14e   : > { %708 = vrot.lane.b32.xlu1 %v5609_v24, %s5159_s29 }
 0x14f   : > { %4618 = vset.pattern.permute.xlu0 %v7262_v46 }
 0x150   : > { %1099 = vperm.xlu0 %4618, %v5440_v2  }
 0x152   : > { %710 = vrot.lane.b32.xlu1 %v5611_v26, %s5159_s29  ;;  %s5168_s29 = smov 30  }
 0x154   : > { %4619 = vset.pattern.permute.xlu0 %v7270_v30 }
 0x155   : > { %1129 = vperm.xlu0 %4619, %v5440_v2  }
 0x156   : > { %738 = vrot.lane.b32.xlu1 %v5609_v24, %s5162_s13 }
 0x159   : > { %4620 = vset.pattern.permute.xlu0 %v7269_v35 }
 0x15a   : > { %740 = vrot.lane.b32.xlu1 %v5611_v26, %s5162_s13  ;;  %1159 = vperm.xlu0 %4620, %v5440_v2   ;;  %s5169_s13 = smov 28  }
 0x15e   : > { %768 = vrot.lane.b32.xlu1 %v5609_v24, %s5164_s15  ;;  %4621 = vset.pattern.permute.xlu0 %v7268_v47 }
 0x15f   : > { %1182 = vperm.xlu0 %4621, %v5440_v2  }
 0x162   : > { %770 = vrot.lane.b32.xlu1 %v5611_v26, %s5164_s15 }
 0x163   : > { %4624 = vset.pattern.permute.xlu0 %v7263_v48 }
 0x164   : > { %1251 = vperm.xlu0 %4624, %v5440_v2  }
 0x166   : > { %798 = vrot.lane.b32.xlu1 %v5609_v24, %s5167_s17 }
 0x168   : > { %4627 = vset.pattern.permute.xlu0 %v7276_v0 }
 0x169   : > { %1289 = vperm.xlu0 %4627, %v5648_v51  }
 0x16a   : > { %800 = vrot.lane.b32.xlu1 %v5611_v26, %s5167_s17 }
 0x16d   : > { %4630 = vset.pattern.permute.xlu0 %v7281_v4 }
 0x16e   : > { %828 = vrot.lane.b32.xlu1 %v5609_v24, %s5168_s29  ;;  %1334 = vperm.xlu0 %4630, %v5654_v36  }
 0x172   : > { %830 = vrot.lane.b32.xlu1 %v5611_v26, %s5168_s29  ;;  %4636 = vset.pattern.permute.xlu0 %v5123_v1 }
 0x173   : > { %1578 = vperm.xlu0 %4636, %v5660_v52  }
 0x176   : > { %858 = vrot.lane.b32.xlu1 %v5609_v24, %s5169_s13 }
 0x177   : > { %4637 = vset.pattern.permute.xlu0 %v5127_v6 }
 0x178   : > { %1382 = vperm.xlu0 %4637, %v5648_v51  }
 0x17a   : > { %860 = vrot.lane.b32.xlu1 %v5611_v26, %s5169_s13  ;;  %s7260_s13 = smov 96  }
 0x17c   : > { %1608 = vperm.xlu0 %4637, %v5660_v52  }
 0x17e   : > { %888 = vrot.lane.b32.xlu1 %v5609_v24, %s5170_s20 }
 0x180   : > { %4638 = vset.pattern.permute.xlu0 %v5131_v8 }
 0x181   : > { %1420 = vperm.xlu0 %4638, %v5654_v36  }
 0x182   : > { %890 = vrot.lane.b32.xlu1 %v5611_v26, %s5170_s20  ;;  %s5174_s20 = smov 100  }
 0x185   : > { %1638 = vperm.xlu0 %4638, %v5660_v52  }
 0x186   : > { %918 = vrot.lane.b32.xlu1 %v5609_v24, %s5171_s26 }
 0x189   : > { %4639 = vset.pattern.permute.xlu0 %v5129_v7  ;;  %v5698_v7 = vpop.permute.xlu0 %881 }
 0x18a   : > { %920 = vrot.lane.b32.xlu1 %v5611_v26, %s5171_s26  ;;  %1668 = vperm.xlu0 %4639, %v5660_v52  }
 0x18e   : > { %979 = vperm.xlu1 %4614, %v5440_v2   ;;  %4640 = vset.pattern.permute.xlu0 %v5135_v10  ;;  %v5705_v10 = vpop.permute.xlu0 %911 }
 0x18f   : > { %1698 = vperm.xlu0 %4640, %v5660_v52  }
 0x192   : > { %956 = vrot.lane.b32.xlu1 %v5609_v24, %s5155_s8 }
 0x193   : > { %4641 = vset.pattern.permute.xlu0 %v5133_v9  ;;  %4615 = vset.pattern.permute.xlu1 %v7271_v5  ;;  %v5708_v9 = vpop.permute.xlu1 %613 }
 0x194   : > { %1728 = vperm.xlu0 %4641, %v5660_v52  }
 0x196   : > { %1009 = vperm.xlu1 %4615, %v5440_v2  }
 0x197   : > { %v5717_v55 = vpop.permute.xlu1 %641 }
 0x198   : > { %4642 = vset.pattern.permute.xlu0 %v5136_v11  ;;  %v5713_v11 = vpop.permute.xlu0 %941 }
 0x199   : > { %1757 = vperm.xlu0 %4642, %v5660_v52  }
 0x19a   : > { %988 = vrot.lane.b32.xlu1 %v5611_v26, %s5156_s25  ;;  %s7329_s25 = smov 98  }
 0x19b   : > { %4622 = vset.pattern.permute.xlu1 %v7267_v49 }
 0x19d   : > { %4643 = vset.pattern.permute.xlu0 %v5137_v12  ;;  %v5722_v12 = vpop.permute.xlu0 %949 }
 0x19e   : > { %1016 = vrot.lane.b32.xlu1 %v5609_v24, %s5174_s20  ;;  %1787 = vperm.xlu0 %4643, %v5660_v52  }
 0x1a2   : > { %1018 = vrot.lane.b32.xlu1 %v5611_v26, %s5174_s20  ;;  %4644 = vset.pattern.permute.xlu0 %v5145_v18  ;;  %s7327_s20 = smov 94  }
 0x1a3   : > { %1816 = vperm.xlu0 %4644, %v5660_v52  }
 0x1a6   : > { %1046 = vrot.lane.b32.xlu1 %v5609_v24, %s7329_s25 }
 0x1a7   : > { %4645 = vset.pattern.permute.xlu0 %v5176_v56 }
 0x1a8   : > { %671 = vperm.xlu0 %4645, %v5440_v2   ;;  %v5725_v32 = vpop.permute.xlu1 %592  ;;  %v5729_v18 = vpop.permute.xlu0 %590 }
 0x1aa   : > { %1048 = vrot.lane.b32.xlu1 %v5611_v26, %s7329_s25  ;;  %s5187_s25 = smov 49  }
 0x1ac   : > { %1846 = vperm.xlu0 %4645, %v5660_v52   ;;  %v5732_v29 = vpop.permute.xlu1 %620  ;;  %v5738_v23 = vpop.permute.xlu0 %618 }
 0x1ae   : > { %1076 = vrot.lane.b32.xlu1 %v5609_v24, %s7260_s13 }
 0x1b0   : > { %4646 = vset.pattern.permute.xlu0 %v5178_v58  ;;  %v5736_v59 = vpop.permute.xlu1 %648  ;;  %v5748_v39 = vpop.permute.xlu0 %958  ;;  %v7266_v58 = vmov 35  }
 0x1b1   : > { %701 = vperm.xlu0 %4646, %v5440_v2  }
 0x1b2   : > { %1078 = vrot.lane.b32.xlu1 %v5611_v26, %s7260_s13  ;;  %s5181_s13 = smov 92  }
 0x1b4   : > { %v5743_v60 = vpop.permute.xlu1 %650  ;;  %v5757_v63 = vpop.permute.xlu0 %986 }
 0x1b5   : > { %1875 = vperm.xlu0 %4646, %v5660_v52  }
 0x1b6   : > { %1106 = vrot.lane.b32.xlu1 %v5609_v24, %s7327_s20 }
 0x1b8   : > { %v5750_v61 = vpop.permute.xlu1 %678 }
 0x1b9   : > { %4647 = vset.pattern.permute.xlu0 %v5180_v62 }
 0x1ba   : > { %1108 = vrot.lane.b32.xlu1 %v5611_v26, %s7327_s20  ;;  %731 = vperm.xlu0 %4647, %v5440_v2   ;;  %s5186_s20 = smov 50  }
 0x1bc   : > { %v5755_v27 = vpop.permute.xlu1 %680 }
 0x1be   : > { %1136 = vrot.lane.b32.xlu1 %v5609_v24, %s5181_s13 }
 0x1c0   : > { %v5760_v28 = vpop.permute.xlu1 %708 }
 0x1c1   : > { %v5762_v25 = vpop.permute.xlu0 %1039 }
 0x1c2   : > { %7356 = vst [vmem:[#allocation19_spill] sm:$0xff] %v5762_v25  ;;  %1138 = vrot.lane.b32.xlu1 %v5611_v26, %s5181_s13  ;;  %v5918_v25 = vld [vmem:[#allocation5 + $0x21] ss:$8 sm:$0x3]  ;;  %s5185_s13 = smov 51  }
 0x1c4   : > { %v5765_v31 = vpop.permute.xlu1 %710 }
 0x1c6   : > { %1205 = vperm.xlu1 %4622, %v5440_v2   ;;  %v5768_v13 = vpop.permute.xlu0 %1069 }
 0x1c7   : > { %7357 = vst [vmem:[#allocation20_spill] sm:$0xff] %v5768_v13  ;;  %v5959_v13 = vld [vmem:[#allocation5 + $0x24] ss:$8 sm:$0x3] }
 0x1c8   : > { %v5770_v45 = vpop.permute.xlu1 %738 }
 0x1ca   : > { %4623 = vset.pattern.permute.xlu1 %v7265_v34 }
 0x1cb   : > { %1228 = vperm.xlu1 %4623, %v5440_v2   ;;  %v5774_v57 = vpop.permute.xlu0 %1099 }
 0x1cc   : > { %7358 = vst [vmem:[#allocation21_spill] sm:$0xff] %v5774_v57  ;;  %v5776_v33 = vpop.permute.xlu1 %740  ;;  %v5911_v57 = vmul.f32 %v5722_v12, %v5611_v26 }
 0x1ce   : > { %7382 = vst [vmem:[#allocation45_spill] sm:$0xff] %v5911_v57  ;;  %v5946_v57 = vsel %vm594_vm8, %v5729_v18, %v5725_v32 }
 0x1cf   : > { %4625 = vset.pattern.permute.xlu1 %v7264_v42  ;;  %7386 = vst [vmem:[#allocation49_spill] sm:$0xff] %v5946_v57 }
 0x1d0   : > { %1274 = vperm.xlu1 %4625, %v5440_v2   ;;  %v5780_v43 = vpop.permute.xlu0 %1129  ;;  %v5782_v56 = vpop.permute.xlu1 %768 }
 0x1d1   : > { %7359 = vst [vmem:[#allocation22_spill] sm:$0xff] %v5780_v43 }
 0x1d4   : > { %4626 = vset.pattern.permute.xlu1 %v7266_v58  ;;  %v5785_v62 = vpop.permute.xlu1 %770 }
 0x1d5   : > { %1282 = vperm.xlu1 %4626, %v5440_v2   ;;  %v5788_v46 = vpop.permute.xlu0 %1159 }
 0x1d6   : > { %7360 = vst [vmem:[#allocation23_spill] sm:$0xff] %v5788_v46  ;;  %v5907_v46 = vmul.f32 %v5722_v12, %v5609_v24  ;;  %v5928_v12 = vsel %vm622_vm9, %v5738_v23, %v5732_v29  ;;  %v5940_v24 = vld [vmem:[#allocation5 + $0x23] ss:$8 sm:$0x3] }
 0x1d7   : > { %7384 = vst [vmem:[#allocation47_spill] sm:$0xff] %v5928_v12 }
 0x1d8   : > { %v5790_v48 = vpop.permute.xlu1 %798  ;;  %7381 = vst [vmem:[#allocation44_spill] sm:$0xff] %v5907_v46 }
 0x1d9   : > { %4628 = vset.pattern.permute.xlu1 %v7276_v0 }
 0x1da   : > { %1304 = vperm.xlu1 %4628, %v5654_v36   ;;  %v5794_v42 = vpop.permute.xlu0 %1182 }
 0x1db   : > { %7361 = vst [vmem:[#allocation24_spill] sm:$0xff] %v5794_v42  ;;  %v5886_v42 = vld [vmem:[#allocation5 + $0x17] ss:$8 sm:$0x3] }
 0x1dc   : > { %v5796_v34 = vpop.permute.xlu1 %800 }
 0x1de   : > { %4629 = vset.pattern.permute.xlu1 %v7281_v4 }
 0x1df   : > { %1318 = vperm.xlu1 %4629, %v5648_v51   ;;  %v5800_v58 = vpop.permute.xlu0 %1251 }
 0x1e0   : > { %7362 = vst [vmem:[#allocation25_spill] sm:$0xff] %v5800_v58  ;;  %v5802_v49 = vpop.permute.xlu1 %828  ;;  %v5883_v58 = vld [vmem:[#allocation5 + $0x16] ss:$8 sm:$0x3] }
 0x1e3   : > { %4631 = vset.pattern.permute.xlu1 %v5123_v1 }
 0x1e4   : > { %1350 = vperm.xlu1 %4631, %v5648_v51   ;;  %v5806_v2 = vpop.permute.xlu0 %1289  ;;  %v5808_v47 = vpop.permute.xlu1 %830 }
 0x1e5   : > { %7363 = vst [vmem:[#allocation26_spill] sm:$0xff] %v5806_v2 }
 0x1e8   : > { %1366 = vperm.xlu1 %4631, %v5654_v36   ;;  %v5811_v35 = vpop.permute.xlu1 %858 }
 0x1e9   : > { %v5813_v30 = vpop.permute.xlu0 %1334 }
 0x1ea   : > { %7364 = vst [vmem:[#allocation27_spill] sm:$0xff] %v5813_v30  ;;  %v5870_v30 = vld [vmem:[#allocation5 + $0x14] ss:$8 sm:$0x3] }
 0x1ec   : > { %4632 = vset.pattern.permute.xlu1 %v5127_v6  ;;  %v5816_v5 = vpop.permute.xlu1 %860 }
 0x1ed   : > { %1398 = vperm.xlu1 %4632, %v5654_v36  }
 0x1ee   : > { %v5819_v22 = vpop.permute.xlu0 %1578 }
 0x1ef   : > { %7365 = vst [vmem:[#allocation28_spill] sm:$0xff] %v5819_v22 }
 0x1f0   : > { %v5823_v1 = vpop.permute.xlu1 %888 }
 0x1f1   : > { %4633 = vset.pattern.permute.xlu1 %v5131_v8 }
 0x1f2   : > { %1414 = vperm.xlu1 %4633, %v5648_v51  }
 0x1f3   : > { %v5825_v21 = vpop.permute.xlu0 %1382 }
 0x1f4   : > { %7366 = vst [vmem:[#allocation29_spill] sm:$0xff] %v5825_v21  ;;  %v5831_v6 = vpop.permute.xlu1 %890  ;;  %v5868_v21 = vld [vmem:[#allocation5 + $0x13] ss:$8 sm:$0x3] }
 0x1f6   : > { %4634 = vset.pattern.permute.xlu1 %v7276_v0 }
 0x1f7   : > { %v5828_v20 = vpop.permute.xlu0 %1608  ;;  %1520 = vperm.xlu1 %4634, %v5660_v52  }
 0x1f8   : > { %7367 = vst [vmem:[#allocation30_spill] sm:$0xff] %v5828_v20  ;;  %v5837_v8 = vpop.permute.xlu1 %918 }
 0x1fb   : > { %4635 = vset.pattern.permute.xlu1 %v7281_v4 }
 0x1fc   : > { %v5834_v36 = vpop.permute.xlu0 %1420  ;;  %1548 = vperm.xlu1 %4635, %v5660_v52   ;;  %v5842_v19 = vpop.permute.xlu1 %920 }
 0x1fd   : > { %7368 = vst [vmem:[#allocation31_spill] sm:$0xff] %v5834_v36 }
 0x200   : > { %v5839_v51 = vpop.permute.xlu0 %1638  ;;  %4659 = vset.pattern.permute.xlu1 %v5158_v38 }
 0x201   : > { %7369 = vst [vmem:[#allocation32_spill] sm:$0xff] %v5839_v51 }
 0x205   : > { %v5844_v0 = vpop.permute.xlu0 %1668 }
 0x206   : > { %7370 = vst [vmem:[#allocation33_spill] sm:$0xff] %v5844_v0  ;;  %v598_v0 = vld [vmem:[#allocation5 + $0x11] ss:$8 sm:$0x3] }
 0x209   : > { %v5846_v17 = vpop.permute.xlu1 %979 }
 0x20a   : > { %7371 = vst [vmem:[#allocation34_spill] sm:$0xff] %v5846_v17  ;;  %v5848_v16 = vpop.permute.xlu0 %1698  ;;  %v5920_v17 = vld [vmem:[#allocation5 + $0x22] ss:$8 sm:$0x3] }
 0x20b   : > { %7372 = vst [vmem:[#allocation35_spill] sm:$0xff] %v5848_v16  ;;  %v626_v16 = vld [vmem:[#allocation5 + $0x12] ss:$8 sm:$0x3] }
 0x20c   : > { %v631_v37 = vrot.slane %v626_v16, %v5534_v41 }
 0x20d   : > { %v5850_v15 = vpop.permute.xlu1 %956 }
 0x20f   : > { %v5852_v4 = vpop.permute.xlu0 %1728 }
 0x210   : > { %7373 = vst [vmem:[#allocation36_spill] sm:$0xff] %v5852_v4  ;;  %v607_v4 = vrot.slane %v598_v0, %v5537_v44 }
 0x211   : > { %v5854_v14 = vpop.permute.xlu1 %1009 }
 0x212   : > { %7374 = vst [vmem:[#allocation37_spill] sm:$0xff] %v5854_v14  ;;  %v5934_v14 = vsel %vm622_vm9, %v5732_v29, %v5738_v23  ;;  %v5952_v29 = vsel %vm594_vm8, %v5725_v32, %v5729_v18  ;;  %v5971_v23 = vld [vmem:[#allocation5 + $0x26] ss:$8 sm:$0x3]  ;;  %vm832_vm8 = vcmp.lt.s32.totalorder %v5531_v40, 30  ;;  %vm862_vm9 = vcmp.lt.s32.totalorder %v5531_v40, 28 }
 0x213   : > { %7385 = vst [vmem:[#allocation48_spill] sm:$0xff] %v5934_v14  ;;  %7387 = vst [vmem:[#allocation50_spill] sm:$0xff] %v5952_v29  ;;  %v638_v26 = vmul.f32 %v631_v37, %v5934_v14  ;;  %v6013_v37 = vsel %vm682_vm11, %v5750_v61, %v5755_v27  ;;  %v6019_v14 = vsel %vm682_vm11, %v5755_v27, %v5750_v61  ;;  %vm922_vm11 = vcmp.lt.s32.totalorder %v5531_v40, 2 }
 0x214   : > { %v5856_v52 = vpop.permute.xlu0 %1757  ;;  %7391 = vst [vmem:[#allocation54_spill] sm:$0xff] %v6013_v37  ;;  %7392 = vst [vmem:[#allocation55_spill] sm:$0xff] %v6019_v14  ;;  %v6050_v61 = vsel %vm712_vm12, %v5760_v28, %v5765_v31 }
 0x215   : > { %7375 = vst [vmem:[#allocation38_spill] sm:$0xff] %v5856_v52  ;;  %v5858_v20 = vpop.permute.xlu1 %988  ;;  %v603_v52 = vrot.slane %v598_v0, %v5534_v41 }
 0x217   : > { %v610_v18 = vmul.f32 %v603_v52, %v5952_v29  ;;  %v6044_v29 = vld [vmem:[#allocation5 + $0x31] ss:$8 sm:$0x3] }
 0x219   : > { %v5860_v51 = vpop.permute.xlu0 %1787  ;;  %v5862_v38 = vpop.permute.xlu1 %1016 }
 0x21a   : > { %7376 = vst [vmem:[#allocation39_spill] sm:$0xff] %v5860_v51  ;;  %7377 = vst [vmem:[#allocation40_spill] sm:$0xff] %v5862_v38  ;;  %v5877_v51 = vld [vmem:[#allocation5 + $0x15] ss:$8 sm:$0x3] }
 0x21d   : > { %v5864_v22 = vpop.permute.xlu1 %1018 }
 0x21e   : > { %7378 = vst [vmem:[#allocation41_spill] sm:$0xff] %v5864_v22  ;;  %v5866_v36 = vpop.permute.xlu0 %1816  ;;  %v611_v22 = vmul.f32 %v607_v4, %v5946_v57  ;;  %v6003_v4 = vsel %vm652_vm10, %v5743_v60, %v5736_v59 }
 0x21f   : > { %7379 = vst [vmem:[#allocation42_spill] sm:$0xff] %v5866_v36  ;;  %v635_v36 = vrot.slane %v626_v16, %v5537_v44  ;;  %v5897_v16 = vld [vmem:[#allocation5 + $0x20] ss:$8 sm:$0x3]  ;;  %7390 = vst [vmem:[#allocation53_spill] sm:$0xff] %v6003_v4 }
 0x220   : > { %v617_v57 = vmul.f32 %v5708_v9, %v611_v22  ;;  %v6056_v22 = vsel %vm712_vm12, %v5765_v31, %v5760_v28  ;;  %v744_v28 = vsel %vm742_vm13, %v5776_v33, %v5770_v45  ;;  %vm7336_vm12 = vcmp.lt.s32.totalorder %v5531_v40, 126 }
 0x221   : > { %v5875_v2 = vpop.permute.xlu1 %1046  ;;  %v639_v38 = vmul.f32 %v635_v36, %v5928_v12  ;;  %v644_v36 = vmul.f32 %v5717_v55, %v638_v26  ;;  %v7393_v26 = vrot.slane %v5868_v21, %v5534_v41 }
 0x222   : > { %7380 = vst [vmem:[#allocation43_spill] sm:$0xff] %v5875_v2  ;;  %v5991_v2 = vld [vmem:[#allocation5 + $0x30] ss:$8 sm:$0x3] }
 0x223   : > { %v5892_v43 = vpop.permute.xlu0 %671  ;;  %v645_v12 = vmul.f32 %v5717_v55, %v639_v38  ;;  %v7394_v55 = vrot.slane %v5868_v21, %v5537_v44  ;;  %v7395_v21 = vrot.slane %v5870_v30, %v5534_v41 }
 0x225   : > { %v5922_v0 = vpop.permute.xlu1 %1048 }
 0x226   : > { %7383 = vst [vmem:[#allocation46_spill] sm:$0xff] %v5922_v0  ;;  %v5997_v0 = vsel %vm652_vm10, %v5736_v59, %v5743_v60  ;;  %v616_v59 = vmul.f32 %v5708_v9, %v610_v18  ;;  %v668_v60 = vmul.f32 %v7393_v26, %v6003_v4  ;;  %vm892_vm10 = vcmp.lt.s32.totalorder %v5531_v40, 4 }
 0x227   : > { %v5961_v46 = vpop.permute.xlu0 %1846  ;;  %7389 = vst [vmem:[#allocation52_spill] sm:$0xff] %v5997_v0  ;;  %v669_v38 = vmul.f32 %v7394_v55, %v5997_v0  ;;  %v698_v9 = vmul.f32 %v7395_v21, %v6019_v14  ;;  %v7396_v18 = vrot.slane %v5870_v30, %v5537_v44  ;;  %v743_v55 = vsel %vm742_vm13, %v5770_v45, %v5776_v33 }
 0x228   : > { %7388 = vst [vmem:[#allocation51_spill] sm:$0xff] %v5961_v46  ;;  %v5980_v46 = vld [vmem:[#allocation5 + $0x27] ss:$8 sm:$0x3]  ;;  %v674_v31 = vmul.f32 %v5892_v43, %v668_v60  ;;  %v646_v30 = vadd.f32 %v644_v36, %v616_v59  ;;  %v773_v45 = vsel %vm772_vm14, %v5782_v56, %v5785_v62  ;;  %v774_v33 = vsel %vm772_vm14, %v5785_v62, %v5782_v56 }
 0x229   : > { %v5982_v32 = vpop.permute.xlu1 %1076  ;;  %v699_v26 = vmul.f32 %v7396_v18, %v6013_v37  ;;  %v675_v4 = vmul.f32 %v5892_v43, %v669_v38  ;;  %v647_v18 = vadd.f32 %v645_v12, %v617_v57  ;;  %v7397_v12 = vrot.slane %v5883_v58, %v5534_v41 }
 0x22a   : > { %v7398_v59 = vrot.slane %v5883_v58, %v5537_v44  ;;  %v7399_v38 = vrot.slane %v5877_v51, %v5534_v41  ;;  %v7400_v14 = vrot.slane %v5877_v51, %v5537_v44  ;;  %v803_v62 = vsel %vm802_vm15, %v5790_v48, %v5796_v34 }
 0x22b   : > { %v758_v36 = vmul.f32 %v7397_v12, %v744_v28  ;;  %v804_v58 = vsel %vm802_vm15, %v5796_v34, %v5790_v48  ;;  %v7402_v51 = vrot.slane %v5886_v42, %v5537_v44  ;;  %v833_v28 = vsel %vm832_vm8, %v5802_v49, %v5808_v47 }
 0x22c   : > { %v702_v52 = vpop.permute.xlu0 %701  ;;  %v759_v60 = vmul.f32 %v7398_v59, %v743_v55  ;;  %v728_v37 = vmul.f32 %v7399_v38, %v6056_v22  ;;  %v729_v56 = vmul.f32 %v7400_v14, %v6050_v61  ;;  %v834_v48 = vsel %vm832_vm8, %v5808_v47, %v5802_v49 }
 0x22d   : > { %v6032_v27 = vpop.permute.xlu1 %1078  ;;  %v704_v43 = vmul.f32 %v702_v52, %v698_v9  ;;  %v705_v57 = vmul.f32 %v702_v52, %v699_v26  ;;  %v676_v52 = vadd.f32 %v674_v31, %v646_v30  ;;  %v677_v9 = vadd.f32 %v675_v4, %v647_v18 }
 0x22e   : > { %v7401_v26 = vrot.slane %v5886_v42, %v5534_v41  ;;  %v789_v14 = vmul.f32 %v7402_v51, %v773_v45  ;;  %v764_v45 = vmul.f32 %v5671_v53, %v758_v36  ;;  %v7403_v12 = vrot.slane %v5897_v16, %v5534_v41 }
 0x22f   : > { %v706_v31 = vadd.f32 %v704_v43, %v676_v52  ;;  %v707_v30 = vadd.f32 %v705_v57, %v677_v9  ;;  %v7404_v47 = vrot.slane %v5897_v16, %v5537_v44  ;;  %vm990_vm13 = vcmp.lt.s32.totalorder %v5531_v40, 124 }
 0x230   : > { %v6077_v21 = vpop.permute.xlu0 %1875  ;;  %v788_v55 = vmul.f32 %v7401_v26, %v774_v33  ;;  %v765_v33 = vmul.f32 %v5671_v53, %v759_v60  ;;  %v818_v59 = vmul.f32 %v7403_v12, %v804_v58  ;;  %v864_v53 = vsel %vm862_vm9, %v5816_v5, %v5811_v35 }
 0x231   : > { %v6084_v0 = vpop.permute.xlu1 %1106  ;;  %v819_v49 = vmul.f32 %v7404_v47, %v803_v62  ;;  %v795_v60 = vmul.f32 %v5677_v50, %v789_v14  ;;  %v7405_v16 = vrot.slane %v5918_v25, %v5534_v41  ;;  %v7408_v14 = vrot.slane %v5920_v17, %v5537_v44 }
 0x232   : > { %v794_v36 = vmul.f32 %v5677_v50, %v788_v55  ;;  %v894_v50 = vsel %vm892_vm10, %v5831_v6, %v5823_v1  ;;  %v7407_v55 = vrot.slane %v5920_v17, %v5534_v41  ;;  %v7410_v17 = vrot.slane %v5940_v24, %v5537_v44 }
 0x233   : > { %v848_v38 = vmul.f32 %v7405_v16, %v834_v48  ;;  %v825_v26 = vmul.f32 %v5682_v3, %v819_v49  ;;  %v7411_v49 = vrot.slane %v5959_v13, %v5534_v41 }
 0x234   : > { %v878_v51 = vmul.f32 %v7407_v55, %v864_v53  ;;  %v7412_v53 = vrot.slane %v5959_v13, %v5537_v44 }
 0x235   : > { %v732_v34 = vpop.permute.xlu0 %731  ;;  %v6131_v4 = vpop.permute.xlu1 %1108 }
 0x236   : > { %v734_v18 = vmul.f32 %v732_v34, %v728_v37  ;;  %v735_v42 = vmul.f32 %v732_v34, %v729_v56  ;;  %v863_v37 = vsel %vm862_vm9, %v5811_v35, %v5816_v5  ;;  %v7406_v56 = vrot.slane %v5918_v25, %v5537_v44  ;;  %v6169_v5 = vld [vmem:[#allocation5 + $0x32] ss:$8 sm:$0x3] }
 0x237   : > { %v893_v35 = vsel %vm892_vm10, %v5823_v1, %v5831_v6  ;;  %v824_v25 = vmul.f32 %v5682_v3, %v818_v59  ;;  %vm7334_vm9 = vcmp.lt.s32.totalorder %v5531_v40, 98  ;;  %v923_v1 = vsel %vm922_vm11, %v5837_v8, %v5842_v19  ;;  %v6203_v59 = vld [vmem:[#allocation5 + $0x33] ss:$8 sm:$0x3] }
 0x238   : > { %v736_v43 = vadd.f32 %v734_v18, %v706_v31  ;;  %v737_v57 = vadd.f32 %v735_v42, %v707_v30  ;;  %v849_v62 = vmul.f32 %v7406_v56, %v833_v28  ;;  %v879_v28 = vmul.f32 %v7408_v14, %v863_v37 }
 0x239   : > { %v6159_v58 = vpop.permute.xlu1 %1136  ;;  %v924_v3 = vsel %vm922_vm11, %v5842_v19, %v5837_v8  ;;  %v7409_v34 = vrot.slane %v5940_v24, %v5534_v41  ;;  %v909_v30 = vmul.f32 %v7410_v17, %v893_v35  ;;  %vm7333_vm10 = vcmp.lt.s32.totalorder %v5531_v40, 96 }
 0x23a   : > { %v766_v52 = vadd.f32 %v764_v45, %v736_v43  ;;  %v767_v9 = vadd.f32 %v765_v33, %v737_v57  ;;  %v1089_v18 = vrot.slane %v6169_v5, %v5534_v41  ;;  %v1093_v42 = vrot.slane %v6169_v5, %v5537_v44 }
 0x23b   : > { %v908_v31 = vmul.f32 %v7409_v34, %v894_v50  ;;  %v854_v19 = vmul.f32 %v5690_v54, %v848_v38  ;;  %v855_v8 = vmul.f32 %v5690_v54, %v849_v62  ;;  %v884_v24 = vmul.f32 %v5698_v7, %v878_v51 }
 0x23c   : > { %v796_v6 = vadd.f32 %v794_v36, %v766_v52  ;;  %v797_v48 = vadd.f32 %v795_v60, %v767_v9  ;;  %v885_v47 = vmul.f32 %v5698_v7, %v879_v28  ;;  %v938_v37 = vmul.f32 %v7411_v49, %v924_v3  ;;  %v7419_v3 = vld [vmem:[#allocation46_spill] sm:$0xff] }
 0x23d   : > { %v6199_v45 = vpop.permute.xlu1 %1138  ;;  %v939_v43 = vmul.f32 %v7412_v53, %v923_v1  ;;  %v961_v54 = vsel %vm7336_vm12, %v5850_v15, %v5748_v39  ;;  %v962_v57 = vsel %vm7336_vm12, %v5748_v39, %v5850_v15  ;;  %v914_v60 = vmul.f32 %v5705_v10, %v908_v31  ;;  %v7424_v53 = vld [vmem:[#allocation44_spill] sm:$0xff] }
 0x23e   : > { %v826_v33 = vadd.f32 %v824_v25, %v796_v6  ;;  %v827_v12 = vadd.f32 %v825_v26, %v797_v48  ;;  %v915_v16 = vmul.f32 %v5705_v10, %v909_v30  ;;  %v1119_v13 = vrot.slane %v6203_v59, %v5534_v41  ;;  %v7415_v25 = vld [vmem:[#allocation41_spill] sm:$0xff]  ;;  %v7416_v26 = vld [vmem:[#allocation40_spill] sm:$0xff]  ;;  %v7420_v6 = vld [vmem:[#allocation43_spill] sm:$0xff] }
 0x23f   : > { %v991_v56 = vsel %vm990_vm13, %v5757_v63, %v5858_v20  ;;  %v992_v15 = vsel %vm990_vm13, %v5858_v20, %v5757_v63  ;;  %v944_v10 = vmul.f32 %v5713_v11, %v938_v37  ;;  %v945_v35 = vmul.f32 %v5713_v11, %v939_v43  ;;  %v1144_v30 = vld [vmem:[#allocation5 + $0x34] ss:$8 sm:$0x3] }
 0x240   : > { %v856_v36 = vadd.f32 %v854_v19, %v826_v33  ;;  %v857_v7 = vadd.f32 %v855_v8, %v827_v12  ;;  %v7413_v50 = vrot.slane %v5971_v23, %v5534_v41  ;;  %v7414_v52 = vrot.slane %v5971_v23, %v5537_v44  ;;  %v7421_v19 = vld [vmem:[#allocation34_spill] sm:$0xff] }
 0x241   : > { %v6226_v38 = vpop.permute.xlu1 %1205  ;;  %v1021_v55 = vsel %vm1020_vm7, %v7416_v26, %v7415_v25  ;;  %v1022_v20 = vsel %vm1020_vm7, %v7415_v25, %v7416_v26  ;;  %v7417_v51 = vrot.slane %v5980_v46, %v5534_v41  ;;  %v7418_v23 = vrot.slane %v5980_v46, %v5537_v44 }
 0x242   : > { %v886_v39 = vadd.f32 %v884_v24, %v856_v36  ;;  %v887_v62 = vadd.f32 %v885_v47, %v857_v7  ;;  %v976_v5 = vmul.f32 %v7413_v50, %v961_v54  ;;  %v977_v9 = vmul.f32 %v7414_v52, %v962_v57  ;;  %v7425_v54 = vld [vmem:[#allocation45_spill] sm:$0xff]  ;;  %v1167_v52 = vld [vmem:[#allocation5 + $0x35] ss:$8 sm:$0x3] }
 0x243   : > { %v1006_v14 = vmul.f32 %v7417_v51, %v991_v56  ;;  %v1007_v28 = vmul.f32 %v7418_v23, %v992_v15  ;;  %v1123_v1 = vrot.slane %v6203_v59, %v5537_v44  ;;  %vm1140_vm13 = vcmp.lt.s32.totalorder %v5531_v40, 92  ;;  %v7428_v15 = vld [vmem:[#allocation37_spill] sm:$0xff] }
 0x244   : > { %v916_v63 = vadd.f32 %v914_v60, %v886_v39  ;;  %v917_v11 = vadd.f32 %v915_v16, %v887_v62  ;;  %v1051_v48 = vsel %vm7334_vm9, %v7420_v6, %v7419_v3  ;;  %v1052_v34 = vsel %vm7334_vm9, %v7419_v3, %v7420_v6 }
 0x245   : > { %v982_v8 = vmul.f32 %v7421_v19, %v976_v5  ;;  %v983_v33 = vmul.f32 %v7421_v19, %v977_v9  ;;  %v7422_v12 = vrot.slane %v5991_v2, %v5534_v41  ;;  %v7423_v24 = vrot.slane %v5991_v2, %v5537_v44  ;;  %v7429_v9 = vld [vmem:[#allocation19_spill] sm:$0xff] }
 0x246   : > { %v946_v31 = vadd.f32 %v944_v10, %v916_v63  ;;  %v947_v17 = vadd.f32 %v945_v35, %v917_v11  ;;  %v6269_v46 = vpop.permute.xlu1 %1228  ;;  %v1081_v49 = vsel %vm7333_vm10, %v5982_v32, %v6032_v27  ;;  %v1082_v37 = vsel %vm7333_vm10, %v6032_v27, %v5982_v32 }
 0x247   : > { %v1036_v59 = vmul.f32 %v7422_v12, %v1021_v55  ;;  %v1037_v47 = vmul.f32 %v7423_v24, %v1022_v20  ;;  %v7426_v36 = vrot.slane %v6044_v29, %v5534_v41  ;;  %v7427_v2 = vrot.slane %v6044_v29, %v5537_v44  ;;  %v7432_v24 = vld [vmem:[#allocation22_spill] sm:$0xff] }
 0x248   : > { %v954_v43 = vadd.f32 %v7424_v53, %v946_v31  ;;  %v955_v57 = vadd.f32 %v7425_v54, %v947_v17  ;;  %v1149_v16 = vrot.slane %v1144_v30, %v5534_v41  ;;  %v1153_v56 = vrot.slane %v1144_v30, %v5537_v44  ;;  %v1213_v17 = vld [vmem:[#allocation5 + $0x37] ss:$8 sm:$0x3] }
 0x249   : > { %v1066_v7 = vmul.f32 %v7426_v36, %v1051_v48  ;;  %v1067_v60 = vmul.f32 %v7427_v2, %v1052_v34  ;;  %v1012_v39 = vmul.f32 %v7428_v15, %v1006_v14  ;;  %v1013_v32 = vmul.f32 %v7428_v15, %v1007_v28  ;;  %v7431_v48 = vld [vmem:[#allocation21_spill] sm:$0xff] }
 0x24a   : > { %v984_v27 = vadd.f32 %v982_v8, %v954_v43  ;;  %v985_v62 = vadd.f32 %v983_v33, %v955_v57  ;;  %v1096_v10 = vmul.f32 %v1089_v18, %v1081_v49  ;;  %v1097_v35 = vmul.f32 %v1093_v42, %v1082_v37  ;;  %v7430_v42 = vld [vmem:[#allocation20_spill] sm:$0xff]  ;;  %v7433_v37 = vld [vmem:[#allocation49_spill] sm:$0xff]  ;;  %v7434_v43 = vld [vmem:[#allocation50_spill] sm:$0xff] }
 0x24b   : > { %v1111_v50 = vsel %vm7326_vm6, %v6084_v0, %v6131_v4  ;;  %v1112_v29 = vsel %vm7326_vm6, %v6131_v4, %v6084_v0  ;;  %v6307_v5 = vpop.permute.xlu1 %1274  ;;  %v1042_v25 = vmul.f32 %v7429_v9, %v1036_v59  ;;  %v1043_v26 = vmul.f32 %v7429_v9, %v1037_v47  ;;  %v1190_v4 = vld [vmem:[#allocation5 + $0x36] ss:$8 sm:$0x3] }
 0x24c   : > { %v1014_v55 = vadd.f32 %v1012_v39, %v984_v27  ;;  %v1015_v18 = vadd.f32 %v1013_v32, %v985_v62  ;;  %v1072_v20 = vmul.f32 %v7430_v42, %v1066_v7  ;;  %v1073_v63 = vmul.f32 %v7430_v42, %v1067_v60  ;;  %v1259_v7 = vld [vmem:[#allocation5 + $0x41] ss:$8 sm:$0x3]  ;;  %v7436_v39 = vld [vmem:[#allocation47_spill] sm:$0xff]  ;;  %v7437_v27 = vld [vmem:[#allocation48_spill] sm:$0xff] }
 0x24d   : > { %v1141_v11 = vsel %vm1140_vm13, %v6159_v58, %v6199_v45  ;;  %v1142_v0 = vsel %vm1140_vm13, %v6199_v45, %v6159_v58  ;;  %v1126_v23 = vmul.f32 %v1119_v13, %v1111_v50  ;;  %v1127_v28 = vmul.f32 %v1123_v1, %v1112_v29  ;;  %v1236_v13 = vld [vmem:[#allocation5 + $0x40] ss:$8 sm:$0x3]  ;;  %v7438_v29 = vld [vmem:[#allocation24_spill] sm:$0xff] }
 0x24e   : > { %v1044_v51 = vadd.f32 %v1042_v25, %v1014_v55  ;;  %v1045_v14 = vadd.f32 %v1043_v26, %v1015_v18  ;;  %v1172_v3 = vrot.slane %v1167_v52, %v5534_v41  ;;  %v1176_v6 = vrot.slane %v1167_v52, %v5537_v44  ;;  %v7439_v55 = vld [vmem:[#allocation52_spill] sm:$0xff]  ;;  %v7440_v42 = vld [vmem:[#allocation53_spill] sm:$0xff] }
 0x24f   : > { %v1102_v34 = vmul.f32 %v7431_v48, %v1096_v10  ;;  %v1103_v31 = vmul.f32 %v7431_v48, %v1097_v35  ;;  %v1156_v8 = vmul.f32 %v1149_v16, %v1141_v11  ;;  %v1157_v33 = vmul.f32 %v1153_v56, %v1142_v0  ;;  %v7435_v16 = vld [vmem:[#allocation23_spill] sm:$0xff] }
 0x250   : > { %v1074_v30 = vadd.f32 %v1072_v20, %v1044_v51  ;;  %v1075_v19 = vadd.f32 %v1073_v63, %v1045_v14  ;;  %v6325_v12 = vpop.permute.xlu1 %1282  ;;  %v1195_v58 = vrot.slane %v1190_v4, %v5534_v41  ;;  %v1199_v45 = vrot.slane %v1190_v4, %v5537_v44 }
 0x251   : > { %v1132_v47 = vmul.f32 %v7432_v24, %v1126_v23  ;;  %v1133_v49 = vmul.f32 %v7432_v24, %v1127_v28  ;;  %v1179_v53 = vmul.f32 %v1172_v3, %v7433_v37  ;;  %v1180_v54 = vmul.f32 %v1176_v6, %v7434_v43  ;;  %v7441_v23 = vld [vmem:[#allocation54_spill] sm:$0xff]  ;;  %v7442_v3 = vld [vmem:[#allocation55_spill] sm:$0xff] }
 0x252   : > { %v1104_v1 = vadd.f32 %v1102_v34, %v1074_v30  ;;  %v1105_v59 = vadd.f32 %v1103_v31, %v1075_v19  ;;  %v1218_v57 = vrot.slane %v1213_v17, %v5534_v41  ;;  %v1222_v36 = vrot.slane %v1213_v17, %v5537_v44 }
 0x253   : > { %v1162_v56 = vmul.f32 %v7435_v16, %v1156_v8  ;;  %v1163_v15 = vmul.f32 %v7435_v16, %v1157_v33  ;;  %v1202_v32 = vmul.f32 %v1195_v58, %v7436_v39  ;;  %v1203_v62 = vmul.f32 %v1199_v45, %v7437_v27  ;;  %v7443_v33 = vld [vmem:[#allocation25_spill] sm:$0xff] }
 0x254   : > { %v1134_v2 = vadd.f32 %v1132_v47, %v1104_v1  ;;  %v1135_v60 = vadd.f32 %v1133_v49, %v1105_v59  ;;  %v1241_v10 = vrot.slane %v1236_v13, %v5534_v41  ;;  %v1245_v35 = vrot.slane %v1236_v13, %v5537_v44  ;;  %v7444_v1 = vld [vmem:[#allocation16_spill] sm:$0xff] }
 0x255   : > { %v6341_v50 = vpop.permute.xlu1 %1304  ;;  %v1185_v52 = vmul.f32 %v7438_v29, %v1179_v53  ;;  %v1186_v9 = vmul.f32 %v7438_v29, %v1180_v54  ;;  %v1225_v18 = vmul.f32 %v1218_v57, %v7439_v55  ;;  %v1226_v20 = vmul.f32 %v1222_v36, %v7440_v42  ;;  %v7446_v53 = vld [vmem:[#allocation18_spill] sm:$0xff] }
 0x256   : > { %v1164_v25 = vadd.f32 %v1162_v56, %v1134_v2  ;;  %v1165_v26 = vadd.f32 %v1163_v15, %v1135_v60  ;;  %v1264_v63 = vrot.slane %v1259_v7, %v5534_v41  ;;  %v1268_v11 = vrot.slane %v1259_v7, %v5537_v44 }
 0x257   : > { %v1208_v51 = vmul.f32 %v6226_v38, %v1202_v32  ;;  %v1209_v14 = vmul.f32 %v6226_v38, %v1203_v62  ;;  %v1248_v28 = vmul.f32 %v1241_v10, %v7441_v23  ;;  %v1249_v6 = vmul.f32 %v1245_v35, %v7442_v3  ;;  %v7447_v62 = vld [vmem:[#allocation26_spill] sm:$0xff] }
 0x258   : > { %v1187_v0 = vadd.f32 %v1185_v52, %v1164_v25  ;;  %v1188_v4 = vadd.f32 %v1186_v9, %v1165_v26  ;;  %v1231_v31 = vmul.f32 %v6269_v46, %v1225_v18  ;;  %v1232_v17 = vmul.f32 %v6269_v46, %v1226_v20 }
 0x259   : > { %v1271_v19 = vmul.f32 %v1264_v63, %v6050_v61  ;;  %v1272_v8 = vmul.f32 %v1268_v11, %v6056_v22  ;;  %v1254_v58 = vmul.f32 %v7443_v33, %v1248_v28  ;;  %v1255_v45 = vmul.f32 %v7443_v33, %v1249_v6  ;;  %v7445_v22 = vld [vmem:[#allocation17_spill] sm:$0xff]  ;;  %v7448_v11 = vld [vmem:[#allocation27_spill] sm:$0xff] }
 0x25a   : > { %v1210_v48 = vadd.f32 %v1208_v51, %v1187_v0  ;;  %v1211_v34 = vadd.f32 %v1209_v14, %v1188_v4  ;;  %v1319_v30 = vpop.permute.xlu1 %1318  ;;  %v6360_v59 = vsub.s32 3, %v7444_v1  ;;  %v6363_v24 = vsub.s32 2, %v7444_v1  ;;  %v7449_v33 = vld [vmem:[#allocation29_spill] sm:$0xff] }
 0x25b   : > { %v1277_v47 = vmul.f32 %v6307_v5, %v1271_v19  ;;  %v1278_v46 = vmul.f32 %v6307_v5, %v1272_v8  ;;  %v1324_v37 = vrot.slane %v7445_v22, %v5537_v44  ;;  %v1328_v43 = vrot.slane %v7446_v53, %v5537_v44 }
 0x25c   : > { %v1233_v38 = vadd.f32 %v1231_v31, %v1210_v48  ;;  %v1234_v13 = vadd.f32 %v1232_v17, %v1211_v34  ;;  %v1299_v57 = vrot.slane %v7446_v53, %v5534_v41  ;;  %v1295_v36 = vrot.slane %v7445_v22, %v5534_v41 }
 0x25d   : > { %v1329_v60 = vmul.f32 %v1324_v37, %v1319_v30  ;;  %v1330_v16 = vmul.f32 %v1328_v43, %v1319_v30  ;;  %v1356_v5 = vrot.slane %v7445_v22, %v6363_v24  ;;  %v1360_v56 = vrot.slane %v7446_v53, %v6363_v24 }
 0x25e   : > { %v1256_v49 = vadd.f32 %v1254_v58, %v1233_v38  ;;  %v1257_v61 = vadd.f32 %v1255_v45, %v1234_v13  ;;  %v1392_v15 = vrot.slane %v7446_v53, %v6360_v59  ;;  %v1388_v39 = vrot.slane %v7445_v22, %v6360_v59 }
 0x25f   : > { %v1351_v54 = vpop.permute.xlu1 %1350  ;;  %v1300_v10 = vmul.f32 %v1295_v36, %v7447_v62  ;;  %v1301_v35 = vmul.f32 %v1299_v57, %v7447_v62  ;;  %vm1425_vm7 = vcmask 1041408   ;;  %vm1488_vm13 = vcmask 1040384  }
 0x260   : > { %v1279_v7 = vadd.f32 %v1277_v47, %v1256_v49  ;;  %v1280_v2 = vadd.f32 %v1278_v46, %v1257_v61  ;;  %v1361_v29 = vmul.f32 %v1356_v5, %v1351_v54  ;;  %v1362_v52 = vmul.f32 %v1360_v56, %v1351_v54  ;;  %v7450_v61 = vld [vmem:[#allocation31_spill] sm:$0xff] }
 0x261   : > { %v1331_v42 = vadd.f32 %v1329_v60, %v1300_v10  ;;  %v1332_v20 = vadd.f32 %v1330_v16, %v1301_v35  ;;  %v1393_v58 = vmul.f32 %v1388_v39, %v7449_v33  ;;  %v1394_v45 = vmul.f32 %v1392_v15, %v7449_v33 }
 0x262   : > { %v1285_v32 = vadd.f32 %v6325_v12, %v1279_v7  ;;  %v1286_v27 = vadd.f32 %v6325_v12, %v1280_v2  ;;  %vm1493_vm6 = vcmask 1042432   ;;  %vm1589_vm10 = vcmp.lt.s32.totalorder %v5531_v40, 48 }
 0x263   : > { %v1367_v9 = vpop.permute.xlu1 %1366  ;;  %v1363_v23 = vadd.f32 %v1361_v29, %v1331_v42  ;;  %v1364_v28 = vadd.f32 %v1362_v52, %v1332_v20  ;;  %vm1619_vm9 = vcmp.lt.s32.totalorder %v5531_v40, 47  ;;  %vm1679_vm12 = vcmp.lt.s32.totalorder %v5531_v40, 45 }
 0x264   : > { %v1310_v25 = vrot.slane %v1285_v32, %v5534_v41  ;;  %v1314_v26 = vrot.slane %v1286_v27, %v5534_v41  ;;  %v1340_v55 = vrot.slane %v1285_v32, %v5537_v44  ;;  %v1344_v18 = vrot.slane %v1286_v27, %v5537_v44 }
 0x265   : > { %v1372_v63 = vrot.slane %v1285_v32, %v6363_v24  ;;  %v1376_v12 = vrot.slane %v1286_v27, %v6363_v24  ;;  %v1404_v3 = vrot.slane %v1285_v32, %v6360_v59  ;;  %v1408_v6 = vrot.slane %v1286_v27, %v6360_v59 }
 0x266   : > { %v1345_v0 = vmul.f32 %v1340_v55, %v7448_v11  ;;  %v1346_v4 = vmul.f32 %v1344_v18, %v7448_v11  ;;  %v1315_v51 = vmul.f32 %v1310_v25, %v6341_v50  ;;  %v1316_v14 = vmul.f32 %v1314_v26, %v6341_v50 }
 0x267   : > { %v1377_v31 = vmul.f32 %v1372_v63, %v1367_v9  ;;  %v1378_v17 = vmul.f32 %v1376_v12, %v1367_v9  ;;  %v1395_v47 = vadd.f32 %v1393_v58, %v1363_v23  ;;  %v1396_v46 = vadd.f32 %v1394_v45, %v1364_v28 }
 0x268   : > { %v1347_v48 = vadd.f32 %v1345_v0, %v1315_v51  ;;  %v1348_v34 = vadd.f32 %v1346_v4, %v1316_v14  ;;  %v1399_v30 = vpop.permute.xlu1 %1398 }
 0x269   : > { %v1409_v19 = vmul.f32 %v1404_v3, %v1399_v30  ;;  %v1410_v8 = vmul.f32 %v1408_v6, %v1399_v30 }
 0x26a   : > { %v1379_v38 = vadd.f32 %v1377_v31, %v1347_v48  ;;  %v1380_v13 = vadd.f32 %v1378_v17, %v1348_v34 }
 0x26c   : > { %v1411_v50 = vadd.f32 %v1409_v19, %v1379_v38  ;;  %v1412_v1 = vadd.f32 %v1410_v8, %v1380_v13 }
 0x26d   : > { %v1415_v49 = vpop.permute.xlu1 %1414 }
 0x26e   : > { %v6402_v22 = vadd.f32 %v7450_v61, %v1411_v50  ;;  %v6405_v37 = vadd.f32 %v7450_v61, %v1412_v1  ;;  %v6407_v53 = vadd.f32 %v1415_v49, %v1395_v47  ;;  %v6409_v43 = vadd.f32 %v1415_v49, %v1396_v46 }
 0x270   : > { %v1440_v54 = vsel %vm1425_vm7, %v6402_v22, 0.0  ;;  %v1447_v57 = vsel %vm1425_vm7, %v6405_v37, 0.0  ;;  %v1472_v36 = vsel %vm1425_vm7, %v6402_v22, -inf  ;;  %v1479_v7 = vsel %vm1425_vm7, %v6405_v37, -inf }
 0x271   : > { %v1441_v2 = vrot.slane %v1440_v54, 4  ;;  %v1448_v60 = vrot.slane %v1447_v57, 4  ;;  %v1473_v16 = vrot.slane %v1472_v36, 4  ;;  %v1480_v5 = vrot.slane %v1479_v7, 4 }
 0x272   : > { %v1426_v56 = vsel %vm1425_vm7, %v6407_v53, 0.0  ;;  %v1433_v15 = vsel %vm1425_vm7, %v6409_v43, 0.0  ;;  %v1458_v39 = vsel %vm1425_vm7, %v6407_v53, -inf  ;;  %v1465_v32 = vsel %vm1425_vm7, %v6409_v43, -inf }
 0x273   : > { %v1442_v27 = vadd.f32 %v1441_v2, %v1440_v54  ;;  %v1449_v62 = vadd.f32 %v1448_v60, %v1447_v57  ;;  %v1474_v10 = vmax.f32 %v1472_v36, %v1473_v16  ;;  %v1481_v35 = vmax.f32 %v1479_v7, %v1480_v5 }
 0x274   : > { %v1427_v29 = vrot.slane %v1426_v56, 4  ;;  %v1434_v52 = vrot.slane %v1433_v15, 4  ;;  %v1459_v9 = vrot.slane %v1458_v39, 4  ;;  %v1466_v25 = vrot.slane %v1465_v32, 4 }
 0x275   : > { %v1443_v26 = vrot.slane %v1442_v27, 2  ;;  %v1450_v55 = vrot.slane %v1449_v62, 2  ;;  %v1475_v18 = vrot.slane %v1474_v10, 2  ;;  %v1482_v42 = vrot.slane %v1481_v35, 2 }
 0x276   : > { %v1428_v20 = vadd.f32 %v1427_v29, %v1426_v56  ;;  %v1435_v63 = vadd.f32 %v1434_v52, %v1433_v15  ;;  %v1460_v12 = vmax.f32 %v1458_v39, %v1459_v9  ;;  %v1467_v11 = vmax.f32 %v1465_v32, %v1466_v25 }
 0x277   : > { %v1444_v0 = vadd.f32 %v1443_v26, %v1442_v27  ;;  %v1451_v4 = vadd.f32 %v1450_v55, %v1449_v62  ;;  %v1476_v51 = vmax.f32 %v1474_v10, %v1475_v18  ;;  %v1483_v14 = vmax.f32 %v1481_v35, %v1482_v42  ;;  %v6438_v10 = vld [vmem:[#allocation7 + $0xe] sm:$0xf] }
 0x278   : > { %v1429_v23 = vrot.slane %v1428_v20, 2  ;;  %v1436_v28 = vrot.slane %v1435_v63, 2  ;;  %v1461_v3 = vrot.slane %v1460_v12, 2  ;;  %v1468_v6 = vrot.slane %v1467_v11, 2 }
 0x279   : > { %v1445_v48 = vrot.slane %v1444_v0, 1  ;;  %v1452_v34 = vrot.slane %v1451_v4, 1  ;;  %v1477_v31 = vrot.slane %v1476_v51, 1  ;;  %v1484_v17 = vrot.slane %v1483_v14, 1 }
 0x27a   : > { %v1430_v30 = vadd.f32 %v1429_v23, %v1428_v20  ;;  %v1437_v19 = vadd.f32 %v1436_v28, %v1435_v63  ;;  %v1462_v8 = vmax.f32 %v1460_v12, %v1461_v3  ;;  %v1469_v33 = vmax.f32 %v1467_v11, %v1468_v6  ;;  %v6508_v23 = vpop.permute.xlu1 %1520 }
 0x27b   : > { %v1446_v58 = vadd.f32 %v1445_v48, %v1444_v0  ;;  %v1453_v45 = vadd.f32 %v1452_v34, %v1451_v4  ;;  %v1478_v47 = vmax.f32 %v1476_v51, %v1477_v31  ;;  %v1485_v46 = vmax.f32 %v1483_v14, %v1484_v17 }
 0x27c   : > { %v1431_v38 = vrot.slane %v1430_v30, 1  ;;  %v1438_v13 = vrot.slane %v1437_v19, 1  ;;  %v1463_v50 = vrot.slane %v1462_v8, 1  ;;  %v1470_v1 = vrot.slane %v1469_v33, 1 }
 0x27d   : > { %v7451_v35 = vmov 14   ;;  %v7452_v29 = vmov 15   ;;  %v7453_v52 = vmov 16   ;;  %v7454_v9 = vmov 17  }
 0x27e   : > { %v1432_v49 = vadd.f32 %v1431_v38, %v1430_v30  ;;  %v1439_v61 = vadd.f32 %v1438_v13, %v1437_v19  ;;  %v1464_v54 = vmax.f32 %v1462_v8, %v1463_v50  ;;  %v1471_v57 = vmax.f32 %v1469_v33, %v1470_v1  ;;  %v6514_v3 = vpop.permute.xlu1 %1548 }
 0x27f   : > { %v7455_v25 = vmov 18   ;;  %v7456_v26 = vmov 19   ;;  %v7457_v55 = vmov 20   ;;  %v7458_v18 = vmov 21  }
 0x280   : > { %v1454_v36 = vadd.f32 %v1446_v58, %v1432_v49  ;;  %v1455_v7 = vadd.f32 %v1453_v45, %v1439_v61  ;;  %v1486_v16 = vmax.f32 %v1464_v54, %v1478_v47  ;;  %v1487_v5 = vmax.f32 %v1471_v57, %v1485_v46 }
 0x281   : > { %v7459_v42 = vmov 22   ;;  %v7460_v20 = vmov 23   ;;  %v7461_v63 = vmov 24   ;;  %v7462_v12 = vmov 27  }
 0x282   : > { %v1456_v2 = vmul.f32 0.25, %v1454_v36  ;;  %v1457_v60 = vmul.f32 0.25, %v1455_v7  ;;  %v7463_v11 = vmov 28   ;;  %v7464_v0 = vmov 29  }
 0x283   : > { %v7465_v4 = vmov 30   ;;  %v7466_v51 = vmov 31   ;;  %v7467_v14 = vmov 32   ;;  %v7468_v28 = vmov 33  }
 0x284   : > { %v1489_v56 = vsel %vm1488_vm13, %v1456_v2, %v1486_v16  ;;  %v1490_v15 = vsel %vm1488_vm13, %v1457_v60, %v1487_v5  ;;  %v7469_v6 = vmov 34   ;;  %v7470_v34 = vmov 35  }
 0x285   : > { %v1491_v39 = vsel %vm1425_vm7, %v1489_v56, %v1456_v2  ;;  %v1492_v32 = vsel %vm1425_vm7, %v1490_v15, %v1457_v60  ;;  %v7337_v38 = vmov 36   ;;  %v5201_v1 = vmov 37  }
 0x286   : > { %v6429_v27 = vsel %vm1493_vm6, %v1491_v39, %v1486_v16  ;;  %v6431_v62 = vsel %vm1493_vm6, %v1492_v32, %v1487_v5  ;;  %v5203_v49 = vmov 38   ;;  %v5204_v57 = vmov 39   ;;  %v1504_v32 = vld [vmem:[#allocation5 + $0x42] ss:$8 sm:$0x3] }
 0x287   : > { %1498 = vrot.lane.b32.xlu1 %v6431_v62, %s5185_s13  ;;  %1496 = vrot.lane.b32.xlu0 %v6429_v27, %s5185_s13  ;;  %s5192_s13 = smov 35   ;;  %v5205_v2 = vmov 40   ;;  %v7471_v56 = vmov 26   ;;  %v5206_v39 = vmov 41   ;;  %vm1500_vm6 = vcmp.lt.s32.totalorder %v5531_v40, 51 }
 0x288   : > { %vm1529_vm7 = vcmp.lt.s32.totalorder %v5531_v40, 50  ;;  %vm1559_vm13 = vcmp.lt.s32.totalorder %v5531_v40, 49 }
 0x28b   : > { %1527 = vrot.lane.b32.xlu1 %v6431_v62, %s5186_s20  ;;  %1525 = vrot.lane.b32.xlu0 %v6429_v27, %s5186_s20  ;;  %s5189_s20 = smov 47  }
 0x28f   : > { %1555 = vrot.lane.b32.xlu1 %v6429_v27, %s5187_s25  ;;  %1905 = vperm.xlu0 %4647, %v6438_v10  }
 0x293   : > { %1557 = vrot.lane.b32.xlu1 %v6431_v62, %s5187_s25  ;;  %4648 = vset.pattern.permute.xlu0 %v7451_v35  ;;  %s5190_s25 = smov 46   ;;  %v1533_v35 = vld [vmem:[#allocation5 + $0x43] ss:$8 sm:$0x3] }
 0x294   : > { %1935 = vperm.xlu0 %4648, %v6438_v10  }
 0x297   : > { %1585 = vrot.lane.b32.xlu1 %v6429_v27, %s5188_s9 }
 0x298   : > { %4649 = vset.pattern.permute.xlu0 %v7452_v29  ;;  %v6599_v29 = vld [vmem:[#allocation5 + $0x44] ss:$8 sm:$0x3] }
 0x299   : > { %1965 = vperm.xlu0 %4649, %v6438_v10  }
 0x29b   : > { %1587 = vrot.lane.b32.xlu1 %v6431_v62, %s5188_s9  ;;  %s5191_s9 = smov 45  }
 0x29d   : > { %4650 = vset.pattern.permute.xlu0 %v7453_v52 }
 0x29e   : > { %1994 = vperm.xlu0 %4650, %v6438_v10  }
 0x29f   : > { %1615 = vrot.lane.b32.xlu1 %v6429_v27, %s5189_s20 }
 0x2a2   : > { %4651 = vset.pattern.permute.xlu0 %v7454_v9  ;;  %v6604_v9 = vld [vmem:[#allocation5 + $0x45] ss:$8 sm:$0x3] }
 0x2a3   : > { %1617 = vrot.lane.b32.xlu1 %v6431_v62, %s5189_s20  ;;  %2023 = vperm.xlu0 %4651, %v6438_v10   ;;  %s5193_s20 = smov 33  }
 0x2a7   : > { %1645 = vrot.lane.b32.xlu1 %v6429_v27, %s5190_s25  ;;  %4652 = vset.pattern.permute.xlu0 %v7455_v25  ;;  %v1509_v25 = vrot.slane %v1504_v32, %v5534_v41 }
 0x2a8   : > { %2052 = vperm.xlu0 %4652, %v6438_v10  }
 0x2ab   : > { %1647 = vrot.lane.b32.xlu1 %v6431_v62, %s5190_s25  ;;  %s5196_s25 = smov 19  }
 0x2ac   : > { %4653 = vset.pattern.permute.xlu0 %v7456_v26  ;;  %v1513_v26 = vrot.slane %v1504_v32, %v5537_v44 }
 0x2ad   : > { %2082 = vperm.xlu0 %4653, %v6438_v10  }
 0x2af   : > { %1675 = vrot.lane.b32.xlu1 %v6429_v27, %s5191_s9 }
 0x2b1   : > { %4654 = vset.pattern.permute.xlu0 %v7457_v55  ;;  %v1538_v55 = vrot.slane %v1533_v35, %v5534_v41 }
 0x2b2   : > { %2112 = vperm.xlu0 %4654, %v6438_v10  }
 0x2b3   : > { %1677 = vrot.lane.b32.xlu1 %v6431_v62, %s5191_s9  ;;  %s7488_s9 = smov 112  }
 0x2b6   : > { %4655 = vset.pattern.permute.xlu0 %v7458_v18  ;;  %v1542_v18 = vrot.slane %v1533_v35, %v5537_v44 }
 0x2b7   : > { %1705 = vrot.lane.b32.xlu1 %v6429_v27, %s5192_s13  ;;  %2142 = vperm.xlu0 %4655, %v6438_v10  }
 0x2bb   : > { %1707 = vrot.lane.b32.xlu1 %v6431_v62, %s5192_s13  ;;  %4656 = vset.pattern.permute.xlu0 %v7459_v42  ;;  %v6610_v42 = vld [vmem:[#allocation5 + $0x46] ss:$8 sm:$0x3]  ;;  %s7489_s13 = smov 111  }
 0x2bc   : > { %2171 = vperm.xlu0 %4656, %v6438_v10  }
 0x2bf   : > { %1735 = vrot.lane.b32.xlu1 %v6429_v27, %s5164_s15 }
 0x2c0   : > { %4657 = vset.pattern.permute.xlu0 %v7460_v20 }
 0x2c1   : > { %2200 = vperm.xlu0 %4657, %v6438_v10  }
 0x2c3   : > { %1737 = vrot.lane.b32.xlu1 %v6431_v62, %s5164_s15  ;;  %s5194_s15 = smov 31  }
 0x2c5   : > { %4658 = vset.pattern.permute.xlu0 %v7461_v63  ;;  %v1568_v63 = vrot.slane %v6599_v29, %v5534_v41 }
 0x2c6   : > { %2208 = vperm.xlu0 %4658, %v6438_v10  }
 0x2c7   : > { %1764 = vrot.lane.b32.xlu1 %v6429_v27, %s5193_s20 }
 0x2ca   : > { %2217 = vrot.lane.b32.xlu0 %v6431_v62, %s5132_s11 }
 0x2cb   : > { %1766 = vrot.lane.b32.xlu1 %v6431_v62, %s5193_s20  ;;  %4661 = vset.pattern.permute.xlu0 %v7462_v12  ;;  %v1572_v12 = vrot.slane %v6599_v29, %v5537_v44  ;;  %v6660_v29 = vld [vmem:[#allocation5 + $0x51] ss:$8 sm:$0x3]  ;;  %s5217_s20 = smov 110  }
 0x2ce   : > { %2244 = vrot.lane.b32.xlu0 %v6429_v27, %s5155_s8 }
 0x2cf   : > { %1794 = vrot.lane.b32.xlu1 %v6429_v27, %s5167_s17 }
 0x2d2   : > { %2296 = vperm.xlu0 %4661, %v6438_v10  }
 0x2d3   : > { %1796 = vrot.lane.b32.xlu1 %v6431_v62, %s5167_s17  ;;  %s5195_s17 = smov 29  }
 0x2d6   : > { %4662 = vset.pattern.permute.xlu0 %v7463_v11  ;;  %v6620_v11 = vld [vmem:[#allocation5 + $0x47] ss:$8 sm:$0x3] }
 0x2d7   : > { %1823 = vrot.lane.b32.xlu1 %v6429_v27, %s5194_s15  ;;  %2326 = vperm.xlu0 %4662, %v6438_v10   ;;  %v1658_v32 = vrot.slane %v6620_v11, %v5534_v41 }
 0x2db   : > { %1825 = vrot.lane.b32.xlu1 %v6431_v62, %s5194_s15  ;;  %4663 = vset.pattern.permute.xlu0 %v7464_v0  ;;  %s5218_s15 = smov 109  }
 0x2dc   : > { %2356 = vperm.xlu0 %4663, %v6438_v10  }
 0x2df   : > { %1853 = vrot.lane.b32.xlu1 %v6429_v27, %s5168_s29 }
 0x2e0   : > { %4664 = vset.pattern.permute.xlu0 %v7465_v4  ;;  %v1598_v4 = vrot.slane %v6604_v9, %v5534_v41 }
 0x2e1   : > { %2385 = vperm.xlu0 %4664, %v6438_v10  }
 0x2e3   : > { %1855 = vrot.lane.b32.xlu1 %v6431_v62, %s5168_s29  ;;  %s5197_s29 = smov 18  }
 0x2e5   : > { %4665 = vset.pattern.permute.xlu0 %v7466_v51  ;;  %v1602_v51 = vrot.slane %v6604_v9, %v5537_v44 }
 0x2e6   : > { %2414 = vperm.xlu0 %4665, %v6438_v10  }
 0x2e7   : > { %1882 = vrot.lane.b32.xlu1 %v6429_v27, %s5195_s17 }
 0x2ea   : > { %4666 = vset.pattern.permute.xlu0 %v7467_v14  ;;  %v6629_v14 = vld [vmem:[#allocation5 + $0x50] ss:$8 sm:$0x3] }
 0x2eb   : > { %1884 = vrot.lane.b32.xlu1 %v6431_v62, %s5195_s17  ;;  %2443 = vperm.xlu0 %4666, %v6438_v10   ;;  %v1688_v35 = vrot.slane %v6629_v14, %v5534_v41  ;;  %s5219_s17 = smov 99  }
 0x2ef   : > { %1912 = vrot.lane.b32.xlu1 %v6429_v27, %s5196_s25  ;;  %4667 = vset.pattern.permute.xlu0 %v7468_v28 }
 0x2f0   : > { %2473 = vperm.xlu0 %4667, %v6438_v10  }
 0x2f3   : > { %1914 = vrot.lane.b32.xlu1 %v6431_v62, %s5196_s25  ;;  %s7491_s25 = smov 98  }
 0x2f4   : > { %4668 = vset.pattern.permute.xlu0 %v7469_v6  ;;  %v1628_v6 = vrot.slane %v6610_v42, %v5534_v41 }
 0x2f5   : > { %2503 = vperm.xlu0 %4668, %v6438_v10  }
 0x2f7   : > { %1942 = vrot.lane.b32.xlu1 %v6429_v27, %s5197_s29 }
 0x2f9   : > { %v6519_v48 = vpop.permute.xlu1 %1498  ;;  %4669 = vset.pattern.permute.xlu0 %v7470_v34  ;;  %v1497_v5 = vpop.permute.xlu0 %1496  ;;  %v1632_v34 = vrot.slane %v6610_v42, %v5537_v44 }
 0x2fa   : > { %2533 = vperm.xlu0 %4669, %v6438_v10   ;;  %v1502_v28 = vsel %vm1500_vm6, %v6519_v48, %v1497_v5  ;;  %v1501_v9 = vsel %vm1500_vm6, %v1497_v5, %v6519_v48  ;;  %vm1768_vm6 = vcmp.lt.s32.totalorder %v5531_v40, 33 }
 0x2fb   : > { %1944 = vrot.lane.b32.xlu1 %v6431_v62, %s5197_s29  ;;  %v1516_v42 = vmul.f32 %v1509_v25, %v1502_v28  ;;  %s5220_s29 = smov 97  }
 0x2fd   : > { %v6524_v31 = vpop.permute.xlu1 %1527  ;;  %v1526_v52 = vpop.permute.xlu0 %1525 }
 0x2fe   : > { %4670 = vset.pattern.permute.xlu0 %v7337_v38  ;;  %v1531_v0 = vsel %vm1529_vm7, %v6524_v31, %v1526_v52  ;;  %v6698_v38 = vld [vmem:[#allocation5 + $0x53] ss:$8 sm:$0x3] }
 0x2ff   : > { %1972 = vrot.lane.b32.xlu1 %v6429_v27, %s5124_s28  ;;  %2562 = vperm.xlu0 %4670, %v6438_v10  }
 0x301   : > { %v6528_v17 = vpop.permute.xlu1 %1555 }
 0x303   : > { %1974 = vrot.lane.b32.xlu1 %v6431_v62, %s5124_s28  ;;  %s5198_s28 = smov 14   ;;  %4671 = vset.pattern.permute.xlu0 %v5201_v1  ;;  %v5207_v1 = vmov 42  }
 0x304   : > { %2592 = vperm.xlu0 %4671, %v6438_v10  }
 0x305   : > { %v6532_v30 = vpop.permute.xlu1 %1557 }
 0x307   : > { %2001 = vrot.lane.b32.xlu1 %v6429_v27, %s5126_s16 }
 0x308   : > { %4672 = vset.pattern.permute.xlu0 %v5203_v49  ;;  %v7472_v49 = vmov 0  }
 0x309   : > { %v6536_v19 = vpop.permute.xlu1 %1585  ;;  %2621 = vperm.xlu0 %4672, %v6438_v10  }
 0x30b   : > { %2003 = vrot.lane.b32.xlu1 %v6431_v62, %s5126_s16  ;;  %s5200_s16 = smov 13  }
 0x30d   : > { %v6540_v8 = vpop.permute.xlu1 %1587  ;;  %4673 = vset.pattern.permute.xlu0 %v5204_v57  ;;  %v1530_v57 = vsel %vm1529_vm7, %v1526_v52, %v6524_v31  ;;  %v1662_v31 = vrot.slane %v6620_v11, %v5537_v44  ;;  %v6662_v52 = vld [vmem:[#allocation5 + $0x52] ss:$8 sm:$0x3]  ;;  %vm1709_vm7 = vcmp.lt.s32.totalorder %v5531_v40, 35 }
 0x30e   : > { %2651 = vperm.xlu0 %4673, %v6438_v10   ;;  %v1546_v11 = vmul.f32 %v1542_v18, %v1530_v57  ;;  %v1591_v48 = vsel %vm1589_vm10, %v6540_v8, %v6536_v19  ;;  %v1523_v18 = vmul.f32 %v6508_v23, %v1516_v42  ;;  %v6715_v42 = vld [vmem:[#allocation5 + $0x54] ss:$8 sm:$0x3] }
 0x30f   : > { %2030 = vrot.lane.b32.xlu1 %v6429_v27, %s5128_s30  ;;  %v1605_v25 = vmul.f32 %v1598_v4, %v1591_v48  ;;  %v1777_v4 = vrot.slane %v6698_v38, %v5534_v41 }
 0x311   : > { %v6544_v33 = vpop.permute.xlu1 %1615 }
 0x312   : > { %4674 = vset.pattern.permute.xlu0 %v5205_v2  ;;  %v1561_v2 = vsel %vm1559_vm13, %v6532_v30, %v6528_v17 }
 0x313   : > { %2032 = vrot.lane.b32.xlu1 %v6431_v62, %s5128_s30  ;;  %s5202_s30 = smov 3   ;;  %2680 = vperm.xlu0 %4674, %v6438_v10  }
 0x315   : > { %v6548_v58 = vpop.permute.xlu1 %1617 }
 0x317   : > { %2059 = vrot.lane.b32.xlu1 %v6429_v27, %s5198_s28  ;;  %4675 = vset.pattern.permute.xlu0 %v5206_v39  ;;  %v1545_v39 = vmul.f32 %v1538_v55, %v1531_v0  ;;  %v1692_v55 = vrot.slane %v6629_v14, %v5537_v44  ;;  %v1560_v0 = vsel %vm1559_vm13, %v6528_v17, %v6532_v30  ;;  %v7478_v14 = vld [vmem:[#allocation35_spill] sm:$0xff] }
 0x318   : > { %2710 = vperm.xlu0 %4675, %v6438_v10   ;;  %v1517_v17 = vmul.f32 %v1513_v26, %v1501_v9  ;;  %v1576_v28 = vmul.f32 %v1572_v12, %v1560_v0  ;;  %v1552_v26 = vmul.f32 %v6514_v3, %v1546_v11  ;;  %v5209_v11 = vmov 43  }
 0x319   : > { %v6551_v45 = vpop.permute.xlu1 %1645  ;;  %v1551_v30 = vmul.f32 %v6514_v3, %v1545_v39  ;;  %v7473_v39 = vld [vmem:[#allocation28_spill] sm:$0xff] }
 0x31a   : > { %v1524_v0 = vmul.f32 %v6508_v23, %v1517_v17  ;;  %v1806_v17 = vrot.slane %v6715_v42, %v5534_v41 }
 0x31b   : > { %2061 = vrot.lane.b32.xlu1 %v6431_v62, %s5198_s28  ;;  %s7492_s28 = smov 96  }
 0x31c   : > { %4676 = vset.pattern.permute.xlu0 %v5207_v1  ;;  %v1575_v1 = vmul.f32 %v1568_v63, %v1561_v2  ;;  %v1590_v63 = vsel %vm1589_vm10, %v6536_v19, %v6540_v8  ;;  %v1621_v2 = vsel %vm1619_vm9, %v6548_v58, %v6544_v33  ;;  %v1620_v19 = vsel %vm1619_vm9, %v6544_v33, %v6548_v58 }
 0x31d   : > { %v6555_v13 = vpop.permute.xlu1 %1647  ;;  %2740 = vperm.xlu0 %4676, %v6438_v10   ;;  %v1606_v8 = vmul.f32 %v1602_v51, %v1590_v63  ;;  %v1635_v5 = vmul.f32 %v1628_v6, %v1621_v2  ;;  %v1781_v58 = vrot.slane %v6698_v38, %v5537_v44  ;;  %v1582_v51 = vmul.f32 %v7473_v39, %v1576_v28  ;;  %v7474_v6 = vld [vmem:[#allocation30_spill] sm:$0xff]  ;;  %v7475_v28 = vld [vmem:[#allocation32_spill] sm:$0xff] }
 0x31e   : > { %v1581_v9 = vmul.f32 %v7473_v39, %v1575_v1  ;;  %v1651_v12 = vsel %vm1649_vm5, %v6555_v13, %v6551_v45  ;;  %v1553_v1 = vadd.f32 %v1551_v30, %v1523_v18  ;;  %v1650_v33 = vsel %vm1649_vm5, %v6551_v45, %v6555_v13 }
 0x31f   : > { %2089 = vrot.lane.b32.xlu1 %v6429_v27, %s5200_s16  ;;  %v1611_v48 = vmul.f32 %v7474_v6, %v1605_v25  ;;  %v1636_v63 = vmul.f32 %v1632_v34, %v1620_v19  ;;  %v1554_v18 = vadd.f32 %v1552_v26, %v1524_v0  ;;  %v1665_v13 = vmul.f32 %v1658_v32, %v1651_v12  ;;  %v6767_v0 = vld [vmem:[#allocation5 + $0x56] ss:$8 sm:$0x3] }
 0x320   : > { %v1583_v45 = vadd.f32 %v1581_v9, %v1553_v1  ;;  %v1612_v30 = vmul.f32 %v7474_v6, %v1606_v8  ;;  %v1641_v2 = vmul.f32 %v7475_v28, %v1635_v5  ;;  %v1666_v25 = vmul.f32 %v1662_v31, %v1650_v33 }
 0x321   : > { %v6559_v50 = vpop.permute.xlu1 %1675  ;;  %4677 = vset.pattern.permute.xlu0 %v5209_v11  ;;  %v1810_v26 = vrot.slane %v6715_v42, %v5537_v44  ;;  %vm1827_vm5 = vcmp.lt.s32.totalorder %v5531_v40, 31  ;;  %v1584_v5 = vadd.f32 %v1582_v51, %v1554_v18  ;;  %v1642_v9 = vmul.f32 %v7475_v28, %v1636_v63 }
 0x322   : > { %2770 = vperm.xlu0 %4677, %v6438_v10   ;;  %v1613_v31 = vadd.f32 %v1611_v48, %v1583_v45  ;;  %v5211_v48 = vmov 44   ;;  %v7479_v63 = vrot.slane %v6660_v29, %v5537_v44  ;;  %vm2337_vm9 = vcmp.lt.s32.totalorder %v5531_v40, 114 }
 0x323   : > { %2091 = vrot.lane.b32.xlu1 %v6431_v62, %s5200_s16  ;;  %v1614_v1 = vadd.f32 %v1612_v30, %v1584_v5  ;;  %v7482_v5 = vrot.slane %v6662_v52, %v5537_v44  ;;  %s5221_s16 = smov 95   ;;  %vm7496_vm10 = vcmp.lt.s32.totalorder %v5531_v40, 113 }
 0x324   : > { %v1643_v33 = vadd.f32 %v1641_v2, %v1613_v31  ;;  %vm7497_vm13 = vmmov %vm7496_vm10 }
 0x325   : > { %v6562_v47 = vpop.permute.xlu1 %1677 }
 0x326   : > { %v1681_v23 = vsel %vm1679_vm12, %v6562_v47, %v6559_v50  ;;  %v1680_v34 = vsel %vm1679_vm12, %v6559_v50, %v6562_v47  ;;  %v6756_v47 = vld [vmem:[#allocation5 + $0x55] ss:$8 sm:$0x3]  ;;  %4678 = vset.pattern.permute.xlu0 %v5211_v48  ;;  %vm1946_vm12 = vcmp.lt.s32.totalorder %v5531_v40, 18 }
 0x327   : > { %2119 = vrot.lane.b32.xlu1 %v6429_v27, %s5202_s30  ;;  %v1695_v19 = vmul.f32 %v1688_v35, %v1681_v23  ;;  %v7476_v35 = vld [vmem:[#allocation33_spill] sm:$0xff]  ;;  %v1696_v12 = vmul.f32 %v1692_v55, %v1680_v34  ;;  %2800 = vperm.xlu0 %4678, %v6438_v10   ;;  %v1840_v28 = vrot.slane %v6756_v47, %v5537_v44 }
 0x328   : > { %v1671_v8 = vmul.f32 %v7476_v35, %v1665_v13  ;;  %v7480_v13 = vrot.slane %v6662_v52, %v5534_v41 }
 0x329   : > { %v6566_v46 = vpop.permute.xlu1 %1705  ;;  %v1701_v55 = vmul.f32 %v7478_v14, %v1695_v19  ;;  %v7481_v19 = vld [vmem:[#allocation36_spill] sm:$0xff] }
 0x32a   : > { %v1673_v2 = vadd.f32 %v1671_v8, %v1643_v33 }
 0x32b   : > { %2121 = vrot.lane.b32.xlu1 %v6431_v62, %s5202_s30  ;;  %s7493_s30 = smov 94  }
 0x32d   : > { %v6569_v61 = vpop.permute.xlu1 %1707 }
 0x32e   : > { %v1711_v32 = vsel %vm1709_vm7, %v6569_v61, %v6566_v46  ;;  %v1710_v50 = vsel %vm1709_vm7, %v6566_v46, %v6569_v61  ;;  %v1672_v46 = vmul.f32 %v7476_v35, %v1666_v25  ;;  %v7477_v61 = vrot.slane %v6660_v29, %v5534_v41 }
 0x32f   : > { %2149 = vrot.lane.b32.xlu1 %v6429_v27, %s5171_s26  ;;  %v1726_v23 = vmul.f32 %v7479_v63, %v1710_v50  ;;  %v1836_v29 = vrot.slane %v6756_v47, %v5534_v41  ;;  %v1702_v25 = vmul.f32 %v7478_v14, %v1696_v12  ;;  %v1890_v47 = vld [vmem:[#allocation5 + $0x57] ss:$8 sm:$0x3]  ;;  %v1703_v12 = vadd.f32 %v1701_v55, %v1673_v2 }
 0x330   : > { %v1725_v51 = vmul.f32 %v7477_v61, %v1711_v32  ;;  %v1895_v38 = vrot.slane %v1890_v47, %v5534_v41  ;;  %v7484_v61 = vld [vmem:[#allocation39_spill] sm:$0xff]  ;;  %v5213_v14 = vmov 45   ;;  %vm7498_vm7 = vcmp.lt.s32.totalorder %v5531_v40, 112 }
 0x331   : > { %v6574_v54 = vpop.permute.xlu1 %1735  ;;  %4679 = vset.pattern.permute.xlu0 %v5213_v14 }
 0x332   : > { %v1731_v32 = vmul.f32 %v7481_v19, %v1725_v51  ;;  %2830 = vperm.xlu0 %4679, %v6438_v10  }
 0x333   : > { %2151 = vrot.lane.b32.xlu1 %v6431_v62, %s5171_s26  ;;  %s5212_s26 = smov 114  }
 0x335   : > { %v6578_v36 = vpop.permute.xlu1 %1737 }
 0x336   : > { %v1740_v11 = vsel %vm772_vm14, %v6578_v36, %v6574_v54  ;;  %v1739_v18 = vsel %vm772_vm14, %v6574_v54, %v6578_v36  ;;  %v1865_v54 = vrot.slane %v6767_v0, %v5534_v41  ;;  %v1644_v36 = vadd.f32 %v1642_v9, %v1614_v1 }
 0x337   : > { %2178 = vrot.lane.b32.xlu1 %v6429_v27, %s5130_s10  ;;  %v1754_v30 = vmul.f32 %v7480_v13, %v1740_v11  ;;  %v1755_v31 = vmul.f32 %v7482_v5, %v1739_v18  ;;  %v1869_v9 = vrot.slane %v6767_v0, %v5537_v44  ;;  %v1732_v11 = vmul.f32 %v7481_v19, %v1726_v23 }
 0x338   : > { %v1674_v8 = vadd.f32 %v1672_v46, %v1644_v36  ;;  %vm1886_vm14 = vcmp.lt.s32.totalorder %v5531_v40, 29  ;;  %v1899_v23 = vrot.slane %v1890_v47, %v5537_v44 }
 0x339   : > { %v6583_v7 = vpop.permute.xlu1 %1764 }
 0x33a   : > { %v1704_v1 = vadd.f32 %v1702_v25, %v1674_v8 }
 0x33b   : > { %2180 = vrot.lane.b32.xlu1 %v6431_v62, %s5130_s10  ;;  %s5208_s10 = smov 125  }
 0x33c   : > { %v1734_v18 = vadd.f32 %v1732_v11, %v1704_v1 }
 0x33d   : > { %v6587_v60 = vpop.permute.xlu1 %1766 }
 0x33e   : > { %v1770_v45 = vsel %vm1768_vm6, %v6587_v60, %v6583_v7  ;;  %v1769_v34 = vsel %vm1768_vm6, %v6583_v7, %v6587_v60  ;;  %v7483_v7 = vld [vmem:[#allocation38_spill] sm:$0xff]  ;;  %vm7499_vm6 = vmmov %vm7498_vm7 }
 0x33f   : > { %2237 = vperm.xlu1 %4659, %v6438_v10   ;;  %v1784_v50 = vmul.f32 %v1777_v4, %v1770_v45  ;;  %v1760_v60 = vmul.f32 %v7483_v7, %v1754_v30  ;;  %v1785_v52 = vmul.f32 %v1781_v58, %v1769_v34  ;;  %v1733_v58 = vadd.f32 %v1731_v32, %v1703_v12 }
 0x340   : > { %v1761_v46 = vmul.f32 %v7483_v7, %v1755_v31  ;;  %v7487_v31 = vld [vmem:[#allocation51_spill] sm:$0xff] }
 0x341   : > { %v6591_v16 = vpop.permute.xlu1 %1794  ;;  %v1790_v51 = vmul.f32 %v7484_v61, %v1784_v50  ;;  %v1762_v45 = vadd.f32 %v1760_v60, %v1733_v58  ;;  %v1791_v13 = vmul.f32 %v7484_v61, %v1785_v52 }
 0x342   : > { %v1763_v36 = vadd.f32 %v1761_v46, %v1734_v18 }
 0x343   : > { %2215 = vrot.lane.b32.xlu1 %v6429_v27, %s5132_s11  ;;  %s5210_s11 = smov 115   ;;  %v1792_v2 = vadd.f32 %v1790_v51, %v1762_v45  ;;  %v1979_v51 = vld [vmem:[#allocation5 + $0x62] ss:$8 sm:$0x3] }
 0x344   : > { %4660 = vset.pattern.permute.xlu1 %v7471_v56  ;;  %v1793_v5 = vadd.f32 %v1791_v13, %v1763_v36  ;;  %v1984_v45 = vrot.slane %v1979_v51, %v5534_v41  ;;  %v1988_v13 = vrot.slane %v1979_v51, %v5537_v44 }
 0x345   : > { %v6596_v15 = vpop.permute.xlu1 %1796 }
 0x346   : > { %v1798_v4 = vsel %vm802_vm15, %v6591_v16, %v6596_v15  ;;  %v1799_v0 = vsel %vm802_vm15, %v6596_v15, %v6591_v16  ;;  %v1920_v15 = vld [vmem:[#allocation5 + $0x60] ss:$8 sm:$0x3]  ;;  %vm1916_vm15 = vcmp.lt.s32.totalorder %v5531_v40, 19 }
 0x347   : > { %2266 = vperm.xlu1 %4660, %v6438_v10   ;;  %v1813_v55 = vmul.f32 %v1806_v17, %v1799_v0  ;;  %v1814_v63 = vmul.f32 %v1810_v26, %v1798_v4  ;;  %v1925_v26 = vrot.slane %v1920_v15, %v5534_v41 }
 0x349   : > { %v6612_v20 = vpop.permute.xlu1 %1823 }
 0x34b   : > { %2246 = vrot.lane.b32.xlu1 %v6431_v62, %s5155_s8  ;;  %s7485_s8 = smov 113  }
 0x34c   : > { %4684 = vset.pattern.permute.xlu1 %v7472_v49 }
 0x34d   : > { %v6651_v56 = vpop.permute.xlu1 %1825 }
 0x34e   : > { %v1829_v33 = vsel %vm1827_vm5, %v6651_v56, %v6612_v20  ;;  %v1828_v16 = vsel %vm1827_vm5, %v6612_v20, %v6651_v56  ;;  %v1906_v56 = vpop.permute.xlu0 %1905  ;;  %vm7500_vm5 = vcmp.lt.s32.totalorder %v5531_v40, 111 }
 0x34f   : > { %2273 = vrot.lane.b32.xlu1 %v6429_v27, %s5208_s10  ;;  %v1843_v20 = vmul.f32 %v1836_v29, %v1829_v33  ;;  %v1844_v30 = vmul.f32 %v1840_v28, %v1828_v16  ;;  %v1929_v29 = vrot.slane %v1920_v15, %v5537_v44  ;;  %v7486_v28 = vld [vmem:[#allocation42_spill] sm:$0xff] }
 0x350   : > { %v1819_v34 = vmul.f32 %v7486_v28, %v1813_v55  ;;  %v1820_v19 = vmul.f32 %v7486_v28, %v1814_v63 }
 0x351   : > { %v6687_v57 = vpop.permute.xlu1 %1853  ;;  %v1849_v50 = vmul.f32 %v7487_v31, %v1843_v20  ;;  %v1850_v11 = vmul.f32 %v7487_v31, %v1844_v30 }
 0x352   : > { %v1936_v12 = vpop.permute.xlu0 %1935  ;;  %v1821_v0 = vadd.f32 %v1819_v34, %v1792_v2  ;;  %v1822_v1 = vadd.f32 %v1820_v19, %v1793_v5 }
 0x353   : > { %2275 = vrot.lane.b32.xlu1 %v6431_v62, %s5208_s10  ;;  %s5222_s10 = smov 93  }
 0x354   : > { %v1851_v16 = vadd.f32 %v1849_v50, %v1821_v0  ;;  %v1852_v15 = vadd.f32 %v1850_v11, %v1822_v1 }
 0x355   : > { %v6717_v3 = vpop.permute.xlu1 %1855 }
 0x356   : > { %v1857_v42 = vsel %vm832_vm8, %v6687_v57, %v6717_v3  ;;  %v1858_v17 = vsel %vm832_vm8, %v6717_v3, %v6687_v57  ;;  %v1950_v3 = vld [vmem:[#allocation5 + $0x61] ss:$8 sm:$0x3]  ;;  %v1966_v18 = vpop.permute.xlu0 %1965  ;;  %vm2277_vm8 = vcmp.lt.s32.totalorder %v5531_v40, 125 }
 0x357   : > { %2303 = vrot.lane.b32.xlu1 %v6429_v27, %s5210_s11  ;;  %v1872_v47 = vmul.f32 %v1865_v54, %v1858_v17  ;;  %v1873_v8 = vmul.f32 %v1869_v9, %v1857_v42  ;;  %v1959_v4 = vrot.slane %v1950_v3, %v5537_v44  ;;  %v5214_v9 = vmov 46  }
 0x358   : > { %4680 = vset.pattern.permute.xlu0 %v5214_v9  ;;  %v4905_v9 = vld [vmem:[#allocation7] sm:$0xf] }
 0x359   : > { %v6742_v39 = vpop.permute.xlu1 %1882  ;;  %2860 = vperm.xlu0 %4680, %v6438_v10  }
 0x35b   : > { %2305 = vrot.lane.b32.xlu1 %v6431_v62, %s5210_s11  ;;  %s5223_s11 = smov 83  }
 0x35d   : > { %v6773_v6 = vpop.permute.xlu1 %1884 }
 0x35e   : > { %v1887_v32 = vsel %vm1886_vm14, %v6742_v39, %v6773_v6  ;;  %v1888_v57 = vsel %vm1886_vm14, %v6773_v6, %v6742_v39  ;;  %v1955_v6 = vrot.slane %v1950_v3, %v5534_v41  ;;  %v1995_v3 = vpop.permute.xlu0 %1994  ;;  %vm7501_vm14 = vmmov %vm7500_vm5 }
 0x35f   : > { %2333 = vrot.lane.b32.xlu1 %v6429_v27, %s5212_s26  ;;  %v1902_v52 = vmul.f32 %v1895_v38, %v1888_v57  ;;  %v1903_v39 = vmul.f32 %v1899_v23, %v1887_v32  ;;  %v1879_v38 = vmul.f32 %v6077_v21, %v1873_v8 }
 0x361   : > { %v1913_v35 = vpop.permute.xlu1 %1912  ;;  %v1909_v14 = vmul.f32 %v1906_v56, %v1903_v39  ;;  %v331_v39 = vld [vmem:[#allocation7 + $0xc] sm:$0x3] }
 0x362   : > { %v2024_v0 = vpop.permute.xlu0 %2023 }
 0x363   : > { %2335 = vrot.lane.b32.xlu1 %v6431_v62, %s5212_s26  ;;  %s5224_s26 = smov 82  }
 0x365   : > { %v1915_v48 = vpop.permute.xlu1 %1914 }
 0x366   : > { %v1917_v7 = vsel %vm1916_vm15, %v1913_v35, %v1915_v48  ;;  %v1918_v60 = vsel %vm1916_vm15, %v1915_v48, %v1913_v35  ;;  %v1878_v35 = vmul.f32 %v6077_v21, %v1872_v47  ;;  %v1908_v48 = vmul.f32 %v1906_v56, %v1902_v52  ;;  %v2053_v1 = vpop.permute.xlu0 %2052 }
 0x367   : > { %2363 = vrot.lane.b32.xlu1 %v6429_v27, %s7485_s8  ;;  %v1932_v46 = vmul.f32 %v1925_v26, %v1918_v60  ;;  %v1933_v61 = vmul.f32 %v1929_v29, %v1917_v7  ;;  %v1881_v21 = vadd.f32 %v1879_v38, %v1852_v15  ;;  %v5215_v29 = vmov 47  }
 0x368   : > { %v1880_v20 = vadd.f32 %v1878_v35, %v1851_v16  ;;  %4681 = vset.pattern.permute.xlu0 %v5215_v29  ;;  %v5216_v60 = vmov 48   ;;  %vm2454_vm15 = vcmp.lt.s32.totalorder %v5531_v40, 110 }
 0x369   : > { %v1943_v25 = vpop.permute.xlu1 %1942  ;;  %v1938_v30 = vmul.f32 %v1936_v12, %v1932_v46  ;;  %v1939_v42 = vmul.f32 %v1936_v12, %v1933_v61  ;;  %v1911_v26 = vadd.f32 %v1909_v14, %v1881_v21  ;;  %2890 = vperm.xlu0 %4681, %v6438_v10   ;;  %v2008_v61 = vld [vmem:[#allocation5 + $0x63] ss:$8 sm:$0x3] }
 0x36a   : > { %v1910_v17 = vadd.f32 %v1908_v48, %v1880_v20  ;;  %v6915_v35 = vpop.permute.xlu0 %2082  ;;  %v2013_v16 = vrot.slane %v2008_v61, %v5534_v41  ;;  %v2017_v15 = vrot.slane %v2008_v61, %v5537_v44  ;;  %v2037_v48 = vld [vmem:[#allocation5 + $0x64] ss:$8 sm:$0x3] }
 0x36b   : > { %2365 = vrot.lane.b32.xlu1 %v6431_v62, %s7485_s8  ;;  %v1941_v19 = vadd.f32 %v1939_v42, %v1911_v26  ;;  %s5225_s8 = smov 81  }
 0x36c   : > { %v1940_v34 = vadd.f32 %v1938_v30, %v1910_v17  ;;  %v2097_v17 = vld [vmem:[#allocation5 + $0x66] ss:$8 sm:$0x3] }
 0x36d   : > { %v1945_v54 = vpop.permute.xlu1 %1944  ;;  %4682 = vset.pattern.permute.xlu0 %v5216_v60 }
 0x36e   : > { %v1947_v33 = vsel %vm1946_vm12, %v1943_v25, %v1945_v54  ;;  %v1948_v58 = vsel %vm1946_vm12, %v1945_v54, %v1943_v25  ;;  %2920 = vperm.xlu0 %4682, %v6438_v10   ;;  %v6920_v46 = vpop.permute.xlu0 %2112  ;;  %vm2484_vm12 = vcmp.lt.s32.totalorder %v5531_v40, 109 }
 0x36f   : > { %2392 = vrot.lane.b32.xlu1 %v6429_v27, %s7488_s9  ;;  %v1962_v55 = vmul.f32 %v1955_v6, %v1948_v58  ;;  %v1963_v63 = vmul.f32 %v1959_v4, %v1947_v33  ;;  %v7490_v4 = vmov 36  }
 0x371   : > { %v1973_v23 = vpop.permute.xlu1 %1972  ;;  %v1968_v36 = vmul.f32 %v1966_v18, %v1962_v55  ;;  %v1969_v2 = vmul.f32 %v1966_v18, %v1963_v63  ;;  %v2067_v18 = vld [vmem:[#allocation5 + $0x65] ss:$8 sm:$0x3] }
 0x372   : > { %4683 = vset.pattern.permute.xlu0 %v7472_v49  ;;  %v2072_v26 = vrot.slane %v2067_v18, %v5534_v41 }
 0x373   : > { %2394 = vrot.lane.b32.xlu1 %v6431_v62, %s7488_s9  ;;  %v1970_v5 = vadd.f32 %v1968_v36, %v1940_v34  ;;  %v1971_v31 = vadd.f32 %v1969_v2, %v1941_v19  ;;  %2937 = vperm.xlu0 %4683, %v331_v39   ;;  %v2076_v36 = vrot.slane %v2067_v18, %v5537_v44  ;;  %v2127_v19 = vld [vmem:[#allocation5 + $0x67] ss:$8 sm:$0x3]  ;;  %s5226_s9 = smov 80  }
 0x374   : > { %v2102_v34 = vrot.slane %v2097_v17, %v5534_v41  ;;  %v2132_v60 = vrot.slane %v2127_v19, %v5534_v41 }
 0x375   : > { %v1975_v56 = vpop.permute.xlu1 %1974 }
 0x376   : > { %v1976_v25 = vsel %vm342_vm1, %v1973_v23, %v1975_v56  ;;  %v1977_v28 = vsel %vm342_vm1, %v1975_v56, %v1973_v23  ;;  %v6929_v23 = vpop.permute.xlu0 %2142  ;;  %vm2063_vm1 = vcmp.lt.s32.totalorder %v5531_v40, 14 }
 0x377   : > { %v1991_v32 = vmul.f32 %v1984_v45, %v1977_v28  ;;  %v1992_v57 = vmul.f32 %v1988_v13, %v1976_v25  ;;  %2421 = vrot.lane.b32.xlu1 %v6429_v27, %s7489_s13  ;;  %4686 = vset.pattern.permute.xlu0 %v7490_v4  ;;  %v2042_v45 = vrot.slane %v2037_v48, %v5534_v41 }
 0x378   : > { %3016 = vperm.xlu0 %4686, %v4905_v9   ;;  %v2046_v13 = vrot.slane %v2037_v48, %v5537_v44 }
 0x379   : > { %v1997_v50 = vmul.f32 %v1995_v3, %v1991_v32  ;;  %v1998_v47 = vmul.f32 %v1995_v3, %v1992_v57  ;;  %v2002_v8 = vpop.permute.xlu1 %2001  ;;  %v2156_v32 = vld [vmem:[#allocation5 + $0x70] ss:$8 sm:$0x3] }
 0x37a   : > { %v2172_v57 = vpop.permute.xlu0 %2171  ;;  %v2161_v39 = vrot.slane %v2156_v32, %v5534_v41 }
 0x37b   : > { %v6898_v12 = vadd.f32 %v1997_v50, %v1970_v5  ;;  %v6900_v11 = vadd.f32 %v1998_v47, %v1971_v31  ;;  %2423 = vrot.lane.b32.xlu1 %v6431_v62, %s7489_s13  ;;  %v2106_v31 = vrot.slane %v2097_v17, %v5537_v44  ;;  %s5227_s13 = smov 79  }
 0x37d   : > { %v2004_v7 = vpop.permute.xlu1 %2003 }
 0x37e   : > { %v2005_v14 = vsel %vm370_vm0, %v2002_v8, %v2004_v7  ;;  %v2006_v55 = vsel %vm370_vm0, %v2004_v7, %v2002_v8  ;;  %vm2093_vm0 = vcmp.lt.s32.totalorder %v5531_v40, 13 }
 0x37f   : > { %2450 = vrot.lane.b32.xlu1 %v6429_v27, %s5217_s20  ;;  %v2020_v20 = vmul.f32 %v2013_v16, %v2006_v55  ;;  %v2021_v21 = vmul.f32 %v2017_v15, %v2005_v14 }
 0x381   : > { %v2031_v52 = vpop.permute.xlu1 %2030  ;;  %v2026_v3 = vmul.f32 %v2024_v0, %v2020_v20  ;;  %v2027_v5 = vmul.f32 %v2024_v0, %v2021_v21  ;;  %v2185_v0 = vld [vmem:[#allocation5 + $0x71] ss:$8 sm:$0x3] }
 0x383   : > { %2452 = vrot.lane.b32.xlu1 %v6431_v62, %s5217_s20  ;;  %v2028_v61 = vadd.f32 %v2026_v3, %v6898_v12  ;;  %v2190_v12 = vrot.slane %v2185_v0, %v5534_v41  ;;  %s5228_s20 = smov 78  }
 0x385   : > { %v2033_v6 = vpop.permute.xlu1 %2032 }
 0x386   : > { %v2034_v30 = vsel %vm400_vm2, %v2031_v52, %v2033_v6  ;;  %v2035_v42 = vsel %vm400_vm2, %v2033_v6, %v2031_v52  ;;  %vm2123_vm2 = vcmp.lt.s32.totalorder %v5531_v40, 3  ;;  %v2136_v52 = vrot.slane %v2127_v19, %v5537_v44 }
 0x387   : > { %2480 = vrot.lane.b32.xlu1 %v6429_v27, %s5218_s15  ;;  %v2049_v25 = vmul.f32 %v2042_v45, %v2035_v42  ;;  %v2050_v28 = vmul.f32 %v2046_v13, %v2034_v30  ;;  %v2165_v6 = vrot.slane %v2156_v32, %v5537_v44  ;;  %v2222_v32 = vld [vmem:[#allocation5 + $0x73] ss:$8 sm:$0x3] }
 0x389   : > { %v2060_v54 = vpop.permute.xlu1 %2059  ;;  %v2055_v4 = vmul.f32 %v2053_v1, %v2049_v25 }
 0x38b   : > { %2482 = vrot.lane.b32.xlu1 %v6431_v62, %s5218_s15  ;;  %v2057_v45 = vadd.f32 %v2055_v4, %v2028_v61  ;;  %v2251_v61 = vld [vmem:[#allocation5 + $0x74] ss:$8 sm:$0x3]  ;;  %s5229_s15 = smov 77  }
 0x38d   : > { %v2062_v10 = vpop.permute.xlu1 %2061 }
 0x38e   : > { %v2064_v2 = vsel %vm2063_vm1, %v2060_v54, %v2062_v10  ;;  %v2065_v56 = vsel %vm2063_vm1, %v2062_v10, %v2060_v54  ;;  %v2056_v54 = vmul.f32 %v2053_v1, %v2050_v28  ;;  %vm2514_vm1 = vcmp.lt.s32.totalorder %v5531_v40, 99 }
 0x38f   : > { %2510 = vrot.lane.b32.xlu1 %v6429_v27, %s5219_s17  ;;  %v2079_v50 = vmul.f32 %v2072_v26, %v2065_v56  ;;  %v2080_v47 = vmul.f32 %v2076_v36, %v2064_v2 }
 0x391   : > { %v2090_v49 = vpop.permute.xlu1 %2089  ;;  %v2085_v48 = vmul.f32 %v6915_v35, %v2079_v50  ;;  %v2086_v14 = vmul.f32 %v6915_v35, %v2080_v47 }
 0x393   : > { %2512 = vrot.lane.b32.xlu1 %v6431_v62, %s5219_s17  ;;  %v2087_v42 = vadd.f32 %v2085_v48, %v2057_v45 }
 0x395   : > { %v2092_v33 = vpop.permute.xlu1 %2091 }
 0x396   : > { %v2094_v8 = vsel %vm2093_vm0, %v2090_v49, %v2092_v33  ;;  %v2095_v7 = vsel %vm2093_vm0, %v2092_v33, %v2090_v49  ;;  %v2029_v49 = vadd.f32 %v2027_v5, %v6900_v11  ;;  %v2194_v11 = vrot.slane %v2185_v0, %v5537_v44 }
 0x397   : > { %2540 = vrot.lane.b32.xlu1 %v6429_v27, %s7491_s25  ;;  %v2109_v33 = vmul.f32 %v2102_v34, %v2095_v7  ;;  %v2110_v16 = vmul.f32 %v2106_v31, %v2094_v8  ;;  %v2227_v8 = vrot.slane %v2222_v32, %v5534_v41  ;;  %v2231_v7 = vrot.slane %v2222_v32, %v5537_v44 }
 0x398   : > { %v2058_v13 = vadd.f32 %v2056_v54, %v2029_v49  ;;  %vm7503_vm0 = vcmp.lt.s32.totalorder %v5531_v40, 98 }
 0x399   : > { %v2120_v58 = vpop.permute.xlu1 %2119  ;;  %v2115_v21 = vmul.f32 %v6920_v46, %v2109_v33 }
 0x39a   : > { %v2088_v17 = vadd.f32 %v2086_v14, %v2058_v13 }
 0x39b   : > { %2542 = vrot.lane.b32.xlu1 %v6431_v62, %s7491_s25  ;;  %v2117_v25 = vadd.f32 %v2115_v21, %v2087_v42 }
 0x39d   : > { %v2122_v38 = vpop.permute.xlu1 %2121 }
 0x39e   : > { %v2124_v9 = vsel %vm2123_vm2, %v2120_v58, %v2122_v38  ;;  %v2125_v10 = vsel %vm2123_vm2, %v2122_v38, %v2120_v58  ;;  %v2201_v38 = vpop.permute.xlu0 %2200  ;;  %vm7504_vm2 = vmmov %vm7503_vm0 }
 0x39f   : > { %2569 = vrot.lane.b32.xlu1 %v6429_v27, %s5220_s29  ;;  %v2139_v55 = vmul.f32 %v2132_v60, %v2125_v10  ;;  %v2140_v18 = vmul.f32 %v2136_v52, %v2124_v9 }
 0x3a1   : > { %v2150_v51 = vpop.permute.xlu1 %2149  ;;  %v2145_v26 = vmul.f32 %v6929_v23, %v2139_v55  ;;  %v2146_v36 = vmul.f32 %v6929_v23, %v2140_v18 }
 0x3a3   : > { %2571 = vrot.lane.b32.xlu1 %v6431_v62, %s5220_s29 }
 0x3a5   : > { %v2152_v63 = vpop.permute.xlu1 %2151 }
 0x3a6   : > { %v2153_v1 = vsel %vm922_vm11, %v2150_v51, %v2152_v63  ;;  %v2154_v58 = vsel %vm922_vm11, %v2152_v63, %v2150_v51  ;;  %v2116_v51 = vmul.f32 %v6920_v46, %v2110_v16  ;;  %v2147_v46 = vadd.f32 %v2145_v26, %v2117_v25 }
 0x3a7   : > { %2599 = vrot.lane.b32.xlu1 %v6429_v27, %s7492_s28  ;;  %v2168_v63 = vmul.f32 %v2161_v39, %v2154_v58  ;;  %v2169_v30 = vmul.f32 %v2165_v6, %v2153_v1  ;;  %v2256_v58 = vrot.slane %v2251_v61, %v5534_v41  ;;  %vm2307_vm11 = vcmp.lt.s32.totalorder %v5531_v40, 115 }
 0x3a8   : > { %v2118_v28 = vadd.f32 %v2116_v51, %v2088_v17 }
 0x3a9   : > { %v2179_v29 = vpop.permute.xlu1 %2178  ;;  %v2174_v34 = vmul.f32 %v2172_v57, %v2168_v63  ;;  %v2175_v19 = vmul.f32 %v2172_v57, %v2169_v30 }
 0x3aa   : > { %v2148_v3 = vadd.f32 %v2146_v36, %v2118_v28  ;;  %v2311_v28 = vld [vmem:[#allocation5 + $0x76] ss:$8 sm:$0x3] }
 0x3ab   : > { %2601 = vrot.lane.b32.xlu1 %v6431_v62, %s7492_s28  ;;  %v2176_v23 = vadd.f32 %v2174_v34, %v2147_v46  ;;  %s4394_s28 = sshll.u32 %s5287_s27, 7  ;;  %s5230_s27 = smov [#allocation11]  }
 0x3ac   : > { %v2177_v47 = vadd.f32 %v2175_v19, %v2148_v3 }
 0x3ad   : > { %v2181_v15 = vpop.permute.xlu1 %2180 }
 0x3ae   : > { %v2182_v20 = vsel %vm430_vm3, %v2179_v29, %v2181_v15  ;;  %v2183_v35 = vsel %vm430_vm3, %v2181_v15, %v2179_v29  ;;  %v2209_v29 = vpop.permute.xlu0 %2208  ;;  %vm7494_vm3 = vcmp.lt.s32.totalorder %v5531_v40, 126 }
 0x3af   : > { %2628 = vrot.lane.b32.xlu1 %v6429_v27, %s5221_s16  ;;  %v2197_v2 = vmul.f32 %v2190_v12, %v2183_v35  ;;  %v2198_v56 = vmul.f32 %v2194_v11, %v2182_v20  ;;  %v2211_v54 = vmul.f32 %v2209_v29, %v6429_v27  ;;  %v2212_v9 = vmul.f32 %v2209_v29, %v6431_v62  ;;  %v2281_v20 = vld [vmem:[#allocation5 + $0x75] ss:$8 sm:$0x3] }
 0x3b0   : > { %v2286_v63 = vrot.slane %v2281_v20, %v5534_v41  ;;  %v2290_v30 = vrot.slane %v2281_v20, %v5537_v44 }
 0x3b1   : > { %v2203_v5 = vmul.f32 %v2201_v38, %v2197_v2  ;;  %v2204_v31 = vmul.f32 %v2201_v38, %v2198_v56  ;;  %v2260_v38 = vrot.slane %v2251_v61, %v5537_v44 }
 0x3b2   : > { %v2218_v60 = vpop.permute.xlu0 %2217 }
 0x3b3   : > { %2630 = vrot.lane.b32.xlu1 %v6431_v62, %s5221_s16  ;;  %v2205_v52 = vadd.f32 %v2203_v5, %v2176_v23  ;;  %v2206_v39 = vadd.f32 %v2204_v31, %v2177_v47  ;;  %v2316_v5 = vrot.slane %v2311_v28, %v5534_v41  ;;  %v2320_v31 = vrot.slane %v2311_v28, %v5537_v44  ;;  %v4692_v28 = vld [vmem:[#allocation8 + $0xe0] ss:$16 sps:$4 sm:$0xff]   ;;  %s7509_s16 = sshll.u32 %s5418_s12, 3 }
 0x3b5   : > { %v2213_v49 = vadd.f32 %v2211_v54, %v2205_v52  ;;  %v2214_v33 = vadd.f32 %v2212_v9, %v2206_v39  ;;  %v2341_v52 = vld [vmem:[#allocation5 + $0x77] ss:$8 sm:$0x3] }
 0x3b6   : > { %v2245_v55 = vpop.permute.xlu0 %2244  ;;  %v2346_v9 = vrot.slane %v2341_v52, %v5534_v41 }
 0x3b7   : > { %2658 = vrot.lane.b32.xlu1 %v6429_v27, %s7493_s30 }
 0x3ba   : > { %v2238_v50 = vpop.permute.xlu1 %2237  ;;  %v2297_v56 = vpop.permute.xlu0 %2296 }
 0x3bb   : > { %2660 = vrot.lane.b32.xlu1 %v6431_v62, %s7493_s30  ;;  %s325_s30 = scalar_lea.vmem [#allocation11], %s7509_s16 }
 0x3be   : > { %v2216_v6 = vpop.permute.xlu1 %2215 }
 0x3bf   : > { %v2219_v57 = vsel %vm468_vm4, %v2216_v6, %v2218_v60  ;;  %v2220_v4 = vsel %vm468_vm4, %v2218_v60, %v2216_v6  ;;  %2687 = vrot.lane.b32.xlu1 %v6429_v27, %s5222_s10  ;;  %vm7495_vm4 = vmmov %vm7494_vm3 }
 0x3c0   : > { %v2234_v10 = vmul.f32 %v2227_v8, %v2219_v57  ;;  %v2235_v0 = vmul.f32 %v2231_v7, %v2220_v4  ;;  %v2327_v8 = vpop.permute.xlu0 %2326 }
 0x3c2   : > { %v2240_v16 = vmul.f32 %v2238_v50, %v2234_v10  ;;  %v2241_v15 = vmul.f32 %v2238_v50, %v2235_v0  ;;  %v2267_v48 = vpop.permute.xlu1 %2266  ;;  %v2350_v10 = vrot.slane %v2341_v52, %v5537_v44  ;;  %v4699_v52 = vld [vmem:[#allocation8 + $0xc8] ss:$16 sps:$4 sm:$0xff]  }
 0x3c3   : > { %2689 = vrot.lane.b32.xlu1 %v6431_v62, %s5222_s10  ;;  %s4126_s10 = sshll.u32 %s325_s30, 4  ;;  %s4127_s10 = int_to_ptr.vmem [resolvable:$true] %s4126_s10 }
 0x3c4   : > { %v2242_v14 = vadd.f32 %v2240_v16, %v2213_v49  ;;  %v2243_v1 = vadd.f32 %v2241_v15, %v2214_v33  ;;  %v2357_v33 = vpop.permute.xlu0 %2356 }
 0x3c6   : > { %v2247_v18 = vpop.permute.xlu1 %2246 }
 0x3c7   : > { %v2248_v12 = vsel %vm7494_vm3, %v2245_v55, %v2247_v18  ;;  %v2249_v11 = vsel %vm7495_vm4, %v2247_v18, %v2245_v55  ;;  %2717 = vrot.lane.b32.xlu1 %v6429_v27, %s5223_s11  ;;  %vm2573_vm3 = vcmp.lt.s32.totalorder %v5531_v40, 97  ;;  %vm7505_vm4 = vcmp.lt.s32.totalorder %v5531_v40, 96 }
 0x3c8   : > { %v2263_v45 = vmul.f32 %v2256_v58, %v2248_v12  ;;  %v2264_v13 = vmul.f32 %v2260_v38, %v2249_v11  ;;  %v2386_v20 = vpop.permute.xlu0 %2385 }
 0x3ca   : > { %v2269_v35 = vmul.f32 %v2267_v48, %v2263_v45  ;;  %v2270_v21 = vmul.f32 %v2267_v48, %v2264_v13  ;;  %v2274_v51 = vpop.permute.xlu1 %2273  ;;  %v2370_v48 = vld [vmem:[#allocation5 + $0x80] ss:$8 sm:$0x3] }
 0x3cb   : > { %2719 = vrot.lane.b32.xlu1 %v6431_v62, %s5223_s11  ;;  %v2375_v18 = vrot.slane %v2370_v48, %v5534_v41  ;;  %v2379_v12 = vrot.slane %v2370_v48, %v5537_v44 }
 0x3cc   : > { %v2271_v42 = vadd.f32 %v2269_v35, %v2242_v14  ;;  %v2272_v17 = vadd.f32 %v2270_v21, %v2243_v1 }
 0x3ce   : > { %v2276_v26 = vpop.permute.xlu1 %2275 }
 0x3cf   : > { %v2278_v36 = vsel %vm2277_vm8, %v2274_v51, %v2276_v26  ;;  %v2279_v2 = vsel %vm2277_vm8, %v2276_v26, %v2274_v51  ;;  %2747 = vrot.lane.b32.xlu1 %v6429_v27, %s5224_s26  ;;  %v2399_v51 = vld [vmem:[#allocation5 + $0x81] ss:$8 sm:$0x3]  ;;  %vm7506_vm8 = vmmov %vm7505_vm4 }
 0x3d0   : > { %v2293_v29 = vmul.f32 %v2286_v63, %v2278_v36  ;;  %v2294_v25 = vmul.f32 %v2290_v30, %v2279_v2  ;;  %v2404_v36 = vrot.slane %v2399_v51, %v5534_v41  ;;  %v2408_v2 = vrot.slane %v2399_v51, %v5537_v44  ;;  %v4714_v51 = vld [vmem:[#allocation8 + $0x6c] ss:$16 sps:$4 sm:$0xff]  }
 0x3d2   : > { %v2299_v34 = vmul.f32 %v2297_v56, %v2293_v29  ;;  %v2300_v19 = vmul.f32 %v2297_v56, %v2294_v25  ;;  %v2304_v32 = vpop.permute.xlu1 %2303  ;;  %v4688_v56 = vld [vmem:[#allocation8 + $0xe4] ss:$16 sps:$4 sm:$0xff]   ;;  %v4690_v29 = vld [vmem:[#allocation8 + $0xec] ss:$16 sps:$4 sm:$0xff]  }
 0x3d3   : > { %2749 = vrot.lane.b32.xlu1 %v6431_v62, %s5224_s26  ;;  %3439 = vmatprep.subr.bf16.mxu0 %v4688_v56  ;;  %v4717_v56 = vld [vmem:[#allocation8 + $0x68] ss:$16 sps:$4 sm:$0xff]  }
 0x3d4   : > { %v2301_v46 = vadd.f32 %v2299_v34, %v2271_v42  ;;  %v2302_v3 = vadd.f32 %v2300_v19, %v2272_v17  ;;  %v4693_v34 = vld [vmem:[#allocation8 + $0xe8] ss:$16 sps:$4 sm:$0xff]   ;;  %3480 = vmatprep.subr.bf16.mxu1 %v4690_v29  ;;  %3440 = vmatpush1.bf16.msra.mxu0 %v4692_v28 }
 0x3d5   : > { %3481 = vmatpush1.bf16.msra.mxu1 %v4693_v34 }
 0x3d6   : > { %v2306_v50 = vpop.permute.xlu1 %2305 }
 0x3d7   : > { %v2308_v23 = vsel %vm2307_vm11, %v2304_v32, %v2306_v50  ;;  %v2309_v47 = vsel %vm2307_vm11, %v2306_v50, %v2304_v32  ;;  %2777 = vrot.lane.b32.xlu1 %v6429_v27, %s5225_s8  ;;  %v4694_v50 = vld [vmem:[#allocation8 + $0xc4] ss:$16 sps:$4 sm:$0xff]   ;;  %vm2632_vm11 = vcmp.lt.s32.totalorder %v5531_v40, 95 }
 0x3d8   : > { %v2323_v7 = vmul.f32 %v2316_v5, %v2308_v23  ;;  %v2324_v60 = vmul.f32 %v2320_v31, %v2309_v47  ;;  %v2428_v31 = vld [vmem:[#allocation5 + $0x82] ss:$8 sm:$0x3]  ;;  %v4696_v23 = vld [vmem:[#allocation8 + $0xcc] ss:$16 sps:$4 sm:$0xff]   ;;  %3441 = vmatprep.subr.bf16.mxu0 %v4694_v50 }
 0x3d9   : > { %3482 = vmatprep.subr.bf16.mxu1 %v4696_v23  ;;  %v4722_v50 = vld [vmem:[#allocation8 + $0x40] ss:$16 sps:$4 sm:$0xff]   ;;  %v4723_v23 = vld [vmem:[#allocation8 + $0x48] ss:$16 sps:$4 sm:$0xff]  }
 0x3da   : > { %v2329_v39 = vmul.f32 %v2327_v8, %v2323_v7  ;;  %v2330_v6 = vmul.f32 %v2327_v8, %v2324_v60  ;;  %v2334_v57 = vpop.permute.xlu1 %2333  ;;  %v4698_v60 = vld [vmem:[#allocation8 + $0xc0] ss:$16 sps:$4 sm:$0xff]   ;;  %3483 = vmatpush1.bf16.msra.mxu1 %v4699_v52  ;;  %v2518_v52 = vld [vmem:[#allocation5 + $0x85] ss:$8 sm:$0x3] }
 0x3db   : > { %2779 = vrot.lane.b32.xlu1 %v6431_v62, %s5225_s8  ;;  %3442 = vmatpush1.bf16.msra.mxu0 %v4698_v60  ;;  %s7204_s8 = scalar_lea.hbm %s7247_s6, %s4394_s28 }
 0x3dc   : > { %v2331_v4 = vadd.f32 %v2329_v39, %v2301_v46  ;;  %v2332_v54 = vadd.f32 %v2330_v6, %v2302_v3  ;;  %v2415_v46 = vpop.permute.xlu0 %2414  ;;  %v2433_v39 = vrot.slane %v2428_v31, %v5534_v41 }
 0x3de   : > { %v2336_v0 = vpop.permute.xlu1 %2335 }
 0x3df   : > { %v2338_v61 = vsel %vm2337_vm9, %v2334_v57, %v2336_v0  ;;  %v2339_v49 = vsel %vm2337_vm9, %v2336_v0, %v2334_v57  ;;  %2807 = vrot.lane.b32.xlu1 %v6429_v27, %s5226_s9  ;;  %v4704_v0 = vld [vmem:[#allocation8 + $0xa0] ss:$16 sps:$4 sm:$0xff]   ;;  %vm2691_vm9 = vcmp.lt.s32.totalorder %v5531_v40, 93 }
 0x3e0   : > { %v2353_v16 = vmul.f32 %v2346_v9, %v2338_v61  ;;  %v2354_v15 = vmul.f32 %v2350_v10, %v2339_v49  ;;  %v4702_v9 = vld [vmem:[#allocation8 + $0xac] ss:$16 sps:$4 sm:$0xff]   ;;  %v4705_v61 = vld [vmem:[#allocation8 + $0xa8] ss:$16 sps:$4 sm:$0xff]  }
 0x3e1   : > { %3484 = vmatprep.subr.bf16.mxu1 %v4702_v9  ;;  %v4729_v9 = vld [vmem:[#allocation8 + $0x28] ss:$16 sps:$4 sm:$0xff]  }
 0x3e2   : > { %v2359_v14 = vmul.f32 %v2357_v33, %v2353_v16  ;;  %v2360_v1 = vmul.f32 %v2357_v33, %v2354_v15  ;;  %v2364_v58 = vpop.permute.xlu1 %2363  ;;  %v2444_v16 = vpop.permute.xlu0 %2443  ;;  %3485 = vmatpush1.bf16.msra.mxu1 %v4705_v61 }
 0x3e3   : > { %2809 = vrot.lane.b32.xlu1 %v6431_v62, %s5226_s9  ;;  %s4112_s9 = scalar_lea.sflag [#allocation4], %s5418_s12 }
 0x3e4   : > { %v2361_v38 = vadd.f32 %v2359_v14, %v2331_v4  ;;  %v2362_v55 = vadd.f32 %v2360_v1, %v2332_v54  ;;  %v2437_v4 = vrot.slane %v2428_v31, %v5537_v44  ;;  %v4700_v54 = vld [vmem:[#allocation8 + $0xa4] ss:$16 sps:$4 sm:$0xff]   ;;  %v2458_v14 = vld [vmem:[#allocation5 + $0x83] ss:$8 sm:$0x3] }
 0x3e5   : > { %3443 = vmatprep.subr.bf16.mxu0 %v4700_v54  ;;  %v4706_v1 = vld [vmem:[#allocation8 + $0x84] ss:$16 sps:$4 sm:$0xff]   ;;  %v4720_v31 = vld [vmem:[#allocation8 + $0x4c] ss:$16 sps:$4 sm:$0xff]   ;;  %v4728_v54 = vld [vmem:[#allocation8 + $0x20] ss:$16 sps:$4 sm:$0xff]  }
 0x3e6   : > { %v2366_v11 = vpop.permute.xlu1 %2365  ;;  %3444 = vmatpush1.bf16.msra.mxu0 %v4704_v0 }
 0x3e7   : > { %v2367_v45 = vsel %vm7496_vm10, %v2364_v58, %v2366_v11  ;;  %v2368_v13 = vsel %vm7497_vm13, %v2366_v11, %v2364_v58  ;;  %2837 = vrot.lane.b32.xlu1 %v6429_v27, %s5227_s13  ;;  %v4708_v58 = vld [vmem:[#allocation8 + $0x8c] ss:$16 sps:$4 sm:$0xff]   ;;  %v4711_v11 = vld [vmem:[#allocation8 + $0x88] ss:$16 sps:$4 sm:$0xff]   ;;  %3445 = vmatprep.subr.bf16.mxu0 %v4706_v1  ;;  %v4734_v1 = vld [vmem:[#allocation8] ss:$16 sps:$4 sm:$0xff]  }
 0x3e8   : > { %v2382_v35 = vmul.f32 %v2375_v18, %v2367_v45  ;;  %v2383_v21 = vmul.f32 %v2379_v12, %v2368_v13  ;;  %v4710_v12 = vld [vmem:[#allocation8 + $0x80] ss:$16 sps:$4 sm:$0xff]   ;;  %v2463_v45 = vrot.slane %v2458_v14, %v5534_v41  ;;  %3486 = vmatprep.subr.bf16.mxu1 %v4708_v58  ;;  %v4735_v58 = vld [vmem:[#allocation8 + $0x8] ss:$16 sps:$4 sm:$0xff]   ;;  %vm7507_vm10 = vcmp.lt.s32.totalorder %v5531_v40, 94 }
 0x3e9   : > { %3487 = vmatpush1.bf16.msra.mxu1 %v4711_v11  ;;  %v2547_v11 = vld [vmem:[#allocation5 + $0x86] ss:$8 sm:$0x3]  ;;  %vm7508_vm13 = vmmov %vm7507_vm10 }
 0x3ea   : > { %v2388_v63 = vmul.f32 %v2386_v20, %v2382_v35  ;;  %v2389_v30 = vmul.f32 %v2386_v20, %v2383_v21  ;;  %v2393_v42 = vpop.permute.xlu1 %2392  ;;  %v2467_v20 = vrot.slane %v2458_v14, %v5537_v44  ;;  %v330_v35 = vld [vmem:[#allocation7 + $0x8] sm:$0xf]  ;;  %3446 = vmatpush1.bf16.msra.mxu0 %v4710_v12  ;;  %v4712_v21 = vld [vmem:[#allocation8 + $0x64] ss:$16 sps:$4 sm:$0xff]   ;;  %3488 = vmatprep.subr.bf16.mxu1 %v4714_v51  ;;  %v4732_v14 = vld [vmem:[#allocation8 + $0xc] ss:$16 sps:$4 sm:$0xff]  }
 0x3eb   : > { %2839 = vrot.lane.b32.xlu1 %v6431_v62, %s5227_s13  ;;  %3447 = vmatprep.subr.bf16.mxu0 %v4712_v21  ;;  %v4741_v21 = vld [vmem:[#allocation8 + $0x1e8] ss:$16 sps:$4 sm:$0xff]   ;;  %s5039_s13 = scalar_lea.vmem %s4127_s10, 128 }
 0x3ec   : > { %v2390_v17 = vadd.f32 %v2388_v63, %v2361_v38  ;;  %v2391_v26 = vadd.f32 %v2389_v30, %v2362_v55  ;;  %p5040_p8 = scmp.ne.s32.totalorder %s4127_s10, %s5039_s13 }
 0x3ed   : > { %3489 = vmatpush1.bf16.msra.mxu1 %v4717_v56  ;;  %v4746_v56 = vld [vmem:[#allocation8 + $0x1c0] ss:$16 sps:$4 sm:$0xff]  }
 0x3ee   : > { %v2395_v25 = vpop.permute.xlu1 %2394  ;;  %3490 = vmatprep.subr.bf16.mxu1 %v4720_v31  ;;  %v4750_v31 = vld [vmem:[#allocation8 + $0x1ac] ss:$16 sps:$4 sm:$0xff]   ;;  %p5041_p10 = pnand %p5040_p8, %p7510_p7 }
 0x3ef   : > { %v2396_v19 = vsel %vm7498_vm7, %v2393_v42, %v2395_v25  ;;  %v2397_v32 = vsel %vm7499_vm6, %v2395_v25, %v2393_v42  ;;  %2867 = vrot.lane.b32.xlu1 %v6429_v27, %s5228_s20  ;;  %vm2721_vm7 = vcmp.lt.s32.totalorder %v5531_v40, 83  ;;  %vm2751_vm6 = vcmp.lt.s32.totalorder %v5531_v40, 82 }
 0x3f0   : > { %v2411_v3 = vmul.f32 %v2404_v36, %v2396_v19  ;;  %v2412_v5 = vmul.f32 %v2408_v2, %v2397_v32  ;;  %v2488_v36 = vld [vmem:[#allocation5 + $0x84] ss:$8 sm:$0x3]  ;;  %v4716_v2 = vld [vmem:[#allocation8 + $0x60] ss:$16 sps:$4 sm:$0xff]   ;;  %v7502_v19 = vmov 1   ;;  %p5042_p0 = pneg %p5041_p10 }
 0x3f1   : > { %v2493_v34 = vrot.slane %v2488_v36, %v5534_v41  ;;  %3448 = vmatpush1.bf16.msra.mxu0 %v4716_v2  ;;  %3491 = vmatpush1.bf16.msra.mxu1 %v4723_v23  ;;  %v4744_v2 = vld [vmem:[#allocation8 + $0x1cc] ss:$16 sps:$4 sm:$0xff]   ;;  %v4753_v23 = vld [vmem:[#allocation8 + $0x1a8] ss:$16 sps:$4 sm:$0xff]  }
 0x3f2   : > { %v2417_v47 = vmul.f32 %v2415_v46, %v2411_v3  ;;  %v2418_v8 = vmul.f32 %v2415_v46, %v2412_v5  ;;  %v2422_v7 = vpop.permute.xlu1 %2421  ;;  %v2497_v3 = vrot.slane %v2488_v36, %v5537_v44  ;;  %v4718_v5 = vld [vmem:[#allocation8 + $0x44] ss:$16 sps:$4 sm:$0xff]  }
 0x3f3   : > { %2869 = vrot.lane.b32.xlu1 %v6431_v62, %s5228_s20  ;;  %3449 = vmatprep.subr.bf16.mxu0 %v4718_v5  ;;  %v4742_v36 = vld [vmem:[#allocation8 + $0x1c4] ss:$16 sps:$4 sm:$0xff]   ;;  %s5043_s20 = sshll.u32 %s5230_s27, 4  ;;  %s5044_s20 = int_to_ptr.vmem [resolvable:$false] %s5043_s20 }
 0x3f4   : > { %v2419_v6 = vadd.f32 %v2417_v47, %v2390_v17  ;;  %v2420_v57 = vadd.f32 %v2418_v8, %v2391_v26  ;;  %v2474_v17 = vpop.permute.xlu0 %2473  ;;  %v4748_v5 = vld [vmem:[#allocation8 + $0x1a4] ss:$16 sps:$4 sm:$0xff]   ;;  %p5046_p12 = scmp.lt.s32.totalorder %s4127_s10, %s5044_s20 }
 0x3f5   : > { %3450 = vmatpush1.bf16.msra.mxu0 %v4722_v50  ;;  %v4752_v50 = vld [vmem:[#allocation8 + $0x1a0] ss:$16 sps:$4 sm:$0xff]  }
 0x3f6   : > { %v2424_v10 = vpop.permute.xlu1 %2423 }
 0x3f7   : > { %v2425_v49 = vsel %vm7500_vm5, %v2422_v7, %v2424_v10  ;;  %v2426_v33 = vsel %vm7501_vm14, %v2424_v10, %v2422_v7  ;;  %2897 = vrot.lane.b32.xlu1 %v6429_v27, %s5229_s15  ;;  %vm2781_vm5 = vcmp.lt.s32.totalorder %v5531_v40, 81  ;;  %vm2811_vm14 = vcmp.lt.s32.totalorder %v5531_v40, 80 }
 0x3f8   : > { %v2440_v15 = vmul.f32 %v2433_v39, %v2425_v49  ;;  %v2441_v48 = vmul.f32 %v2437_v4, %v2426_v33  ;;  %v2504_v60 = vpop.permute.xlu0 %2503  ;;  %v4726_v4 = vld [vmem:[#allocation8 + $0x2c] ss:$16 sps:$4 sm:$0xff]  }
 0x3f9   : > { %3492 = vmatprep.subr.bf16.mxu1 %v4726_v4  ;;  %v4756_v4 = vld [vmem:[#allocation8 + $0x18c] ss:$16 sps:$4 sm:$0xff]  }
 0x3fa   : > { %v2446_v38 = vmul.f32 %v2444_v16, %v2440_v15  ;;  %v2447_v55 = vmul.f32 %v2444_v16, %v2441_v48  ;;  %v2451_v18 = vpop.permute.xlu1 %2450  ;;  %v2523_v16 = vrot.slane %v2518_v52, %v5534_v41  ;;  %v2527_v15 = vrot.slane %v2518_v52, %v5537_v44  ;;  %3493 = vmatpush1.bf16.msra.mxu1 %v4729_v9  ;;  %v4730_v48 = vld [vmem:[#allocation8 + $0x4] ss:$16 sps:$4 sm:$0xff]   ;;  %v4759_v9 = vld [vmem:[#allocation8 + $0x188] ss:$16 sps:$4 sm:$0xff]  }
 0x3fb   : > { %2899 = vrot.lane.b32.xlu1 %v6431_v62, %s5229_s15  ;;  %3494 = vmatprep.subr.bf16.mxu1 %v4732_v14  ;;  %v4762_v14 = vld [vmem:[#allocation8 + $0x16c] ss:$16 sps:$4 sm:$0xff]   ;;  %s5045_s15 = scalar_lea.vmem %s5044_s20, 256 }
 0x3fc   : > { %v2448_v27 = vadd.f32 %v2446_v38, %v2419_v6  ;;  %v2449_v13 = vadd.f32 %v2447_v55, %v2420_v57  ;;  %v4724_v57 = vld [vmem:[#allocation8 + $0x24] ss:$16 sps:$4 sm:$0xff]   ;;  %v2534_v12 = vpop.permute.xlu0 %2533  ;;  %p5047_p2 = scmp.lt.s32.totalorder %s5045_s15, %s5039_s13 }
 0x3fd   : > { %3451 = vmatprep.subr.bf16.mxu0 %v4724_v57  ;;  %v4754_v57 = vld [vmem:[#allocation8 + $0x184] ss:$16 sps:$4 sm:$0xff]  }
 0x3fe   : > { %v2453_v63 = vpop.permute.xlu1 %2452  ;;  %3452 = vmatpush1.bf16.msra.mxu0 %v4728_v54  ;;  %3495 = vmatpush1.bf16.msra.mxu1 %v4735_v58  ;;  %v4758_v54 = vld [vmem:[#allocation8 + $0x180] ss:$16 sps:$4 sm:$0xff]   ;;  %v4765_v58 = vld [vmem:[#allocation8 + $0x168] ss:$16 sps:$4 sm:$0xff]   ;;  %p5048_p9 = por %p5047_p2, %p5046_p12 }
 0x3ff   : > { %v2455_v30 = vsel %vm2454_vm15, %v2451_v18, %v2453_v63  ;;  %v2456_v42 = vsel %vm2454_vm15, %v2453_v63, %v2451_v18  ;;  %2986 = vperm.xlu1 %4684, %v330_v35   ;;  %3453 = vmatprep.subr.bf16.mxu0 %v4730_v48  ;;  %v4760_v48 = vld [vmem:[#allocation8 + $0x164] ss:$16 sps:$4 sm:$0xff]   ;;  %vm2841_vm15 = vcmp.lt.s32.totalorder %v5531_v40, 79 }
 0x400   : > { %v2470_v62 = vmul.f32 %v2463_v45, %v2455_v30  ;;  %v2471_v26 = vmul.f32 %v2467_v20, %v2456_v42  ;;  %v4738_v20 = vld [vmem:[#allocation8 + $0x1ec] ss:$16 sps:$4 sm:$0xff]   ;;  %p5049_p11 = pnand %p5048_p9, %p5042_p0 }
 0x401   : > { %3496 = vmatprep.subr.bf16.mxu1 %v4738_v20 }
 0x402   : > { %v2476_v29 = vmul.f32 %v2474_v17, %v2470_v62  ;;  %v2477_v25 = vmul.f32 %v2474_v17, %v2471_v26  ;;  %v2481_v28 = vpop.permute.xlu1 %2480  ;;  %3454 = vmatpush1.bf16.msra.mxu0 %v4734_v1  ;;  %v2552_v62 = vrot.slane %v2547_v11, %v5534_v41  ;;  %v2556_v26 = vrot.slane %v2547_v11, %v5537_v44  ;;  %v4764_v1 = vld [vmem:[#allocation8 + $0x160] ss:$16 sps:$4 sm:$0xff]   ;;  %v4768_v11 = vld [vmem:[#allocation8 + $0x14c] ss:$16 sps:$4 sm:$0xff]  }
 0x403   : > { %4685 = vset.pattern.permute.xlu1 %v7502_v19  ;;  %3497 = vmatpush2.bf16.msra.mxu1 %v4741_v21  ;;  %v2563_v19 = vpop.permute.xlu0 %2562  ;;  %v4771_v21 = vld [vmem:[#allocation8 + $0x148] ss:$16 sps:$4 sm:$0xff]  }
 0x404   : > { %v2478_v32 = vadd.f32 %v2476_v29, %v2448_v27  ;;  %v2479_v46 = vadd.f32 %v2477_v25, %v2449_v13  ;;  %3000 = vperm.xlu1 %4685, %v330_v35   ;;  %v4736_v13 = vld [vmem:[#allocation8 + $0x1e4] ss:$16 sps:$4 sm:$0xff]   ;;  %v4740_v35 = vld [vmem:[#allocation8 + $0x1e0] ss:$16 sps:$4 sm:$0xff]   ;;  %v4747_v29 = vld [vmem:[#allocation8 + $0x1c8] ss:$16 sps:$4 sm:$0xff]   ;;  %3498 = vmatprep.subr.bf16.mxu1 %v4744_v2 }
 0x405   : > { %3455 = vmatprep.subr.bf16.mxu0 %v4736_v13  ;;  %v4776_v2 = vld [vmem:[#allocation8 + $0x120] ss:$16 sps:$4 sm:$0xff]  }
 0x406   : > { %v2483_v47 = vpop.permute.xlu1 %2482  ;;  %3456 = vmatpush2.bf16.msra.mxu0 %v4740_v35  ;;  %v4770_v35 = vld [vmem:[#allocation8 + $0x140] ss:$16 sps:$4 sm:$0xff]  }
 0x407   : > { %v2485_v8 = vsel %vm2484_vm12, %v2481_v28, %v2483_v47  ;;  %v2486_v7 = vsel %vm2484_vm12, %v2483_v47, %v2481_v28  ;;  %3457 = vmatprep.subr.bf16.mxu0 %v4742_v36  ;;  %3499 = vmatpush2.bf16.msra.mxu1 %v4747_v29  ;;  %v4774_v36 = vld [vmem:[#allocation8 + $0x12c] ss:$16 sps:$4 sm:$0xff]   ;;  %v4778_v29 = vld [vmem:[#allocation8 + $0x104] ss:$16 sps:$4 sm:$0xff]   ;;  %vm2871_vm12 = vcmp.lt.s32.totalorder %v5531_v40, 78 }
 0x408   : > { %v2500_v39 = vmul.f32 %v2493_v34, %v2485_v8  ;;  %v2501_v6 = vmul.f32 %v2497_v3, %v2486_v7  ;;  %3500 = vmatprep.subr.bf16.mxu1 %v4750_v31 }
 0x40a   : > { %v2506_v10 = vmul.f32 %v2504_v60, %v2500_v39  ;;  %v2507_v0 = vmul.f32 %v2504_v60, %v2501_v6  ;;  %v2511_v61 = vpop.permute.xlu1 %2510  ;;  %3458 = vmatpush2.bf16.msra.mxu0 %v4746_v56  ;;  %v4777_v56 = vld [vmem:[#allocation8 + $0x128] ss:$16 sps:$4 sm:$0xff]  }
 0x40b   : > { %3459 = vmatprep.subr.bf16.mxu0 %v4748_v5  ;;  %3501 = vmatpush2.bf16.msra.mxu1 %v4753_v23  ;;  %v4783_v5 = vld [vmem:[#allocation8 + $0x108] ss:$16 sps:$4 sm:$0xff]   ;;  %v4786_v23 = vld [vmem:[#allocation10 + $0x74] ss:$8 sps:$4 sm:$0xff]  }
 0x40c   : > { %v2508_v49 = vadd.f32 %v2506_v10, %v2478_v32  ;;  %v2509_v33 = vadd.f32 %v2507_v0, %v2479_v46  ;;  %v2577_v32 = vld [vmem:[#allocation5 + $0x87] ss:$8 sm:$0x3]  ;;  %3502 = vmatprep.subr.bf16.mxu1 %v4756_v4 }
 0x40d   : > { %v2582_v39 = vrot.slane %v2577_v32, %v5534_v41  ;;  %v2586_v6 = vrot.slane %v2577_v32, %v5537_v44  ;;  %v4782_v32 = vld [vmem:[#allocation8 + $0x100] ss:$16 sps:$4 sm:$0xff]  }
 0x40e   : > { %v2513_v38 = vpop.permute.xlu1 %2512  ;;  %3460 = vmatpush2.bf16.msra.mxu0 %v4752_v50 }
 0x40f   : > { %v2515_v55 = vsel %vm2514_vm1, %v2511_v61, %v2513_v38  ;;  %v2516_v18 = vsel %vm2514_vm1, %v2513_v38, %v2511_v61  ;;  %3461 = vmatprep.subr.bf16.mxu0 %v4754_v57  ;;  %3503 = vmatpush2.bf16.msra.mxu1 %v4759_v9  ;;  %vm2901_vm1 = vcmp.lt.s32.totalorder %v5531_v40, 77 }
 0x410   : > { %v2530_v45 = vmul.f32 %v2523_v16, %v2515_v55  ;;  %v2531_v27 = vmul.f32 %v2527_v15, %v2516_v18  ;;  %3504 = vmatprep.subr.bf16.mxu1 %v4762_v14 }
 0x412   : > { %v2536_v51 = vmul.f32 %v2534_v12, %v2530_v45  ;;  %v2537_v63 = vmul.f32 %v2534_v12, %v2531_v27  ;;  %v2541_v30 = vpop.permute.xlu1 %2540  ;;  %3462 = vmatpush2.bf16.msra.mxu0 %v4758_v54  ;;  %v4766_v12 = vld [vmem:[#allocation8 + $0x144] ss:$16 sps:$4 sm:$0xff]  }
 0x413   : > { %3463 = vmatprep.subr.bf16.mxu0 %v4760_v48  ;;  %3505 = vmatpush2.bf16.msra.mxu1 %v4765_v58  ;;  %v2725_v58 = vld [vmem:[#allocation5 + $0x94] ss:$8 sm:$0x3] }
 0x414   : > { %v2538_v42 = vadd.f32 %v2536_v51, %v2508_v49  ;;  %v2539_v17 = vadd.f32 %v2537_v63, %v2509_v33  ;;  %v2593_v49 = vpop.permute.xlu0 %2592  ;;  %v2606_v33 = vld [vmem:[#allocation5 + $0x90] ss:$8 sm:$0x3]  ;;  %3506 = vmatprep.subr.bf16.mxu1 %v4768_v11 }
 0x415   : > { %v2611_v13 = vrot.slane %v2606_v33, %v5534_v41  ;;  %v2615_v20 = vrot.slane %v2606_v33, %v5537_v44 }
 0x416   : > { %v2543_v25 = vpop.permute.xlu1 %2542  ;;  %3464 = vmatpush2.bf16.msra.mxu0 %v4764_v1  ;;  %v2695_v1 = vld [vmem:[#allocation5 + $0x93] ss:$8 sm:$0x3] }
 0x417   : > { %v2544_v28 = vsel %vm7503_vm0, %v2541_v30, %v2543_v25  ;;  %v2545_v34 = vsel %vm7504_vm2, %v2543_v25, %v2541_v30  ;;  %3465 = vmatprep.subr.bf16.mxu0 %v4766_v12  ;;  %3507 = vmatpush2.bf16.msra.mxu1 %v4771_v21  ;;  %v2704_v21 = vrot.slane %v2695_v1, %v5537_v44 }
 0x418   : > { %v2559_v46 = vmul.f32 %v2552_v62, %v2544_v28  ;;  %v2560_v3 = vmul.f32 %v2556_v26, %v2545_v34  ;;  %v4772_v26 = vld [vmem:[#allocation8 + $0x124] ss:$16 sps:$4 sm:$0xff]   ;;  %3508 = vmatprep.subr.bf16.mxu1 %v4774_v36 }
 0x41a   : > { %v2565_v47 = vmul.f32 %v2563_v19, %v2559_v46  ;;  %v2566_v8 = vmul.f32 %v2563_v19, %v2560_v3  ;;  %v2570_v7 = vpop.permute.xlu1 %2569  ;;  %3466 = vmatpush2.bf16.msra.mxu0 %v4770_v35  ;;  %v4780_v19 = vld [vmem:[#allocation8 + $0x10c] ss:$16 sps:$4 sm:$0xff]   ;;  %v2700_v35 = vrot.slane %v2695_v1, %v5534_v41 }
 0x41b   : > { %3467 = vmatprep.subr.bf16.mxu0 %v4772_v26  ;;  %3509 = vmatpush2.bf16.msra.mxu1 %v4777_v56  ;;  %v2815_v56 = vld [vmem:[#allocation5 + $0x97] ss:$8 sm:$0x3] }
 0x41c   : > { %v2567_v60 = vadd.f32 %v2565_v47, %v2538_v42  ;;  %v2568_v52 = vadd.f32 %v2566_v8, %v2539_v17  ;;  %v2622_v42 = vpop.permute.xlu0 %2621  ;;  %3510 = vmatprep.subr.bf16.mxu1 %v4780_v19  ;;  %v4789_v47 = vld [vmem:[#allocation10 + $0x174] ss:$8 sps:$4 sm:$0xff]  }
 0x41e   : > { %v2572_v10 = vpop.permute.xlu1 %2571  ;;  %3468 = vmatpush2.bf16.msra.mxu0 %v4776_v2 }
 0x41f   : > { %v2574_v0 = vsel %vm2573_vm3, %v2570_v7, %v2572_v10  ;;  %v2575_v61 = vsel %vm2573_vm3, %v2572_v10, %v2570_v7  ;;  %3469 = vmatprep.subr.bf16.mxu0 %v4778_v29  ;;  %3511 = vmatpush2.bf16.msra.mxu1 %v4783_v5 }
 0x420   : > { %v2589_v16 = vmul.f32 %v2582_v39, %v2574_v0  ;;  %v2590_v15 = vmul.f32 %v2586_v6, %v2575_v61  ;;  %4065 = vmatprep.subr.bf16.mxu1 %v4789_v47  ;;  %v2652_v54 = vpop.permute.xlu0 %2651  ;;  %v2636_v0 = vld [vmem:[#allocation5 + $0x91] ss:$8 sm:$0x3] }
 0x421   : > { %v2645_v33 = vrot.slane %v2636_v0, %v5537_v44 }
 0x422   : > { %v2595_v38 = vmul.f32 %v2593_v49, %v2589_v16  ;;  %v2596_v55 = vmul.f32 %v2593_v49, %v2590_v15  ;;  %v2600_v18 = vpop.permute.xlu1 %2599  ;;  %3470 = vmatpush2.bf16.msra.mxu0 %v4782_v32  ;;  %v2641_v49 = vrot.slane %v2636_v0, %v5534_v41  ;;  %v2665_v16 = vld [vmem:[#allocation5 + $0x92] ss:$8 sm:$0x3] }
 0x423   : > { %4024 = vmatprep.subr.bf16.mxu0 %v4786_v23  ;;  %v2845_v23 = vld [vmem:[#allocation5 + $0xa0] ss:$8 sm:$0x3] }
 0x424   : > { %v2597_v45 = vadd.f32 %v2595_v38, %v2567_v60  ;;  %v2598_v27 = vadd.f32 %v2596_v55, %v2568_v52  ;;  %v2681_v10 = vpop.permute.xlu0 %2680  ;;  %v2670_v38 = vrot.slane %v2665_v16, %v5534_v41  ;;  %v2674_v55 = vrot.slane %v2665_v16, %v5537_v44 }
 0x426   : > { %v2602_v51 = vpop.permute.xlu1 %2601 }
 0x427   : > { %v2603_v63 = vsel %vm7505_vm4, %v2600_v18, %v2602_v51  ;;  %v2604_v30 = vsel %vm7506_vm8, %v2602_v51, %v2600_v18  ;;  %v2730_v51 = vrot.slane %v2725_v58, %v5534_v41 }
 0x428   : > { %v2618_v17 = vmul.f32 %v2611_v13, %v2603_v63  ;;  %v2619_v62 = vmul.f32 %v2615_v20, %v2604_v30  ;;  %v2711_v15 = vpop.permute.xlu0 %2710  ;;  %v2755_v20 = vld [vmem:[#allocation5 + $0x95] ss:$8 sm:$0x3]  ;;  %v2785_v63 = vld [vmem:[#allocation5 + $0x96] ss:$8 sm:$0x3] }
 0x429   : > { %v2760_v36 = vrot.slane %v2755_v20, %v5534_v41  ;;  %v2764_v2 = vrot.slane %v2755_v20, %v5537_v44  ;;  %v2790_v19 = vrot.slane %v2785_v63, %v5534_v41  ;;  %v2794_v47 = vrot.slane %v2785_v63, %v5537_v44 }
 0x42a   : > { %v2624_v25 = vmul.f32 %v2622_v42, %v2618_v17  ;;  %v2625_v28 = vmul.f32 %v2622_v42, %v2619_v62  ;;  %v2629_v34 = vpop.permute.xlu1 %2628  ;;  %v2734_v17 = vrot.slane %v2725_v58, %v5537_v44 }
 0x42c   : > { %v7062_v46 = vadd.f32 %v2624_v25, %v2597_v45  ;;  %v7064_v3 = vadd.f32 %v2625_v28, %v2598_v27  ;;  %v2741_v13 = vpop.permute.xlu0 %2740 }
 0x42e   : > { %v2631_v31 = vpop.permute.xlu1 %2630 }
 0x42f   : > { %v2633_v48 = vsel %vm2632_vm11, %v2629_v34, %v2631_v31  ;;  %v2634_v14 = vsel %vm2632_vm11, %v2631_v31, %v2629_v34 }
 0x430   : > { %v2648_v12 = vmul.f32 %v2641_v49, %v2633_v48  ;;  %v2649_v11 = vmul.f32 %v2645_v33, %v2634_v14  ;;  %v2771_v34 = vpop.permute.xlu0 %2770  ;;  %v2850_v48 = vrot.slane %v2845_v23, %v5534_v41 }
 0x432   : > { %v2659_v50 = vpop.permute.xlu1 %2658  ;;  %v2654_v25 = vmul.f32 %v2652_v54, %v2648_v12  ;;  %v2655_v28 = vmul.f32 %v2652_v54, %v2649_v11 }
 0x434   : > { %v2656_v14 = vadd.f32 %v2654_v25, %v7062_v46  ;;  %v2657_v1 = vadd.f32 %v2655_v28, %v7064_v3  ;;  %v2854_v46 = vrot.slane %v2845_v23, %v5537_v44 }
 0x436   : > { %v2661_v8 = vpop.permute.xlu1 %2660 }
 0x437   : > { %v2662_v45 = vsel %vm7507_vm10, %v2659_v50, %v2661_v8  ;;  %v2663_v27 = vsel %vm7508_vm13, %v2661_v8, %v2659_v50  ;;  %v2820_v8 = vrot.slane %v2815_v56, %v5534_v41 }
 0x438   : > { %v2677_v62 = vmul.f32 %v2670_v38, %v2662_v45  ;;  %v2678_v26 = vmul.f32 %v2674_v55, %v2663_v27 }
 0x43a   : > { %v2688_v7 = vpop.permute.xlu1 %2687  ;;  %v2684_v54 = vmul.f32 %v2681_v10, %v2678_v26 }
 0x43c   : > { %v2686_v11 = vadd.f32 %v2684_v54, %v2657_v1 }
 0x43e   : > { %v2690_v60 = vpop.permute.xlu1 %2689 }
 0x43f   : > { %v2692_v30 = vsel %vm2691_vm9, %v2688_v7, %v2690_v60  ;;  %v2693_v42 = vsel %vm2691_vm9, %v2690_v60, %v2688_v7  ;;  %v2824_v7 = vrot.slane %v2815_v56, %v5537_v44  ;;  %v2683_v60 = vmul.f32 %v2681_v10, %v2677_v62 }
 0x440   : > { %v2707_v32 = vmul.f32 %v2700_v35, %v2692_v30  ;;  %v2708_v5 = vmul.f32 %v2704_v21, %v2693_v42 }
 0x441   : > { %v2685_v12 = vadd.f32 %v2683_v60, %v2656_v14 }
 0x442   : > { %v2718_v52 = vpop.permute.xlu1 %2717  ;;  %v2713_v58 = vmul.f32 %v2711_v15, %v2707_v32  ;;  %v2714_v10 = vmul.f32 %v2711_v15, %v2708_v5 }
 0x444   : > { %v2715_v35 = vadd.f32 %v2713_v58, %v2685_v12  ;;  %v2716_v21 = vadd.f32 %v2714_v10, %v2686_v11 }
 0x446   : > { %v2720_v39 = vpop.permute.xlu1 %2719 }
 0x447   : > { %v2722_v31 = vsel %vm2721_vm7, %v2718_v52, %v2720_v39  ;;  %v2723_v50 = vsel %vm2721_vm7, %v2720_v39, %v2718_v52  ;;  %v2801_v39 = vpop.permute.xlu0 %2800 }
 0x448   : > { %v2737_v16 = vmul.f32 %v2730_v51, %v2722_v31  ;;  %v2738_v52 = vmul.f32 %v2734_v17, %v2723_v50  ;;  %v2905_v31 = vld [vmem:[#allocation5 + $0xa2] ss:$8 sm:$0x3] }
 0x44a   : > { %v2748_v6 = vpop.permute.xlu1 %2747  ;;  %v2743_v3 = vmul.f32 %v2741_v13, %v2737_v16  ;;  %v2744_v15 = vmul.f32 %v2741_v13, %v2738_v52 }
 0x44c   : > { %v2746_v56 = vadd.f32 %v2744_v15, %v2716_v21 }
 0x44e   : > { %v2750_v57 = vpop.permute.xlu1 %2749 }
 0x44f   : > { %v2752_v0 = vsel %vm2751_vm6, %v2748_v6, %v2750_v57  ;;  %v2753_v49 = vsel %vm2751_vm6, %v2750_v57, %v2748_v6 }
 0x450   : > { %v2767_v38 = vmul.f32 %v2760_v36, %v2752_v0  ;;  %v2768_v55 = vmul.f32 %v2764_v2, %v2753_v49  ;;  %v2745_v2 = vadd.f32 %v2743_v3, %v2715_v35  ;;  %v2910_v49 = vrot.slane %v2905_v31, %v5534_v41 }
 0x452   : > { %v7066_v4 = vpop.permute.xlu1 %2777  ;;  %v2773_v30 = vmul.f32 %v2771_v34, %v2767_v38  ;;  %v2774_v42 = vmul.f32 %v2771_v34, %v2768_v55 }
 0x454   : > { %v2775_v50 = vadd.f32 %v2773_v30, %v2745_v2  ;;  %v2776_v23 = vadd.f32 %v2774_v42, %v2746_v56 }
 0x456   : > { %v7068_v9 = vpop.permute.xlu1 %2779 }
 0x457   : > { %v2782_v6 = vsel %vm2781_vm5, %v7066_v4, %v7068_v9  ;;  %v2783_v57 = vsel %vm2781_vm5, %v7068_v9, %v7066_v4  ;;  %v2831_v4 = vpop.permute.xlu0 %2830  ;;  %v2875_v9 = vld [vmem:[#allocation5 + $0xa1] ss:$8 sm:$0x3] }
 0x458   : > { %v2797_v51 = vmul.f32 %v2790_v19, %v2782_v6  ;;  %v2798_v63 = vmul.f32 %v2794_v47, %v2783_v57  ;;  %v2880_v36 = vrot.slane %v2875_v9, %v5534_v41 }
 0x45a   : > { %v7071_v61 = vpop.permute.xlu1 %2807  ;;  %v2803_v19 = vmul.f32 %v2801_v39, %v2797_v51  ;;  %v2804_v32 = vmul.f32 %v2801_v39, %v2798_v63 }
 0x45b   : > { %v2861_v25 = vpop.permute.xlu0 %2860 }
 0x45c   : > { %v2805_v16 = vadd.f32 %v2803_v19, %v2775_v50  ;;  %v2806_v52 = vadd.f32 %v2804_v32, %v2776_v23 }
 0x45e   : > { %v7078_v18 = vpop.permute.xlu1 %2809 }
 0x45f   : > { %v2812_v27 = vsel %vm2811_vm14, %v7071_v61, %v7078_v18  ;;  %v2813_v20 = vsel %vm2811_vm14, %v7078_v18, %v7071_v61  ;;  %v2884_v61 = vrot.slane %v2875_v9, %v5537_v44  ;;  %v2891_v0 = vpop.permute.xlu0 %2890 }
 0x460   : > { %v2827_v62 = vmul.f32 %v2820_v8, %v2812_v27  ;;  %v2828_v26 = vmul.f32 %v2824_v7, %v2813_v20 }
 0x462   : > { %v2838_v29 = vpop.permute.xlu1 %2837  ;;  %v2833_v47 = vmul.f32 %v2831_v4, %v2827_v62  ;;  %v2834_v8 = vmul.f32 %v2831_v4, %v2828_v26 }
 0x463   : > { %v2921_v57 = vpop.permute.xlu0 %2920 }
 0x464   : > { %v2835_v14 = vadd.f32 %v2833_v47, %v2805_v16  ;;  %v2836_v1 = vadd.f32 %v2834_v8, %v2806_v52 }
 0x466   : > { %v2840_v33 = vpop.permute.xlu1 %2839 }
 0x467   : > { %v2842_v13 = vsel %vm2841_vm15, %v2838_v29, %v2840_v33  ;;  %v2843_v17 = vsel %vm2841_vm15, %v2840_v33, %v2838_v29  ;;  %v2914_v33 = vrot.slane %v2905_v31, %v5537_v44  ;;  %v2938_v20 = vpop.permute.xlu0 %2937 }
 0x468   : > { %v2857_v5 = vmul.f32 %v2850_v48, %v2842_v13  ;;  %v2858_v29 = vmul.f32 %v2854_v46, %v2843_v17  ;;  %v2950_v51 = vrot.slane %v2938_v20, 7 }
 0x46a   : > { %v2868_v45 = vpop.permute.xlu1 %2867  ;;  %v2863_v39 = vmul.f32 %v2861_v25, %v2857_v5  ;;  %v2864_v48 = vmul.f32 %v2861_v25, %v2858_v29 }
 0x46c   : > { %v2865_v12 = vadd.f32 %v2863_v39, %v2835_v14  ;;  %v2866_v11 = vadd.f32 %v2864_v48, %v2836_v1 }
 0x46e   : > { %v2870_v18 = vpop.permute.xlu1 %2869 }
 0x46f   : > { %v2872_v28 = vsel %vm2871_vm12, %v2868_v45, %v2870_v18  ;;  %v2873_v34 = vsel %vm2871_vm12, %v2870_v18, %v2868_v45 }
 0x470   : > { %v2887_v7 = vmul.f32 %v2880_v36, %v2872_v28  ;;  %v2888_v60 = vmul.f32 %v2884_v61, %v2873_v34 }
 0x472   : > { %v2898_v54 = vpop.permute.xlu1 %2897  ;;  %v2893_v58 = vmul.f32 %v2891_v0, %v2887_v7  ;;  %v2894_v10 = vmul.f32 %v2891_v0, %v2888_v60 }
 0x474   : > { %v2895_v45 = vadd.f32 %v2893_v58, %v2865_v12  ;;  %v2896_v3 = vadd.f32 %v2894_v10, %v2866_v11 }
 0x476   : > { %v2900_v38 = vpop.permute.xlu1 %2899 }
 0x477   : > { %v2902_v55 = vsel %vm2901_vm1, %v2898_v54, %v2900_v38  ;;  %v2903_v6 = vsel %vm2901_vm1, %v2900_v38, %v2898_v54 }
 0x478   : > { %v2917_v46 = vmul.f32 %v2910_v49, %v2902_v55  ;;  %v2918_v40 = vmul.f32 %v2914_v33, %v2903_v6  ;;  %v3017_v6 = vpop.permute.xlu0 %3016 }
 0x47a   : > { %v2923_v15 = vmul.f32 %v2921_v57, %v2917_v46  ;;  %v2924_v27 = vmul.f32 %v2921_v57, %v2918_v40  ;;  %v2987_v7 = vpop.permute.xlu1 %2986  ;;  %v4906_v46 = vld [vmem:[%s5424_s1] sm:$0xff] }
 0x47c   : > { %v2925_v4 = vadd.f32 %v2923_v15, %v2895_v45  ;;  %v2926_v9 = vadd.f32 %v2924_v27, %v2896_v3  ;;  %v4784_v15 = vld [vmem:[#allocation10 + $0x70] ss:$8 sps:$4 sm:$0xff]  }
 0x47d   : > { %v4787_v27 = vld [vmem:[#allocation10 + $0x170] ss:$8 sps:$4 sm:$0xff]  }
 0x47e   : > { %v2929_v35 = vrot.slane %v2925_v4, 1  ;;  %v2930_v21 = vrot.slane %v2926_v9, 1 }
 0x47f   : > { %v3001_v48 = vpop.permute.xlu1 %3000 }
 0x480   : > { %v2933_v63 = vadd.f32 %v2929_v35, %v2925_v4  ;;  %v2934_v30 = vadd.f32 %v2930_v21, %v2926_v9  ;;  %v4792_v4 = vld [vmem:[#allocation10 + $0x64] ss:$8 sps:$4 sm:$0xff]   ;;  %v4790_v35 = vld [vmem:[#allocation10 + $0x60] ss:$8 sps:$4 sm:$0xff]  }
 0x481   : > { %v4795_v9 = vld [vmem:[#allocation10 + $0x164] ss:$8 sps:$4 sm:$0xff]   ;;  %v4793_v21 = vld [vmem:[#allocation10 + $0x160] ss:$8 sps:$4 sm:$0xff]  }
 0x482   : > { %v2940_v42 = vadd.f32 %v2938_v20, %v2933_v63  ;;  %v2941_v13 = vadd.f32 %v2938_v20, %v2934_v30  ;;  %v2952_v17 = vadd.f32 %v2950_v51, %v2933_v63  ;;  %v2953_v62 = vadd.f32 %v2950_v51, %v2934_v30  ;;  %v4798_v51 = vld [vmem:[#allocation10 + $0x54] ss:$8 sps:$4 sm:$0xff]   ;;  %v4796_v30 = vld [vmem:[#allocation10 + $0x50] ss:$8 sps:$4 sm:$0xff]  }
 0x483   : > { %v4801_v63 = vld [vmem:[#allocation10 + $0x154] ss:$8 sps:$4 sm:$0xff]  }
 0x484   : > { %v2942_v26 = vmul.f32 0.5, %v2940_v42  ;;  %v2943_v36 = vmul.f32 0.5, %v2941_v13  ;;  %v2954_v61 = vmul.f32 0.5, %v2952_v17  ;;  %v2955_v18 = vmul.f32 0.5, %v2953_v62  ;;  %v4799_v42 = vld [vmem:[#allocation10 + $0x150] ss:$8 sps:$4 sm:$0xff]  }
 0x485   : > { %v4804_v13 = vld [vmem:[#allocation10 + $0x44] ss:$8 sps:$4 sm:$0xff]   ;;  %v4802_v62 = vld [vmem:[#allocation10 + $0x40] ss:$8 sps:$4 sm:$0xff]  }
 0x486   : > { %4880 = vtanh.f32 %v2942_v26  ;;  %v4807_v17 = vld [vmem:[#allocation10 + $0x144] ss:$8 sps:$4 sm:$0xff]   ;;  %v4805_v26 = vld [vmem:[#allocation10 + $0x140] ss:$8 sps:$4 sm:$0xff]  }
 0x487   : > { %4882 = vtanh.f32 %v2943_v36  ;;  %v4810_v36 = vld [vmem:[#allocation10 + $0x34] ss:$8 sps:$4 sm:$0xff]  }
 0x488   : > { %4884 = vtanh.f32 %v2954_v61  ;;  %v4813_v61 = vld [vmem:[#allocation10 + $0x134] ss:$8 sps:$4 sm:$0xff]  }
 0x489   : > { %4886 = vtanh.f32 %v2955_v18  ;;  %v4808_v18 = vld [vmem:[#allocation10 + $0x30] ss:$8 sps:$4 sm:$0xff]  }
 0x493   : > { %v4881_v2 = vpop.eup %4880 }
 0x494   : > { %v4883_v56 = vpop.eup %4882  ;;  %v2946_v25 = vadd.f32 1.0, %v4881_v2  ;;  %v4811_v2 = vld [vmem:[#allocation10 + $0x130] ss:$8 sps:$4 sm:$0xff]  }
 0x495   : > { %v4885_v28 = vpop.eup %4884  ;;  %v2947_v34 = vadd.f32 1.0, %v4883_v56  ;;  %v4816_v56 = vld [vmem:[#allocation10 + $0x24] ss:$8 sps:$4 sm:$0xff]  }
 0x496   : > { %v4887_v19 = vpop.eup %4886  ;;  %v2948_v32 = vmul.f32 0.5, %v2946_v25  ;;  %v2958_v5 = vadd.f32 1.0, %v4885_v28  ;;  %v4819_v25 = vld [vmem:[#allocation10 + $0x124] ss:$8 sps:$4 sm:$0xff]   ;;  %v4814_v28 = vld [vmem:[#allocation10 + $0x20] ss:$8 sps:$4 sm:$0xff]  }
 0x497   : > { %v2949_v29 = vmul.f32 0.5, %v2947_v34  ;;  %v2959_v31 = vadd.f32 1.0, %v4887_v19  ;;  %v4817_v34 = vld [vmem:[#allocation10 + $0x120] ss:$8 sps:$4 sm:$0xff]   ;;  %v4822_v19 = vld [vmem:[#allocation10 + $0x14] ss:$8 sps:$4 sm:$0xff]  }
 0x498   : > { %v2960_v50 = vmul.f32 0.5, %v2958_v5  ;;  %v2965_v23 = vrot.slane %v2948_v32, %v5534_v41  ;;  %v4825_v32 = vld [vmem:[#allocation10 + $0x114] ss:$8 sps:$4 sm:$0xff]   ;;  %v4820_v5 = vld [vmem:[#allocation10 + $0x10] ss:$8 sps:$4 sm:$0xff]  }
 0x499   : > { %v2961_v47 = vmul.f32 0.5, %v2959_v31  ;;  %v2969_v8 = vrot.slane %v2949_v29, %v5534_v41  ;;  %v4823_v29 = vld [vmem:[#allocation10 + $0x110] ss:$8 sps:$4 sm:$0xff]   ;;  %v4828_v31 = vld [vmem:[#allocation10 + $0x4] ss:$8 sps:$4 sm:$0xff]  }
 0x49a   : > { %v2970_v60 = vmul.f32 %v2965_v23, %v6407_v53  ;;  %v2975_v54 = vrot.slane %v2960_v50, %v6363_v24  ;;  %v4831_v50 = vld [vmem:[#allocation10 + $0x104] ss:$8 sps:$4 sm:$0xff]   ;;  %v4826_v23 = vld [vmem:[#allocation10] ss:$8 sps:$4 sm:$0xff]  }
 0x49b   : > { %v2971_v0 = vmul.f32 %v2969_v8, %v6409_v43  ;;  %v2979_v49 = vrot.slane %v2961_v47, %v6363_v24  ;;  %v4829_v47 = vld [vmem:[#allocation10 + $0x100] ss:$8 sps:$4 sm:$0xff]   ;;  %v4834_v8 = vld [vmem:[#allocation10 + $0xf4] ss:$8 sps:$4 sm:$0xff]  }
 0x49c   : > { %v2980_v33 = vmul.f32 %v2975_v54, %v6402_v22  ;;  %v4835_v54 = vld [vmem:[#allocation10 + $0x1f0] ss:$8 sps:$4 sm:$0xff]  }
 0x49d   : > { %v2981_v16 = vmul.f32 %v2979_v49, %v6405_v37  ;;  %v4843_v49 = vld [vmem:[#allocation10 + $0x1e4] ss:$8 sps:$4 sm:$0xff]  }
 0x49e   : > { %v2982_v52 = vadd.f32 %v2980_v33, %v2970_v60  ;;  %v4832_v60 = vld [vmem:[#allocation10 + $0xf0] ss:$8 sps:$4 sm:$0xff]   ;;  %v4838_v33 = vld [vmem:[#allocation10 + $0xe0] ss:$8 sps:$4 sm:$0xff]  }
 0x49f   : > { %v2983_v39 = vadd.f32 %v2981_v16, %v2971_v0  ;;  %v4840_v0 = vld [vmem:[#allocation10 + $0xe4] ss:$8 sps:$4 sm:$0xff]   ;;  %v4841_v16 = vld [vmem:[#allocation10 + $0x1e0] ss:$8 sps:$4 sm:$0xff]  }
 0x4a0   : > { %v2992_v14 = vrot.slane %v2982_v52, %v5534_v41  ;;  %v3006_v1 = vrot.slane %v2982_v52, %v5537_v44  ;;  %v4846_v52 = vld [vmem:[#allocation10 + $0xd4] ss:$8 sps:$4 sm:$0xff]  }
 0x4a1   : > { %v2996_v53 = vrot.slane %v2983_v39, %v5534_v41  ;;  %v3010_v58 = vrot.slane %v2983_v39, %v5537_v44  ;;  %v4849_v39 = vld [vmem:[#allocation10 + $0x1d4] ss:$8 sps:$4 sm:$0xff]  }
 0x4a2   : > { %v2997_v10 = vmul.f32 %v2992_v14, %v2987_v7  ;;  %v3011_v43 = vmul.f32 %v3006_v1, %v3001_v48  ;;  %v4847_v14 = vld [vmem:[#allocation10 + $0x1d0] ss:$8 sps:$4 sm:$0xff]   ;;  %v4852_v1 = vld [vmem:[#allocation10 + $0xc4] ss:$8 sps:$4 sm:$0xff]  }
 0x4a3   : > { %v2998_v38 = vmul.f32 %v2996_v53, %v2987_v7  ;;  %v3012_v55 = vmul.f32 %v3010_v58, %v3001_v48  ;;  %v4837_v7 = vld [vmem:[#allocation10 + $0x1f4] ss:$8 sps:$4 sm:$0xff]   ;;  %v4844_v48 = vld [vmem:[#allocation10 + $0xd0] ss:$8 sps:$4 sm:$0xff]   ;;  %v4855_v53 = vld [vmem:[#allocation10 + $0x1c4] ss:$8 sps:$4 sm:$0xff]  }
 0x4a4   : > { %v3013_v22 = vadd.f32 %v3011_v43, %v2997_v10  ;;  %v4850_v58 = vld [vmem:[#allocation10 + $0xc0] ss:$8 sps:$4 sm:$0xff]   ;;  %v4858_v43 = vld [vmem:[#allocation10 + $0xb4] ss:$8 sps:$4 sm:$0xff]  }
 0x4a5   : > { %v3014_v57 = vadd.f32 %v3012_v55, %v2998_v38  ;;  %v4853_v10 = vld [vmem:[#allocation10 + $0x1c0] ss:$8 sps:$4 sm:$0xff]   ;;  %v4861_v38 = vld [vmem:[#allocation10 + $0x1b4] ss:$8 sps:$4 sm:$0xff]   ;;  %v4856_v55 = vld [vmem:[#allocation10 + $0xb0] ss:$8 sps:$4 sm:$0xff]  }
 0x4a6   : > { %v3019_v37 = vadd.f32 %v3017_v6, %v3013_v22  ;;  %v4864_v22 = vld [vmem:[#allocation10 + $0xa4] ss:$8 sps:$4 sm:$0xff]  }
 0x4a7   : > { %v3020_v12 = vadd.f32 %v3017_v6, %v3014_v57  ;;  %v4859_v6 = vld [vmem:[#allocation10 + $0x1b0] ss:$8 sps:$4 sm:$0xff]   ;;  %v4867_v57 = vld [vmem:[#allocation10 + $0x1a4] ss:$8 sps:$4 sm:$0xff]  }
 0x4a9   : > { %v3023_v11 = vcombine.low %v3019_v37, %v3020_v12  ;;  %v4862_v37 = vld [vmem:[#allocation10 + $0xa0] ss:$8 sps:$4 sm:$0xff]  }
 0x4aa   : > { %v4865_v12 = vld [vmem:[#allocation10 + $0x1a0] ss:$8 sps:$4 sm:$0xff]  }
 0x4ab   : > { %v3025_v40 = vmul.f32 %v4906_v46, %v3023_v11  ;;  %v4870_v11 = vld [vmem:[#allocation10 + $0x94] ss:$8 sps:$4 sm:$0xff]  }
 0x4ac   : > { %v4873_v46 = vld [vmem:[#allocation10 + $0x194] ss:$8 sps:$4 sm:$0xff]  }
 0x4ad   : > { %v3030_v45 = vcombine.high %v3025_v40, %v3025_v40  ;;  %v3032_v20 = vpack.c.bf16 %v3025_v40, %v3025_v40  ;;  %v4868_v40 = vld [vmem:[#allocation10 + $0x90] ss:$8 sps:$4 sm:$0xff]  }
 0x4af   : > { %v3033_v3 = vpack.c.bf16 %v3030_v45, %v3030_v45  ;;  %v4871_v45 = vld [vmem:[#allocation10 + $0x190] ss:$8 sps:$4 sm:$0xff]  }
 0x4b1   : > { %3471 = vmatprep.mubr.bf16.mxu0 %v3033_v3  ;;  %3512 = vmatprep.mubr.bf16.mxu1 %v3033_v3  ;;  %v4876_v3 = vld [vmem:[#allocation10 + $0x84] ss:$8 sps:$4 sm:$0xff]  }
 0x4b2   : > { %3472 = vmatmul.mubr.bf16.vlgmr.msra.gmra.mxu0 %v3032_v20  ;;  %3513 = vmatmul.mubr.bf16.vlgmr.msra.gmra.mxu1 %v3032_v20  ;;  %v4879_v20 = vld [vmem:[#allocation10 + $0x184] ss:$8 sps:$4 sm:$0xff]  }
 0x4b3   : > { %4025 = vmatpush1.bf16.msra.mxu0 %v4784_v15  ;;  %4066 = vmatpush1.bf16.msra.mxu1 %v4787_v27  ;;  %v4874_v15 = vld [vmem:[#allocation10 + $0x80] ss:$8 sps:$4 sm:$0xff]  }
 0x4b4   : > { %4026 = vmatprep.subr.bf16.mxu0 %v4792_v4  ;;  %4067 = vmatprep.subr.bf16.mxu1 %v4795_v9  ;;  %v4877_v27 = vld [vmem:[#allocation10 + $0x180] ss:$8 sps:$4 sm:$0xff]  }
 0x4b5   : > { %v3026_v4 = vld [vmem:[%s7246_s5] ss:$2 sm:$0xf] }
 0x4b6   : > { %v3102_v9 = vrot.slane %v3026_v4, %v5534_v41 }
 0x4b7   : > { %4027 = vmatpush1.bf16.msra.mxu0 %v4790_v35  ;;  %4068 = vmatpush1.bf16.msra.mxu1 %v4793_v21  ;;  %v3110_v35 = vrot.slane %v3026_v4, %v6363_v24 }
 0x4b8   : > { %4028 = vmatprep.subr.bf16.mxu0 %v4798_v51  ;;  %4069 = vmatprep.subr.bf16.mxu1 %v4801_v63  ;;  %v3106_v63 = vrot.slane %v3026_v4, %v5537_v44 }
 0x4bb   : > { %4029 = vmatpush1.bf16.msra.mxu0 %v4796_v30  ;;  %4070 = vmatpush1.bf16.msra.mxu1 %v4799_v42  ;;  %v3114_v30 = vrot.slane %v3026_v4, %v6360_v59 }
 0x4bc   : > { %4030 = vmatprep.subr.bf16.mxu0 %v4804_v13  ;;  %4071 = vmatprep.subr.bf16.mxu1 %v4807_v17 }
 0x4bf   : > { %4031 = vmatpush1.bf16.msra.mxu0 %v4802_v62  ;;  %4072 = vmatpush1.bf16.msra.mxu1 %v4805_v26 }
 0x4c0   : > { %4032 = vmatprep.subr.bf16.mxu0 %v4810_v36  ;;  %4073 = vmatprep.subr.bf16.mxu1 %v4813_v61 }
 0x4c3   : > { %4033 = vmatpush1.bf16.msra.mxu0 %v4808_v18  ;;  %4074 = vmatpush1.bf16.msra.mxu1 %v4811_v2 }
 0x4c4   : > { %4034 = vmatprep.subr.bf16.mxu0 %v4816_v56  ;;  %4075 = vmatprep.subr.bf16.mxu1 %v4819_v25 }
 0x4c7   : > { %4035 = vmatpush1.bf16.msra.mxu0 %v4814_v28  ;;  %4076 = vmatpush1.bf16.msra.mxu1 %v4817_v34 }
 0x4c8   : > { %4036 = vmatprep.subr.bf16.mxu0 %v4822_v19  ;;  %4077 = vmatprep.subr.bf16.mxu1 %v4825_v32 }
 0x4cb   : > { %4037 = vmatpush1.bf16.msra.mxu0 %v4820_v5  ;;  %4078 = vmatpush1.bf16.msra.mxu1 %v4823_v29 }
 0x4cc   : > { %4038 = vmatprep.subr.bf16.mxu0 %v4828_v31  ;;  %4079 = vmatprep.subr.bf16.mxu1 %v4831_v50 }
 0x4cf   : > { %4039 = vmatpush1.bf16.msra.mxu0 %v4826_v23  ;;  %4080 = vmatpush1.bf16.msra.mxu1 %v4829_v47 }
 0x4d0   : > { %4040 = vmatprep.subr.bf16.mxu0 %v4834_v8  ;;  %4081 = vmatprep.subr.bf16.mxu1 %v4837_v7 }
 0x4d3   : > { %4041 = vmatpush2.bf16.msra.mxu0 %v4832_v60  ;;  %4082 = vmatpush2.bf16.msra.mxu1 %v4835_v54 }
 0x4d4   : > { %4042 = vmatprep.subr.bf16.mxu0 %v4840_v0  ;;  %4083 = vmatprep.subr.bf16.mxu1 %v4843_v49 }
 0x4d7   : > { %4043 = vmatpush2.bf16.msra.mxu0 %v4838_v33  ;;  %4084 = vmatpush2.bf16.msra.mxu1 %v4841_v16 }
 0x4d8   : > { %4044 = vmatprep.subr.bf16.mxu0 %v4846_v52  ;;  %4085 = vmatprep.subr.bf16.mxu1 %v4849_v39 }
 0x4db   : > { %4045 = vmatpush2.bf16.msra.mxu0 %v4844_v48  ;;  %4086 = vmatpush2.bf16.msra.mxu1 %v4847_v14 }
 0x4dc   : > { %4046 = vmatprep.subr.bf16.mxu0 %v4852_v1  ;;  %4087 = vmatprep.subr.bf16.mxu1 %v4855_v53 }
 0x4df   : > { %4047 = vmatpush2.bf16.msra.mxu0 %v4850_v58  ;;  %4088 = vmatpush2.bf16.msra.mxu1 %v4853_v10 }
 0x4e0   : > { %4048 = vmatprep.subr.bf16.mxu0 %v4858_v43  ;;  %4089 = vmatprep.subr.bf16.mxu1 %v4861_v38 }
 0x4e3   : > { %4049 = vmatpush2.bf16.msra.mxu0 %v4856_v55  ;;  %4090 = vmatpush2.bf16.msra.mxu1 %v4859_v6 }
 0x4e4   : > { %4050 = vmatprep.subr.bf16.mxu0 %v4864_v22  ;;  %4091 = vmatprep.subr.bf16.mxu1 %v4867_v57 }
 0x4e7   : > { %4051 = vmatpush2.bf16.msra.mxu0 %v4862_v37  ;;  %4092 = vmatpush2.bf16.msra.mxu1 %v4865_v12 }
 0x4e8   : > { %4052 = vmatprep.subr.bf16.mxu0 %v4870_v11  ;;  %4093 = vmatprep.subr.bf16.mxu1 %v4873_v46 }
 0x4eb   : > { %4053 = vmatpush2.bf16.msra.mxu0 %v4868_v40  ;;  %4094 = vmatpush2.bf16.msra.mxu1 %v4871_v45 }
 0x4ec   : > { %4054 = vmatprep.subr.bf16.mxu0 %v4876_v3  ;;  %4095 = vmatprep.subr.bf16.mxu1 %v4879_v20 }
 0x4ef   : > { %4055 = vmatpush2.bf16.msra.mxu0 %v4874_v15  ;;  %4096 = vmatpush2.bf16.msra.mxu1 %v4877_v27 }
 0x572   : > { %v3473_v21 = vpop.f32.mrf.mxu0  ;;  %v3514_v51 = vpop.f32.mrf.mxu1 }
 0x573   : > { %v7161_v42 = vadd.f32 %v3473_v21, %v3102_v9  ;;  %v7163_v13 = vadd.f32 %v3514_v51, %v3110_v35 }
 0x574   : > { %v3475_v17 = vpop.f32.mrf.mxu0  ;;  %v3516_v62 = vpop.f32.mrf.mxu1 }
 0x575   : > { %v7166_v26 = vmul.f32 0.70710677, %v7161_v42  ;;  %v7169_v36 = vmul.f32 0.70710677, %v7163_v13  ;;  %v7171_v61 = vadd.f32 %v3475_v17, %v3106_v63  ;;  %v7173_v24 = vadd.f32 %v3516_v62, %v3114_v30 }
 0x576   : > { %v3477_v18 = vpop.f32.mrf.mxu0  ;;  %v3518_v2 = vpop.f32.mrf.mxu1 }
 0x577   : > { %v3529_v59 = vand.u32 2147483647, %v7166_v26  ;;  %v3531_v56 = vand.u32 2147483647, %v7169_v36  ;;  %v7178_v25 = vmul.f32 0.70710677, %v7171_v61 }
 0x578   : > { %v7181_v28 = vmul.f32 0.70710677, %v7173_v24  ;;  %v3478_v34 = vpop.f32.mrf.mxu0  ;;  %v3519_v19 = vpop.f32.mrf.mxu1  ;;  %vm3605_vm0 = vcmp.ge.f32.partialorder %v7166_v26, 0.0  ;;  %vm3607_vm2 = vcmp.ge.f32.partialorder %v7169_v36, 0.0  ;;  %v3523_v36 = vmul.f32 0.5, %v7163_v13 }
 0x579   : > { %v3533_v32 = vmul.f32 0.3275911, %v3529_v59  ;;  %v3535_v5 = vmul.f32 0.3275911, %v3531_v56  ;;  %v3530_v29 = vand.u32 2147483647, %v7178_v25 }
 0x57a   : > { %v3532_v31 = vand.u32 2147483647, %v7181_v28  ;;  %v3581_v54 = vsub.f32 0.0, %v3529_v59  ;;  %v3583_v0 = vsub.f32 0.0, %v3531_v56  ;;  %vm3606_vm3 = vcmp.ge.f32.partialorder %v7178_v25, 0.0 }
 0x57b   : > { %v3537_v50 = vadd.f32 1.0, %v3533_v32  ;;  %v3539_v23 = vadd.f32 1.0, %v3535_v5  ;;  %v3534_v47 = vmul.f32 0.3275911, %v3530_v29  ;;  %v3582_v33 = vsub.f32 0.0, %v3530_v29 }
 0x57c   : > { %v3536_v8 = vmul.f32 0.3275911, %v3532_v31  ;;  %v3585_v49 = vmul.f32 %v3581_v54, %v3529_v59  ;;  %v3587_v16 = vmul.f32 %v3583_v0, %v3531_v56  ;;  %v3584_v52 = vsub.f32 0.0, %v3532_v31  ;;  %v4251_v13 = vld [vmem:[%s7246_s5 + $0x1] ss:$2 sm:$0x3] }
 0x57d   : > { %4888 = vrcp.f32 %v3537_v50  ;;  %v3538_v7 = vadd.f32 1.0, %v3534_v47  ;;  %v3586_v53 = vmul.f32 %v3582_v33, %v3530_v29  ;;  %vm3608_vm4 = vcmp.ge.f32.partialorder %v7181_v28, 0.0 }
 0x57e   : > { %4890 = vrcp.f32 %v3539_v23  ;;  %v3540_v60 = vadd.f32 1.0, %v3536_v8  ;;  %v3589_v1 = vmul.f32 1.442695, %v3585_v49  ;;  %v3593_v10 = vmul.f32 1.442695, %v3587_v16 }
 0x57f   : > { %4892 = vrcp.f32 %v3538_v7  ;;  %v3588_v43 = vmul.f32 %v3584_v52, %v3532_v31  ;;  %v3591_v57 = vmul.f32 1.442695, %v3586_v53  ;;  %v3701_v28 = vrot.slane %v4251_v13, %v5537_v44 }
 0x580   : > { %4894 = vrcp.f32 %v3540_v60 }
 0x581   : > { %4896 = vpow2.f32 %v3589_v1  ;;  %v3595_v46 = vmul.f32 1.442695, %v3588_v43 }
 0x582   : > { %4898 = vpow2.f32 %v3593_v10 }
 0x583   : > { %4900 = vpow2.f32 %v3591_v57 }
 0x584   : > { %4902 = vpow2.f32 %v3595_v46 }
 0x58a   : > { %v4889_v39 = vpop.eup %4888 }
 0x58b   : > { %v4891_v48 = vpop.eup %4890  ;;  %v3545_v14 = vmul.f32 1.0614054, %v4889_v39 }
 0x58c   : > { %v3547_v58 = vmul.f32 1.0614054, %v4891_v48  ;;  %v4893_v55 = vpop.eup %4892 }
 0x58d   : > { %v4316_v38 = vadd.f32 -1.4531521, %v3545_v14  ;;  %v3546_v37 = vmul.f32 1.0614054, %v4893_v55  ;;  %v4895_v12 = vpop.eup %4894 }
 0x58e   : > { %v4318_v6 = vadd.f32 -1.4531521, %v3547_v58  ;;  %v3548_v3 = vmul.f32 1.0614054, %v4895_v12  ;;  %v4897_v29 = vpop.eup %4896 }
 0x58f   : > { %v3553_v22 = vmul.f32 %v4889_v39, %v4316_v38  ;;  %v4317_v45 = vadd.f32 -1.4531521, %v3546_v37  ;;  %v4899_v50 = vpop.eup %4898 }
 0x590   : > { %v3555_v11 = vmul.f32 %v4891_v48, %v4318_v6  ;;  %v4319_v4 = vadd.f32 -1.4531521, %v3548_v3  ;;  %v4901_v49 = vpop.eup %4900 }
 0x591   : > { %v3557_v40 = vadd.f32 1.4214138, %v3553_v22  ;;  %v3554_v20 = vmul.f32 %v4893_v55, %v4317_v45  ;;  %v4903_v1 = vpop.eup %4902 }
 0x592   : > { %v3559_v15 = vadd.f32 1.4214138, %v3555_v11  ;;  %v3556_v51 = vmul.f32 %v4895_v12, %v4319_v4 }
 0x593   : > { %v3561_v27 = vmul.f32 %v4889_v39, %v3557_v40  ;;  %v3558_v21 = vadd.f32 1.4214138, %v3554_v20  ;;  %v3524_v40 = vmul.f32 0.5, %v7173_v24  ;;  %v3697_v24 = vrot.slane %v4251_v13, %v5534_v41 }
 0x594   : > { %v3563_v9 = vmul.f32 %v4891_v48, %v3559_v15  ;;  %v3560_v62 = vadd.f32 1.4214138, %v3556_v51 }
 0x595   : > { %v4320_v35 = vadd.f32 -0.28449672, %v3561_v27  ;;  %v3562_v17 = vmul.f32 %v4893_v55, %v3558_v21 }
 0x596   : > { %v4322_v63 = vadd.f32 -0.28449672, %v3563_v9  ;;  %v3564_v56 = vmul.f32 %v4895_v12, %v3560_v62 }
 0x597   : > { %v3569_v30 = vmul.f32 %v4889_v39, %v4320_v35  ;;  %v4321_v59 = vadd.f32 -0.28449672, %v3562_v17 }
 0x598   : > { %v3571_v18 = vmul.f32 %v4891_v48, %v4322_v63  ;;  %v4323_v5 = vadd.f32 -0.28449672, %v3564_v56 }
 0x599   : > { %v3573_v2 = vadd.f32 0.2548296, %v3569_v30  ;;  %v3570_v32 = vmul.f32 %v4893_v55, %v4321_v59 }
 0x59a   : > { %v3575_v34 = vadd.f32 0.2548296, %v3571_v18  ;;  %v3572_v8 = vmul.f32 %v4895_v12, %v4323_v5 }
 0x59b   : > { %v3577_v19 = vmul.f32 %v4889_v39, %v3573_v2  ;;  %v3574_v47 = vadd.f32 0.2548296, %v3570_v32 }
 0x59c   : > { %v3579_v31 = vmul.f32 %v4891_v48, %v3575_v34  ;;  %v3576_v0 = vadd.f32 0.2548296, %v3572_v8 }
 0x59d   : > { %v3597_v23 = vmul.f32 %v4897_v29, %v3577_v19  ;;  %v3578_v54 = vmul.f32 %v4893_v55, %v3574_v47  ;;  %v3521_v55 = vmul.f32 0.5, %v7161_v42 }
 0x59e   : > { %v3599_v7 = vmul.f32 %v4899_v50, %v3579_v31  ;;  %v3580_v14 = vmul.f32 %v4895_v12, %v3576_v0  ;;  %v3522_v12 = vmul.f32 0.5, %v7171_v61 }
 0x59f   : > { %v3601_v60 = vsub.f32 1.0, %v3597_v23  ;;  %v3598_v52 = vmul.f32 %v4901_v49, %v3578_v54 }
 0x5a0   : > { %v3603_v33 = vsub.f32 1.0, %v3599_v7  ;;  %v3600_v58 = vmul.f32 %v4903_v1, %v3580_v14 }
 0x5a1   : > { %v3609_v16 = vsub.f32 0.0, %v3601_v60  ;;  %v3602_v48 = vsub.f32 1.0, %v3598_v52 }
 0x5a2   : > { %v3611_v39 = vsub.f32 0.0, %v3603_v33  ;;  %v3604_v6 = vsub.f32 1.0, %v3600_v58 }
 0x5a3   : > { %v3613_v53 = vsel %vm3605_vm0, %v3601_v60, %v3609_v16  ;;  %v3610_v38 = vsub.f32 0.0, %v3602_v48 }
 0x5a4   : > { %v3615_v10 = vsel %vm3607_vm2, %v3603_v33, %v3611_v39  ;;  %v3617_v43 = vadd.f32 1.0, %v3613_v53  ;;  %v3612_v37 = vsub.f32 0.0, %v3604_v6 }
 0x5a5   : > { %v3619_v22 = vadd.f32 1.0, %v3615_v10  ;;  %v3614_v57 = vsel %vm3606_vm3, %v3602_v48, %v3610_v38 }
 0x5a6   : > { %v3618_v26 = vadd.f32 1.0, %v3614_v57  ;;  %v3621_v11 = vmul.f32 %v3617_v43, %v3521_v55  ;;  %v3616_v46 = vsel %vm3608_vm4, %v3604_v6, %v3612_v37 }
 0x5a7   : > { %v3620_v3 = vadd.f32 1.0, %v3616_v46  ;;  %v3623_v15 = vmul.f32 %v3619_v22, %v3523_v36 }
 0x5a8   : > { %v3622_v45 = vmul.f32 %v3618_v26, %v3522_v12  ;;  %v3625_v42 = vpack.c.bf16 %v3621_v11, %v3621_v11 }
 0x5a9   : > { %v3624_v27 = vmul.f32 %v3620_v3, %v3524_v40  ;;  %v3627_v61 = vpack.c.bf16 %v3623_v15, %v3623_v15 }
 0x5aa   : > { %v3626_v25 = vpack.c.bf16 %v3622_v45, %v3622_v45 }
 0x5ab   : > { %v3628_v20 = vpack.c.bf16 %v3624_v27, %v3624_v27 }
 0x5ac   : > { %4056 = vmatprep.mubr.bf16.mxu0 %v3626_v25 }
 0x5ad   : > { %4057 = vmatmul.mubr.bf16.vlgmr.msra.gmra.mxu0 %v3625_v42  ;;  %4097 = vmatprep.mubr.bf16.mxu1 %v3628_v20 }
 0x5ae   : > { %4098 = vmatmul.mubr.bf16.vlgmr.msra.gmra.mxu1 %v3627_v61 }
 0x66d   : > { %v4058_v4 = vpop.f32.mrf.mxu0 }
 0x66e   : > { %v4059_v9 = vadd.f32 %v4058_v4, %v3697_v24  ;;  %v4099_v35 = vpop.f32.mrf.mxu1 }
 0x66f   : > { %v4060_v21 = vpop.f32.mrf.mxu0 }
 0x670   : > { %v4061_v51 = vadd.f32 %v4060_v21, %v3701_v28  ;;  %v4101_v63 = vpop.f32.mrf.mxu1  ;;  %v4100_v17 = vadd.f32 %v4099_v35, %v4059_v9 }
 0x671   : > { %v4062_v30 = vpop.f32.mrf.mxu0 }
 0x672   : > { %v4102_v62 = vadd.f32 %v4101_v63, %v4061_v51  ;;  %v4103_v18 = vpop.f32.mrf.mxu1 }
 0x673   : > { %v4063_v2 = vpop.f32.mrf.mxu0 }
 0x674   : > { %v4108_v41 = vcombine.low %v4100_v17, %v4102_v62  ;;  %v4104_v44 = vpop.f32.mrf.mxu1 }
 0x676   : > { %4110 = vst [vmem:[%s325_s30] sm:$0xff] %v4108_v41 }
 0x677   : > { %5052 = shalt.err (!%p5049_p11)
}
 0x678   : > { %s5053_s1 = scalar_lea.hbm %s7204_s8, 128  ;;  %s5057_s25 = scalar_lea.hbm %s7247_s6, 256 }
 0x679   : > { %p5054_p13 = scmp.ne.s32.totalorder %s7204_s8, %s5053_s1  ;;  %p5058_p4 = scmp.lt.s32.totalorder %s7204_s8, %s7247_s6 }
 0x67a   : > { %p5059_p6 = scmp.lt.s32.totalorder %s5057_s25, %s5053_s1 }
 0x67b   : > { %p5055_p1 = pnand %p5054_p13, %p7510_p7 }
 0x67c   : > { %p5060_p5 = por %p5059_p6, %p5058_p4 }
 0x67d   : > { %p5056_p3 = pneg %p5055_p1 }
 0x67f   : > { %p5061_p8 = pnand %p5060_p5, %p5056_p3 }
 0x681   : > { %5064 = shalt.err (!%p5061_p8)
}
 0x682   : > { %4413 = dma.vmem_to_hbm [thread:$0]  (%p7510_p7), %s4127_s10, 128, %s7204_s8, %s4112_s9  }
 0x683 PF: > { %s4138_s16 = sand.u32 1, %s5099_s21   ;;  %p7511_p10 = scmp.ne.s32.totalorder %s7345_s19, 0 }
 0x684   : > { %p7512_p0 = scmp.ge.s32.totalorder %s5111_s24, 2  ;;  %s4139_s30 = scalar_lea.sflag [#allocation4], %s4138_s16 }
 0x686   : > { %p4433_p12 = pnand %p7512_p0, %p7511_p10 }
 0x688   : > { %p4434_p2 = pneg %p4433_p12 }
 0x68a   : > { %5094 = dma.done.wait (%p4434_p2), %s4139_s30, 128  }
 0x68b   : > { %5096 = vsyncadd (%p4434_p2), %s4139_s30, 4294967168  ;;  %p21_p9 = scmp.ge.s32.totalorder %s5355_s7, 4   ;;  %s7513_s21 = smov %s5103_s22 }
 0x68c   : > { %s7514_s22 = smov %s5107_s23  ;;  %s7515_s23 = smov %s5366_s14 }
 0x68d   : > { %s7516_s24 = smov %s5355_s7  ;;  %23 = sbr.rel (!%p21_p9) target bundleno = 9 (0x9), region = 185 }
 0x692   :  { %4144 = vsyncpa [#allocation3], 1 }
 0x693   :  { %4146 = vsyncpa [#allocation3 + $0x1], 1 }
 0x694   :  { %4147 = vsyncpa [#allocation6], 1 }
 0x695   :  { %4148 = vsyncpa [#allocation9], 1 }
 0x696   :  { %4149 = vsyncpa [#allocation4], 1 }
 0x697   :  { %4151 = vsyncpa [#allocation4 + $0x1], 1 }

</bundles_post_ra>
